<compile_context>
chip_gen: v7x
topology: tpu7x:2x2x1
jax: 0.10.0
libtpu: 0.0.40
codegen_flags: <defaults>
</compile_context>

<pallas_src>
import functools

import jax
import jax.numpy as jnp
from jax.experimental import pallas as pl
from jax.experimental.pallas import tpu as pltpu

M = 5      # number of pyramid levels / attention branches
C = 256    # channels (fixed by the module)
D = 128    # bottleneck dim d


def _round_up(x, m):
    return -(-x // m) * m


def _cdiv(a, b):
    return -(-a // b)


def _tpu_generation_info():
    """Best-effort (vmem_capacity_bytes, num_tensorcores) query; safe fallbacks."""
    cap = None
    try:
        info = pltpu.get_tpu_info()
        cap = int(getattr(info, "vmem_capacity_bytes", 0)) or None
    except Exception:
        cap = None
    kind = ""
    try:
        kind = jax.devices()[0].device_kind.lower()
    except Exception:
        pass
    if cap is None:
        if any(t in kind for t in ("v4", "v5", "v6")):
            cap = 128 << 20
        else:
            cap = 64 << 20          # conservative default (v7x: 64 MiB per TC)
    # Chips whose "parallel" grid axes are sharded across 2 TensorCores.
    cores = 2 if any(t in kind for t in ("v7", "7x", "v4", "v5p")) else 1
    return cap, cores


def _gap_reduce_kernel(x_ref, out_ref, acc_ref, *, per_split, hw, hw_tile, needs_mask):
    """Stage 1: sum over levels + partial global-average-pool over one HW chunk."""
    h = pl.program_id(2)

    @pl.when(h == 0)
    def _init():
        acc_ref[...] = jnp.zeros_like(acc_ref)

    xf = x_ref[...].astype(jnp.float32)          # (Bt, M, C, HWt)
    lvl = jnp.sum(xf, axis=1)                    # (Bt, C, HWt)  VALU adds over levels
    if needs_mask:
        # Zero lanes past the true HW extent (ragged last chunk / OOB split chunk).
        start = (pl.program_id(0) * per_split + h) * hw_tile
        lane = jax.lax.broadcasted_iota(jnp.int32, (1, 1, hw_tile), 2)
        lvl = jnp.where(lane < (hw - start), lvl, 0.0)
    acc_ref[...] += jnp.sum(lvl, axis=-1)        # (Bt, C)  one cross-lane reduce / step

    @pl.when(h == pl.num_programs(2) - 1)
    def _store():
        out_ref[0, 0, :, :] = acc_ref[...]


def _epilogue_kernel(part_ref, w1_ref, scale_ref, shift_ref, w2_ref, b2_ref,
                     out_ref, *, inv_hw):
    """Stage 2: combine split partials, GAP, fc+BN+ReLU, branch convs, softmax."""
    u = jnp.sum(part_ref[...], axis=0) * inv_hw                       # (rows, C)
    z = jnp.dot(u, w1_ref[...], preferred_element_type=jnp.float32)   # (rows, D)
    z = jnp.maximum(z * scale_ref[...] + shift_ref[...], 0.0)         # eval-BN + ReLU
    logits = jnp.dot(z, w2_ref[...], preferred_element_type=jnp.float32)
    logits = logits + b2_ref[...]                                     # (rows, M*C)

    # Softmax over the level axis via 256-aligned lane slices (no relayout).
    parts = [logits[:, m * C:(m + 1) * C] for m in range(M)]
    mx = parts[0]
    for p in parts[1:]:
        mx = jnp.maximum(mx, p)
    es = [jnp.exp(p - mx) for p in parts]
    denom = es[0]
    for e in es[1:]:
        denom = denom + e
    inv = 1.0 / denom
    for m in range(M):
        out_ref[:, m * C:(m + 1) * C] = (es[m] * inv).astype(out_ref.dtype)


def channel_attention(x, w1, bn_gamma, bn_beta, bn_mean, bn_var, w2, b2, eps=1e-5):
    """x: (B, M, C, H, W). Returns (B, M, C, 1, 1) softmax attention weights."""
    B, M_, C_, H, W = x.shape
    assert M_ == M and C_ == C
    HW = H * W
    # Stream x at its native dtype (no pad, no copy); accumulate in f32 in-kernel.
    x2 = x.reshape(B, M_, C_, HW)
    itemsize = x2.dtype.itemsize

    # ---- generation-aware VMEM budgets ----
    vmem_cap, num_cores = _tpu_generation_info()
    if vmem_cap >= (96 << 20):          # v4 / v5e / v5p / v6e: 128 MiB VMEM
        x_budget = 72 << 20
        limit_cap = 100 << 20
    else:                               # v7x: 64 MiB per TensorCore — leave headroom
        x_budget = 40 << 20
        limit_cap = 54 << 20

    # ---- tile selection: prefer long HW DMA runs over batch rows ----
    B_TILE = max(1, min(B, 8))
    while True:
        per_hw_bytes = B_TILE * M * C * itemsize
        max_hw_tile = (x_budget // (2 * per_hw_bytes)) // 128 * 128
        if max_hw_tile >= 512 or B_TILE <= 1:
            break
        B_TILE = max(1, B_TILE // 2)
    max_hw_tile = max(128, max_hw_tile)
    HW_TILE = min(_round_up(HW, 128), max_hw_tile)

    num_b_tiles = _cdiv(B, B_TILE)
    total_tiles = _cdiv(HW, HW_TILE)
    # Split the HW reduction across TensorCores when batch alone can't keep 2 busy.
    num_splits = 2 if (num_cores >= 2 and num_b_tiles < 2 and total_tiles >= 2) else 1
    per_split = _cdiv(total_tiles, num_splits)
    needs_mask = (total_tiles * HW_TILE != HW) or (num_splits * per_split != total_tiles)

    if num_splits * per_split == total_tiles:
        x_index = lambda s, b, h: (b, 0, 0, s * per_split + h)
    else:
        # Clamp fully-OOB chunk indices in-bounds; the lane mask zeroes their data.
        x_index = lambda s, b, h: (b, 0, 0,
                                   jnp.minimum(s * per_split + h, total_tiles - 1))

    x_block_bytes = B_TILE * M * C * HW_TILE * itemsize
    out_block_bytes = B_TILE * C * 4
    vmem_limit = int(min(max(2 * x_block_bytes + 2 * out_block_bytes + (8 << 20),
                             32 << 20), limit_cap))

    reduce_kernel = functools.partial(
        _gap_reduce_kernel, per_split=per_split, hw=HW, hw_tile=HW_TILE,
        needs_mask=needs_mask)

    # ---- kernel 1: HBM-streaming level-sum + GAP partial sums ----
    partials = pl.pallas_call(
        reduce_kernel,
        out_shape=jax.ShapeDtypeStruct(
            (num_splits, num_b_tiles, B_TILE, C), jnp.float32),
        grid_spec=pltpu.PrefetchScalarGridSpec(
            num_scalar_prefetch=0,
            grid=(num_splits, num_b_tiles, per_split),
            in_specs=[pl.BlockSpec((B_TILE, M_, C_, HW_TILE), x_index)],
            out_specs=pl.BlockSpec((1, 1, B_TILE, C), lambda s, b, h: (s, b, 0, 0)),
            scratch_shapes=[pltpu.VMEM((B_TILE, C), jnp.float32)],
        ),
        compiler_params=pltpu.CompilerParams(
            dimension_semantics=("parallel", "parallel", "arbitrary"),
            vmem_limit_bytes=vmem_limit),
    )(x2)

    # ---- fold eval-mode BatchNorm into an affine scale/shift; flatten branch convs ----
    scale = (bn_gamma / jnp.sqrt(bn_var + eps)).astype(jnp.float32)     # (D,)
    shift = (bn_beta - bn_mean * scale).astype(jnp.float32)             # (D,)
    scale2 = scale.reshape(1, D)
    shift2 = shift.reshape(1, D)
    w1f = w1.astype(jnp.float32)                                        # (C, D)
    w2_flat = jnp.transpose(w2, (1, 0, 2)).reshape(D, M * C).astype(jnp.float32)
    b2_flat = b2.reshape(1, M * C).astype(jnp.float32)

    rows = num_b_tiles * B_TILE
    partials2 = partials.reshape(num_splits, rows, C)   # tiny

    # ---- kernel 2: tiny epilogue (single invocation, everything resident in VMEM) ----
    att = pl.pallas_call(
        functools.partial(_epilogue_kernel, inv_hw=1.0 / HW),
        out_shape=jax.ShapeDtypeStruct((rows, M * C), jnp.float32),
    )(partials2, w1f, scale2, shift2, w2_flat, b2_flat)

    return att[:B].reshape(B, M, C, 1, 1)


def _reference(x, w1, bn_gamma, bn_beta, bn_mean, bn_var, w2, b2, eps=1e-5):
    """Pure-JAX reference reproducing the PyTorch forward (eval-mode BN)."""
    B = x.shape[0]
    feats_U = jnp.sum(x, axis=1)                     # (B, C, H, W)
    feats_S = jnp.mean(feats_U, axis=(2, 3))         # (B, C)  gap
    z = feats_S @ w1                                 # (B, D)  conv 1x1 no bias
    z = (z - bn_mean) / jnp.sqrt(bn_var + eps) * bn_gamma + bn_beta
    z = jnp.maximum(z, 0.0)
    att = jnp.einsum('bd,mdc->bmc', z, w2) + b2[None]  # (B, M, C)
    att = jax.nn.softmax(att, axis=1)
    return att.reshape(B, M, C, 1, 1)


if __name__ == "__main__":
    key = jax.random.PRNGKey(0)
    ks = jax.random.split(key, 8)

    B, H, W = 2, 16, 16
    # inputs: (B, num_levels=5, 256, H, W)
    x = jax.random.normal(ks[0], (B, M, C, H, W), dtype=jnp.float32)

    # Deterministic synthetic parameters (shapes from the module __init__).
    # Conv2d(256,128,1,bias=False) weight stored transposed as (C, D).
    w1 = 0.05 * jax.random.normal(ks[1], (C, D), dtype=jnp.float32)
    # BatchNorm2d(128) params / running stats.
    bn_gamma = 1.0 + 0.1 * jax.random.normal(ks[2], (D,), dtype=jnp.float32)
    bn_beta = 0.1 * jax.random.normal(ks[3], (D,), dtype=jnp.float32)
    bn_mean = 0.1 * jax.random.normal(ks[4], (D,), dtype=jnp.float32)
    bn_var = 1.0 + 0.1 * jax.random.uniform(ks[5], (D,), dtype=jnp.float32)
    # M x Conv2d(128,256,1) weights (stored as (M, D, C)) and biases (M, C).
    w2 = 0.05 * jax.random.normal(ks[6], (M, D, C), dtype=jnp.float32)
    b2 = 0.1 * jax.random.normal(ks[7], (M, C), dtype=jnp.float32)

    out = channel_attention(x, w1, bn_gamma, bn_beta, bn_mean, bn_var, w2, b2)
    out = jax.block_until_ready(out)

    ref = _reference(x, w1, bn_gamma, bn_beta, bn_mean, bn_var, w2, b2)
    assert out.shape == (B, M, C, 1, 1), out.shape
    assert jnp.allclose(out, ref, atol=2e-3, rtol=2e-3), float(
        jnp.max(jnp.abs(out - ref)))

    print("KERNEL_OK")
</pallas_src>

<mosaic_0001>
module attributes {stable_mosaic.version = 11 : i64} {
  func.func @_gap_reduce_kernel(%arg0: i32, %arg1: i32, %arg2: i32, %arg3: memref<2x5x256x256xf32, #tpu.memory_space<vmem>>, %arg4: memref<1x1x2x256xf32, #tpu.memory_space<vmem>>, %arg5: memref<2x256xf32, #tpu.memory_space<vmem>>) attributes {dimension_semantics = [#tpu.dimension_semantics<parallel>, #tpu.dimension_semantics<parallel>, #tpu.dimension_semantics<arbitrary>], iteration_bounds = array<i64: 1, 1, 1>, scalar_prefetch = 0 : i64, scratch_operands = 1 : i64, tpu.core_type = #tpu.core_type<tc>, window_params = [{transform_indices = @transform_0, window_bounds = array<i64: 2, 5, 256, 256>}, {transform_indices = @transform_1, window_bounds = array<i64: 1, 1, 2, 256>}]} {
    %c0_i32 = arith.constant 0 : i32
    %0 = arith.cmpi eq, %arg2, %c0_i32 : i32
    %1 = arith.extui %0 : i1 to i32
    %c0_i32_0 = arith.constant 0 : i32
    %2 = arith.cmpi ne, %1, %c0_i32_0 : i32
    scf.if %2 {
      %cst_11 = arith.constant 0.000000e+00 : f32
      %12 = vector.broadcast %cst_11 : f32 to vector<2x256xf32>
      %c0_12 = arith.constant 0 : index
      %c0_13 = arith.constant 0 : index
      %13 = vector.load %arg5[%c0_12, %c0_13] : memref<2x256xf32, #tpu.memory_space<vmem>>, vector<2x256xf32>
      tpu.vector_store %arg5[%c0_12, %c0_13], %12 {strides = array<i32>} : memref<2x256xf32, #tpu.memory_space<vmem>>, vector<2x256xf32>,
    } else {
    }
    %c0 = arith.constant 0 : index
    %c0_1 = arith.constant 0 : index
    %c0_2 = arith.constant 0 : index
    %c0_3 = arith.constant 0 : index
    %3 = vector.load %arg3[%c0, %c0_1, %c0_2, %c0_3] : memref<2x5x256x256xf32, #tpu.memory_space<vmem>>, vector<2x5x256x256xf32>
    %cst = arith.constant dense<0.000000e+00> : vector<2x256x256xf32>
    %4 = vector.multi_reduction <add>, %3, %cst [1] : vector<2x5x256x256xf32> to vector<2x256x256xf32>
    %c0_4 = arith.constant 0 : index
    %c0_5 = arith.constant 0 : index
    %5 = vector.load %arg5[%c0_4, %c0_5] : memref<2x256xf32, #tpu.memory_space<vmem>>, vector<2x256xf32>
    %cst_6 = arith.constant dense<0.000000e+00> : vector<2x256xf32>
    %6 = vector.multi_reduction <add>, %4, %cst_6 [2] : vector<2x256x256xf32> to vector<2x256xf32>
    %7 = arith.addf %5, %6 : vector<2x256xf32>
    %c0_7 = arith.constant 0 : index
    %c0_8 = arith.constant 0 : index
    %8 = vector.load %arg5[%c0_7, %c0_8] : memref<2x256xf32, #tpu.memory_space<vmem>>, vector<2x256xf32>
    tpu.vector_store %arg5[%c0_7, %c0_8], %7 {strides = array<i32>} : memref<2x256xf32, #tpu.memory_space<vmem>>, vector<2x256xf32>,
    %c0_i32_9 = arith.constant 0 : i32
    %9 = arith.cmpi eq, %arg2, %c0_i32_9 : i32
    %10 = arith.extui %9 : i1 to i32
    %c0_i32_10 = arith.constant 0 : i32
    %11 = arith.cmpi ne, %10, %c0_i32_10 : i32
    scf.if %11 {
      %c0_11 = arith.constant 0 : index
      %c0_12 = arith.constant 0 : index
      %12 = vector.load %arg5[%c0_11, %c0_12] : memref<2x256xf32, #tpu.memory_space<vmem>>, vector<2x256xf32>
      %c0_13 = arith.constant 0 : index
      %c0_14 = arith.constant 0 : index
      %c0_15 = arith.constant 0 : index
      %c0_16 = arith.constant 0 : index
      %13 = vector.load %arg4[%c0_13, %c0_14, %c0_15, %c0_16] : memref<1x1x2x256xf32, #tpu.memory_space<vmem>>, vector<1x1x2x256xf32>
      %14 = vector.shape_cast %13 : vector<1x1x2x256xf32> to vector<2x256xf32>
      %15 = vector.shape_cast %12 : vector<2x256xf32> to vector<1x1x2x256xf32>
      tpu.vector_store %arg4[%c0_13, %c0_14, %c0_15, %c0_16], %15 {strides = array<i32>} : memref<1x1x2x256xf32, #tpu.memory_space<vmem>>, vector<1x1x2x256xf32>,
    } else {
    }
    return
  }
  func.func @transform_0(%arg0: i32, %arg1: i32, %arg2: i32) -> (i32, i32, i32, i32) {
    %c1_i32 = arith.constant 1 : i32
    %0 = arith.muli %arg0, %c1_i32 : i32
    %1 = arith.addi %0, %arg2 : i32
    %c0_i32 = arith.constant 0 : i32
    %c0_i32_0 = arith.constant 0 : i32
    %c0_i32_1 = arith.constant 0 : i32
    return %arg1, %c0_i32, %c0_i32_0, %1 : i32, i32, i32, i32
  }
  func.func @transform_1(%arg0: i32, %arg1: i32, %arg2: i32) -> (i32, i32, i32, i32) {
    %c0_i32 = arith.constant 0 : i32
    %c0_i32_0 = arith.constant 0 : i32
    %c0_i32_1 = arith.constant 0 : i32
    return %arg0, %arg1, %c0_i32, %c0_i32_0 : i32, i32, i32, i32
  }
}

</mosaic_0001>

<bundles_post_ra>
// kernel: tpu_custom_call.1
= control target key start
LH: loop header
LB: loop body
LE: loop exit
PB: predicated region body
PF: predicated region fallthrough
CT: control target
= control target key end

     0   :  { %6 = vsyncpa [#allocation4], 0  ;;  %s6065_s0 = inlined_call_operand.hbm [shape: f32[2,5,256,256], index: 0, kind: input, shape index: {}]   ;;  %s6066_s1 = inlined_call_operand.hbm [shape: f32[1,1,2,256], index: 1, kind: output, shape index: {}]  }
   0x1   :  { %7 = vsyncpa [#allocation5], 0  ;;  %s4958_s6 = smov [#allocation3]   ;;  %s4910_s10 = scalar_lea.hbm %s6065_s0, 81920 }
   0x2   :  { %s17_s7 = sshll.u32 %s4958_s6, 4  ;;  %p4911_p0 = scmp.ne.s32.totalorder %s6065_s0, %s4910_s10  ;;  %s18_s7 = int_to_ptr.vmem [resolvable:$true] %s17_s7 }
   0x3   :  { %p4914_p1 = scmp.lt.u32.totalorder %s4910_s10, %s6065_s0 }
   0x5   :  { %p4916_p2 = pnand %p4914_p1, %p4911_p0 }
   0x7   :  { %4919 = shalt.err (!%p4916_p2)
}
   0x8   :  { %s4920_s15 = scalar_lea.vmem %s18_s7, 81920  ;;  %p4925_p4 = scmp.lt.s32.totalorder %s18_s7, %s18_s7 }
   0x9   :  { %p4921_p3 = scmp.ne.s32.totalorder %s18_s7, %s4920_s15  ;;  %p4926_p5 = scmp.lt.s32.totalorder %s4920_s15, %s4920_s15 }
   0xb   :  { %p4927_p6 = por %p4926_p5, %p4925_p4 }
   0xd   :  { %p4928_p7 = pnand %p4927_p6, %p4921_p3 }
   0xf   :  { %4931 = shalt.err (!%p4928_p7)
}
  0x10   :  { %s4959_s16 = smov 256   ;;  %s4960_s17 = smov 16  }
  0x11   :  { %23 = dma.hbm_to_vmem [thread:$0]  %s6065_s0, 81920, %s18_s7, [#allocation4], %s4959_s16, %s4959_s16, %s4960_s17  }
  0x12   :  { %4954 = dma.done.wait [#allocation4], 81920  }
  0x13   :  { %4955 = vsyncadd [#allocation4], 4294885376  ;;  %v38_v0 = vld [vmem:[#allocation3 + $0x20] sm:$0xff]  ;;  %v39_v1 = vld [vmem:[#allocation3 + $0x28] sm:$0xff]  ;;  %vm4526_vm0 = vcmask 130112   ;;  %vm4533_vm1 = vcmask 195712  }
  0x14   :  { %v102_v2 = vld [vmem:[#allocation3 + $0x220] sm:$0xff]  ;;  %v103_v3 = vld [vmem:[#allocation3 + $0x228] sm:$0xff]  ;;  %v40_v28 = vld [vmem:[#allocation3 + $0x30] sm:$0xff]  ;;  %vm4540_vm2 = vcmask 261312   ;;  %vm4547_vm3 = vcmask 326912   ;;  %vm4554_vm4 = vcmask 392512  }
  0x15   :  { %v166_v4 = vld [vmem:[#allocation3 + $0x420] sm:$0xff]  ;;  %v167_v5 = vld [vmem:[#allocation3 + $0x428] sm:$0xff]  ;;  %v690_v6 = vadd.f32 %v102_v2, %v38_v0  ;;  %v694_v10 = vadd.f32 %v103_v3, %v39_v1  ;;  %v41_v32 = vld [vmem:[#allocation3 + $0x38] sm:$0xff]  ;;  %vm4561_vm5 = vcmask 458112   ;;  %vm4568_vm6 = vcmask 523712   ;;  %s4968_s0 = smov [#allocation6]  }
  0x16   :  { %v230_v7 = vld [vmem:[#allocation3 + $0x620] sm:$0xff]  ;;  %v231_v8 = vld [vmem:[#allocation3 + $0x628] sm:$0xff]  ;;  %v104_v33 = vld [vmem:[#allocation3 + $0x230] sm:$0xff]  ;;  %vm4575_vm7 = vcmask 589312   ;;  %vm4582_vm8 = vcmask 654912   ;;  %vm4589_vm9 = vcmask 720512  }
  0x17   :  { %v294_v9 = vld [vmem:[#allocation3 + $0x820] sm:$0xff]  ;;  %v295_v11 = vld [vmem:[#allocation3 + $0x828] sm:$0xff]  ;;  %v691_v12 = vadd.f32 %v690_v6, %v166_v4  ;;  %v695_v15 = vadd.f32 %v694_v10, %v167_v5  ;;  %v105_v34 = vld [vmem:[#allocation3 + $0x238] sm:$0xff]  ;;  %v698_v39 = vadd.f32 %v104_v33, %v40_v28  ;;  %vm4596_vm10 = vcmask 786112   ;;  %s4888_s20 = sshll.u32 %s4968_s0, 4  ;;  %s4889_s20 = int_to_ptr.vmem [resolvable:$true] %s4888_s20 }
  0x18   :  { %v34_v13 = vld [vmem:[#allocation3] sm:$0xff]  ;;  %v35_v14 = vld [vmem:[#allocation3 + $0x8] sm:$0xff]  ;;  %v168_v36 = vld [vmem:[#allocation3 + $0x430] sm:$0xff]  ;;  %v702_v40 = vadd.f32 %v105_v34, %v41_v32  ;;  %vm4603_vm11 = vcmask 851712   ;;  %vm4610_vm12 = vcmask 917312   ;;  %vm4617_vm13 = vcmask 982912   ;;  %p4937_p9 = scmp.lt.s32.totalorder %s4889_s20, %s4889_s20 }
  0x19   :  { %v98_v16 = vld [vmem:[#allocation3 + $0x200] sm:$0xff]  ;;  %v99_v17 = vld [vmem:[#allocation3 + $0x208] sm:$0xff]  ;;  %v692_v19 = vadd.f32 %v691_v12, %v230_v7  ;;  %v696_v25 = vadd.f32 %v695_v15, %v231_v8  ;;  %v169_v37 = vld [vmem:[#allocation3 + $0x438] sm:$0xff]  ;;  %v699_v47 = vadd.f32 %v698_v39, %v168_v36  ;;  %vm4624_vm14 = vcmask 1048512   ;;  %s4932_s21 = scalar_lea.vmem %s4889_s20, 64 }
  0x1a   :  { %v162_v18 = vld [vmem:[#allocation3 + $0x400] sm:$0xff]  ;;  %v163_v20 = vld [vmem:[#allocation3 + $0x408] sm:$0xff]  ;;  %v674_v23 = vadd.f32 %v98_v16, %v34_v13  ;;  %v678_v24 = vadd.f32 %v99_v17, %v35_v14  ;;  %v232_v38 = vld [vmem:[#allocation3 + $0x630] sm:$0xff]  ;;  %v703_v48 = vadd.f32 %v702_v40, %v169_v37  ;;  %vm4863_vm15 = vcmask 1041409   ;;  %p4933_p8 = scmp.ne.s32.totalorder %s4889_s20, %s4932_s21  ;;  %p4938_p10 = scmp.lt.s32.totalorder %s4932_s21, %s4932_s21 }
  0x1b   :  { %v226_v21 = vld [vmem:[#allocation3 + $0x600] sm:$0xff]  ;;  %v227_v22 = vld [vmem:[#allocation3 + $0x608] sm:$0xff]  ;;  %v693_v29 = vadd.f32 %v692_v19, %v294_v9  ;;  %v697_v35 = vadd.f32 %v696_v25, %v295_v11  ;;  %v233_v43 = vld [vmem:[#allocation3 + $0x638] sm:$0xff]  ;;  %v700_v58 = vadd.f32 %v699_v47, %v232_v38 }
  0x1c   :  { %v290_v26 = vld [vmem:[#allocation3 + $0x800] sm:$0xff]  ;;  %v291_v27 = vld [vmem:[#allocation3 + $0x808] sm:$0xff]  ;;  %v675_v30 = vadd.f32 %v674_v23, %v162_v18  ;;  %v679_v31 = vadd.f32 %v678_v24, %v163_v20  ;;  %v296_v44 = vld [vmem:[#allocation3 + $0x830] sm:$0xff]  ;;  %v704_v59 = vadd.f32 %v703_v48, %v233_v43  ;;  %p4939_p11 = por %p4938_p10, %p4937_p9 }
  0x1d   :  { %v297_v45 = vld [vmem:[#allocation3 + $0x838] sm:$0xff]  ;;  %v1193_v46 = vadd.f32 %v697_v35, %v693_v29  ;;  %v36_v49 = vld [vmem:[#allocation3 + $0x10] sm:$0xff]  ;;  %v701_v5 = vadd.f32 %v700_v58, %v296_v44  ;;  %v43_v25 = vld [vmem:[#allocation3 + $0x48] sm:$0xff] }
  0x1e   :  { %v676_v41 = vadd.f32 %v675_v30, %v226_v21  ;;  %v680_v42 = vadd.f32 %v679_v31, %v227_v22  ;;  %v37_v50 = vld [vmem:[#allocation3 + $0x18] sm:$0xff]  ;;  %v100_v51 = vld [vmem:[#allocation3 + $0x210] sm:$0xff]  ;;  %v705_v6 = vadd.f32 %v704_v59, %v297_v45  ;;  %v42_v21 = vld [vmem:[#allocation3 + $0x40] sm:$0xff]  ;;  %p4940_p12 = pnand %p4939_p11, %p4933_p8 }
  0x1f   :  { %v101_v54 = vld [vmem:[#allocation3 + $0x218] sm:$0xff]  ;;  %v164_v55 = vld [vmem:[#allocation3 + $0x410] sm:$0xff]  ;;  %v682_v57 = vadd.f32 %v100_v51, %v36_v49  ;;  %1194 = vadd.xlane.f32.xlu1 %v1193_v46  ;;  %v170_v29 = vld [vmem:[#allocation3 + $0x440] sm:$0xff] }
  0x20   :  { %v677_v52 = vadd.f32 %v676_v41, %v290_v26  ;;  %v681_v53 = vadd.f32 %v680_v42, %v291_v27  ;;  %v165_v56 = vld [vmem:[#allocation3 + $0x418] sm:$0xff]  ;;  %v228_v60 = vld [vmem:[#allocation3 + $0x610] sm:$0xff]  ;;  %v686_v63 = vadd.f32 %v101_v54, %v37_v50  ;;  %v1196_v17 = vadd.f32 %v705_v6, %v701_v5  ;;  %v106_v26 = vld [vmem:[#allocation3 + $0x240] sm:$0xff] }
  0x21   :  { %v229_v61 = vld [vmem:[#allocation3 + $0x618] sm:$0xff]  ;;  %v292_v62 = vld [vmem:[#allocation3 + $0x810] sm:$0xff]  ;;  %v683_v2 = vadd.f32 %v682_v57, %v164_v55  ;;  %v107_v27 = vld [vmem:[#allocation3 + $0x248] sm:$0xff]  ;;  %v706_v32 = vadd.f32 %v106_v26, %v42_v21 }
  0x22   :  { %v1187_v0 = vadd.f32 %v681_v53, %v677_v52  ;;  %v293_v1 = vld [vmem:[#allocation3 + $0x818] sm:$0xff]  ;;  %v44_v3 = vld [vmem:[#allocation3 + $0x50] sm:$0xff]  ;;  %v687_v7 = vadd.f32 %v686_v63, %v165_v56  ;;  %v171_v30 = vld [vmem:[#allocation3 + $0x448] sm:$0xff]  ;;  %v710_v33 = vadd.f32 %v107_v27, %v43_v25 }
  0x23   :  { %v45_v4 = vld [vmem:[#allocation3 + $0x58] sm:$0xff]  ;;  %v108_v8 = vld [vmem:[#allocation3 + $0x250] sm:$0xff]  ;;  %v684_v11 = vadd.f32 %v683_v2, %v228_v60  ;;  %1197 = vadd.xlane.f32.xlu1 %v1196_v17  ;;  %v234_v31 = vld [vmem:[#allocation3 + $0x640] sm:$0xff]  ;;  %v707_v40 = vadd.f32 %v706_v32, %v170_v29 }
  0x24   :  { %v109_v9 = vld [vmem:[#allocation3 + $0x258] sm:$0xff]  ;;  %v172_v10 = vld [vmem:[#allocation3 + $0x450] sm:$0xff]  ;;  %1188 = vadd.xlane.f32.xlu0 %v1187_v0  ;;  %v714_v15 = vadd.f32 %v108_v8, %v44_v3  ;;  %v688_v18 = vadd.f32 %v687_v7, %v229_v61  ;;  %v235_v36 = vld [vmem:[#allocation3 + $0x648] sm:$0xff]  ;;  %v711_v41 = vadd.f32 %v710_v33, %v171_v30 }
  0x25   :  { %v173_v12 = vld [vmem:[#allocation3 + $0x458] sm:$0xff]  ;;  %v236_v13 = vld [vmem:[#allocation3 + $0x650] sm:$0xff]  ;;  %v718_v16 = vadd.f32 %v109_v9, %v45_v4  ;;  %v685_v22 = vadd.f32 %v684_v11, %v292_v62  ;;  %v298_v37 = vld [vmem:[#allocation3 + $0x840] sm:$0xff]  ;;  %v708_v51 = vadd.f32 %v707_v40, %v234_v31 }
  0x26   :  { %v237_v14 = vld [vmem:[#allocation3 + $0x658] sm:$0xff]  ;;  %v300_v19 = vld [vmem:[#allocation3 + $0x850] sm:$0xff]  ;;  %v715_v23 = vadd.f32 %v714_v15, %v172_v10  ;;  %v689_v28 = vadd.f32 %v688_v18, %v293_v1  ;;  %v299_v38 = vld [vmem:[#allocation3 + $0x848] sm:$0xff]  ;;  %v712_v52 = vadd.f32 %v711_v41, %v235_v36 }
  0x27   :  { %v301_v20 = vld [vmem:[#allocation3 + $0x858] sm:$0xff]  ;;  %v719_v24 = vadd.f32 %v718_v16, %v173_v12  ;;  %v48_v42 = vld [vmem:[#allocation3 + $0x70] sm:$0xff]  ;;  %v46_v60 = vld [vmem:[#allocation3 + $0x60] sm:$0xff]  ;;  %v709_v62 = vadd.f32 %v708_v51, %v298_v37 }
  0x28   :  { %v716_v34 = vadd.f32 %v715_v23, %v236_v13  ;;  %v1190_v39 = vadd.f32 %v689_v28, %v685_v22  ;;  %v49_v43 = vld [vmem:[#allocation3 + $0x78] sm:$0xff]  ;;  %v112_v44 = vld [vmem:[#allocation3 + $0x270] sm:$0xff]  ;;  %v47_v61 = vld [vmem:[#allocation3 + $0x68] sm:$0xff]  ;;  %v713_v63 = vadd.f32 %v712_v52, %v299_v38 }
  0x29   :  { %v720_v35 = vadd.f32 %v719_v24, %v237_v14  ;;  %v113_v47 = vld [vmem:[#allocation3 + $0x278] sm:$0xff]  ;;  %v176_v48 = vld [vmem:[#allocation3 + $0x470] sm:$0xff]  ;;  %v730_v50 = vadd.f32 %v112_v44, %v48_v42  ;;  %v110_v1 = vld [vmem:[#allocation3 + $0x260] sm:$0xff] }
  0x2a   :  { %v717_v45 = vadd.f32 %v716_v34, %v300_v19  ;;  %v177_v49 = vld [vmem:[#allocation3 + $0x478] sm:$0xff]  ;;  %1191 = vadd.xlane.f32.xlu0 %v1190_v39  ;;  %v240_v53 = vld [vmem:[#allocation3 + $0x670] sm:$0xff]  ;;  %v734_v56 = vadd.f32 %v113_v47, %v49_v43  ;;  %v111_v2 = vld [vmem:[#allocation3 + $0x268] sm:$0xff]  ;;  %v722_v8 = vadd.f32 %v110_v1, %v46_v60  ;;  %v1199_v10 = vadd.f32 %v713_v63, %v709_v62 }
  0x2b   :  { %v721_v46 = vadd.f32 %v720_v35, %v301_v20  ;;  %v241_v54 = vld [vmem:[#allocation3 + $0x678] sm:$0xff]  ;;  %v304_v55 = vld [vmem:[#allocation3 + $0x870] sm:$0xff]  ;;  %v731_v59 = vadd.f32 %v730_v50, %v176_v48  ;;  %v174_v3 = vld [vmem:[#allocation3 + $0x460] sm:$0xff]  ;;  %v726_v9 = vadd.f32 %v111_v2, %v47_v61 }
  0x2c   :  { %v305_v58 = vld [vmem:[#allocation3 + $0x878] sm:$0xff]  ;;  %v735_v0 = vadd.f32 %v734_v56, %v177_v49  ;;  %v175_v5 = vld [vmem:[#allocation3 + $0x468] sm:$0xff]  ;;  %v238_v6 = vld [vmem:[#allocation3 + $0x660] sm:$0xff]  ;;  %v723_v16 = vadd.f32 %v722_v8, %v174_v3 }
  0x2d   :  { %v1202_v57 = vadd.f32 %v721_v46, %v717_v45  ;;  %v732_v4 = vadd.f32 %v731_v59, %v240_v53  ;;  %v239_v7 = vld [vmem:[#allocation3 + $0x668] sm:$0xff]  ;;  %v302_v12 = vld [vmem:[#allocation3 + $0x860] sm:$0xff]  ;;  %v52_v14 = vld [vmem:[#allocation3 + $0x90] sm:$0xff]  ;;  %v727_v17 = vadd.f32 %v726_v9, %v175_v5 }
  0x2e   :  { %v736_v11 = vadd.f32 %v735_v0, %v241_v54  ;;  %v303_v13 = vld [vmem:[#allocation3 + $0x868] sm:$0xff]  ;;  %v53_v18 = vld [vmem:[#allocation3 + $0x98] sm:$0xff]  ;;  %v116_v19 = vld [vmem:[#allocation3 + $0x290] sm:$0xff]  ;;  %1200 = vadd.xlane.f32.xlu0 %v1199_v10  ;;  %v724_v27 = vadd.f32 %v723_v16, %v238_v6 }
  0x2f   :  { %1203 = vadd.xlane.f32.xlu1 %v1202_v57  ;;  %v733_v15 = vadd.f32 %v732_v4, %v304_v55  ;;  %v117_v20 = vld [vmem:[#allocation3 + $0x298] sm:$0xff]  ;;  %v180_v22 = vld [vmem:[#allocation3 + $0x490] sm:$0xff]  ;;  %v746_v25 = vadd.f32 %v116_v19, %v52_v14  ;;  %v728_v28 = vadd.f32 %v727_v17, %v239_v7  ;;  %v50_v35 = vld [vmem:[#allocation3 + $0x80] sm:$0xff] }
  0x30   :  { %v737_v21 = vadd.f32 %v736_v11, %v305_v58  ;;  %v181_v23 = vld [vmem:[#allocation3 + $0x498] sm:$0xff]  ;;  %v244_v24 = vld [vmem:[#allocation3 + $0x690] sm:$0xff]  ;;  %v750_v26 = vadd.f32 %v117_v20, %v53_v18  ;;  %v51_v36 = vld [vmem:[#allocation3 + $0x88] sm:$0xff]  ;;  %v725_v38 = vadd.f32 %v724_v27, %v302_v12 }
  0x31   :  { %v245_v29 = vld [vmem:[#allocation3 + $0x698] sm:$0xff]  ;;  %v308_v30 = vld [vmem:[#allocation3 + $0x890] sm:$0xff]  ;;  %v747_v33 = vadd.f32 %v746_v25, %v180_v22  ;;  %v114_v37 = vld [vmem:[#allocation3 + $0x280] sm:$0xff]  ;;  %v729_v39 = vadd.f32 %v728_v28, %v303_v13 }
  0x32   :  { %v309_v31 = vld [vmem:[#allocation3 + $0x898] sm:$0xff]  ;;  %v1208_v32 = vadd.f32 %v737_v21, %v733_v15  ;;  %v751_v34 = vadd.f32 %v750_v26, %v181_v23  ;;  %v115_v40 = vld [vmem:[#allocation3 + $0x288] sm:$0xff]  ;;  %v178_v41 = vld [vmem:[#allocation3 + $0x480] sm:$0xff]  ;;  %v738_v43 = vadd.f32 %v114_v37, %v50_v35 }
  0x33   :  { %v179_v42 = vld [vmem:[#allocation3 + $0x488] sm:$0xff]  ;;  %v748_v44 = vadd.f32 %v747_v33, %v244_v24  ;;  %v242_v46 = vld [vmem:[#allocation3 + $0x680] sm:$0xff]  ;;  %v742_v49 = vadd.f32 %v115_v40, %v51_v36  ;;  %v1205_v50 = vadd.f32 %v729_v39, %v725_v38  ;;  %v56_v53 = vld [vmem:[#allocation3 + $0xb0] sm:$0xff] }
  0x34   :  { %1209 = vadd.xlane.f32.xlu1 %v1208_v32  ;;  %v752_v45 = vadd.f32 %v751_v34, %v245_v29  ;;  %v243_v47 = vld [vmem:[#allocation3 + $0x688] sm:$0xff]  ;;  %v306_v48 = vld [vmem:[#allocation3 + $0x880] sm:$0xff]  ;;  %v739_v52 = vadd.f32 %v738_v43, %v178_v41  ;;  %v57_v54 = vld [vmem:[#allocation3 + $0xb8] sm:$0xff] }
  0x35   :  { %v307_v51 = vld [vmem:[#allocation3 + $0x888] sm:$0xff]  ;;  %v749_v55 = vadd.f32 %v748_v44, %v308_v30  ;;  %v743_v57 = vadd.f32 %v742_v49, %v179_v42  ;;  %v120_v58 = vld [vmem:[#allocation3 + $0x2b0] sm:$0xff]  ;;  %v121_v59 = vld [vmem:[#allocation3 + $0x2b8] sm:$0xff]  ;;  %1206 = vadd.xlane.f32.xlu0 %v1205_v50 }
  0x36   :  { %v753_v56 = vadd.f32 %v752_v45, %v309_v31  ;;  %v184_v60 = vld [vmem:[#allocation3 + $0x4b0] sm:$0xff]  ;;  %v740_v61 = vadd.f32 %v739_v52, %v242_v46  ;;  %v185_v62 = vld [vmem:[#allocation3 + $0x4b8] sm:$0xff]  ;;  %v762_v1 = vadd.f32 %v120_v58, %v56_v53  ;;  %v766_v2 = vadd.f32 %v121_v59, %v57_v54  ;;  %v54_v7 = vld [vmem:[#allocation3 + $0xa0] sm:$0xff] }
  0x37   :  { %v248_v63 = vld [vmem:[#allocation3 + $0x6b0] sm:$0xff]  ;;  %v249_v0 = vld [vmem:[#allocation3 + $0x6b8] sm:$0xff]  ;;  %v744_v4 = vadd.f32 %v743_v57, %v243_v47  ;;  %v55_v11 = vld [vmem:[#allocation3 + $0xa8] sm:$0xff] }
  0x38   :  { %v1214_v3 = vadd.f32 %v753_v56, %v749_v55  ;;  %v312_v5 = vld [vmem:[#allocation3 + $0x8b0] sm:$0xff]  ;;  %v313_v6 = vld [vmem:[#allocation3 + $0x8b8] sm:$0xff]  ;;  %v741_v8 = vadd.f32 %v740_v61, %v306_v48  ;;  %v763_v9 = vadd.f32 %v762_v1, %v184_v60  ;;  %v767_v10 = vadd.f32 %v766_v2, %v185_v62  ;;  %v118_v12 = vld [vmem:[#allocation3 + $0x2a0] sm:$0xff] }
  0x39   :  { %v119_v13 = vld [vmem:[#allocation3 + $0x2a8] sm:$0xff]  ;;  %v745_v14 = vadd.f32 %v744_v4, %v307_v51  ;;  %v182_v15 = vld [vmem:[#allocation3 + $0x4a0] sm:$0xff]  ;;  %v754_v18 = vadd.f32 %v118_v12, %v54_v7  ;;  %v60_v28 = vld [vmem:[#allocation3 + $0xd0] sm:$0xff] }
  0x3a   :  { %1215 = vadd.xlane.f32.xlu1 %v1214_v3  ;;  %v183_v16 = vld [vmem:[#allocation3 + $0x4a8] sm:$0xff]  ;;  %v246_v17 = vld [vmem:[#allocation3 + $0x6a0] sm:$0xff]  ;;  %v758_v19 = vadd.f32 %v119_v13, %v55_v11  ;;  %v764_v20 = vadd.f32 %v763_v9, %v248_v63  ;;  %v768_v21 = vadd.f32 %v767_v10, %v249_v0  ;;  %v61_v29 = vld [vmem:[#allocation3 + $0xd8] sm:$0xff] }
  0x3b   :  { %v247_v22 = vld [vmem:[#allocation3 + $0x6a8] sm:$0xff]  ;;  %v310_v23 = vld [vmem:[#allocation3 + $0x8a0] sm:$0xff]  ;;  %v1211_v25 = vadd.f32 %v745_v14, %v741_v8  ;;  %v755_v26 = vadd.f32 %v754_v18, %v182_v15  ;;  %v124_v30 = vld [vmem:[#allocation3 + $0x2d0] sm:$0xff] }
  0x3c   :  { %v311_v24 = vld [vmem:[#allocation3 + $0x8a8] sm:$0xff]  ;;  %v759_v27 = vadd.f32 %v758_v19, %v183_v16  ;;  %v765_v31 = vadd.f32 %v764_v20, %v312_v5  ;;  %v769_v32 = vadd.f32 %v768_v21, %v313_v6  ;;  %v125_v33 = vld [vmem:[#allocation3 + $0x2d8] sm:$0xff]  ;;  %v188_v34 = vld [vmem:[#allocation3 + $0x4d0] sm:$0xff]  ;;  %v778_v36 = vadd.f32 %v124_v30, %v60_v28 }
  0x3d   :  { %v189_v35 = vld [vmem:[#allocation3 + $0x4d8] sm:$0xff]  ;;  %1212 = vadd.xlane.f32.xlu0 %v1211_v25  ;;  %v756_v37 = vadd.f32 %v755_v26, %v246_v17  ;;  %v252_v39 = vld [vmem:[#allocation3 + $0x6d0] sm:$0xff]  ;;  %v782_v42 = vadd.f32 %v125_v33, %v61_v29  ;;  %v58_v46 = vld [vmem:[#allocation3 + $0xc0] sm:$0xff] }
  0x3e   :  { %v760_v38 = vadd.f32 %v759_v27, %v247_v22  ;;  %v253_v40 = vld [vmem:[#allocation3 + $0x6d8] sm:$0xff]  ;;  %v316_v41 = vld [vmem:[#allocation3 + $0x8d0] sm:$0xff]  ;;  %v1220_v43 = vadd.f32 %v769_v32, %v765_v31  ;;  %v779_v45 = vadd.f32 %v778_v36, %v188_v34  ;;  %v59_v47 = vld [vmem:[#allocation3 + $0xc8] sm:$0xff] }
  0x3f   :  { %v317_v44 = vld [vmem:[#allocation3 + $0x8d8] sm:$0xff]  ;;  %v757_v48 = vadd.f32 %v756_v37, %v310_v23  ;;  %v783_v50 = vadd.f32 %v782_v42, %v189_v35  ;;  %v122_v51 = vld [vmem:[#allocation3 + $0x2c0] sm:$0xff]  ;;  %v123_v52 = vld [vmem:[#allocation3 + $0x2c8] sm:$0xff] }
  0x40   :  { %v761_v49 = vadd.f32 %v760_v38, %v311_v24  ;;  %v186_v53 = vld [vmem:[#allocation3 + $0x4c0] sm:$0xff]  ;;  %1221 = vadd.xlane.f32.xlu1 %v1220_v43  ;;  %v780_v54 = vadd.f32 %v779_v45, %v252_v39  ;;  %v187_v55 = vld [vmem:[#allocation3 + $0x4c8] sm:$0xff]  ;;  %v770_v58 = vadd.f32 %v122_v51, %v58_v46  ;;  %v774_v59 = vadd.f32 %v123_v52, %v59_v47  ;;  %v64_v0 = vld [vmem:[#allocation3 + $0xf0] sm:$0xff] }
  0x41   :  { %v250_v56 = vld [vmem:[#allocation3 + $0x6c0] sm:$0xff]  ;;  %v251_v57 = vld [vmem:[#allocation3 + $0x6c8] sm:$0xff]  ;;  %v784_v61 = vadd.f32 %v783_v50, %v253_v40  ;;  %v65_v4 = vld [vmem:[#allocation3 + $0xf8] sm:$0xff] }
  0x42   :  { %v1217_v60 = vadd.f32 %v761_v49, %v757_v48  ;;  %v314_v62 = vld [vmem:[#allocation3 + $0x8c0] sm:$0xff]  ;;  %v315_v63 = vld [vmem:[#allocation3 + $0x8c8] sm:$0xff]  ;;  %v781_v1 = vadd.f32 %v780_v54, %v316_v41  ;;  %v771_v2 = vadd.f32 %v770_v58, %v186_v53  ;;  %v775_v3 = vadd.f32 %v774_v59, %v187_v55  ;;  %v128_v5 = vld [vmem:[#allocation3 + $0x2f0] sm:$0xff] }
  0x43   :  { %v129_v6 = vld [vmem:[#allocation3 + $0x2f8] sm:$0xff]  ;;  %v785_v7 = vadd.f32 %v784_v61, %v317_v44  ;;  %v192_v8 = vld [vmem:[#allocation3 + $0x4f0] sm:$0xff]  ;;  %v794_v11 = vadd.f32 %v128_v5, %v64_v0  ;;  %v62_v21 = vld [vmem:[#allocation3 + $0xe0] sm:$0xff] }
  0x44   :  { %1218 = vadd.xlane.f32.xlu0 %v1217_v60  ;;  %v193_v9 = vld [vmem:[#allocation3 + $0x4f8] sm:$0xff]  ;;  %v256_v10 = vld [vmem:[#allocation3 + $0x6f0] sm:$0xff]  ;;  %v798_v12 = vadd.f32 %v129_v6, %v65_v4  ;;  %v772_v13 = vadd.f32 %v771_v2, %v250_v56  ;;  %v776_v14 = vadd.f32 %v775_v3, %v251_v57  ;;  %v63_v22 = vld [vmem:[#allocation3 + $0xe8] sm:$0xff] }
  0x45   :  { %v257_v15 = vld [vmem:[#allocation3 + $0x6f8] sm:$0xff]  ;;  %v320_v16 = vld [vmem:[#allocation3 + $0x8f0] sm:$0xff]  ;;  %v1226_v18 = vadd.f32 %v785_v7, %v781_v1  ;;  %v795_v19 = vadd.f32 %v794_v11, %v192_v8  ;;  %v126_v23 = vld [vmem:[#allocation3 + $0x2e0] sm:$0xff] }
  0x46   :  { %v321_v17 = vld [vmem:[#allocation3 + $0x8f8] sm:$0xff]  ;;  %v799_v20 = vadd.f32 %v798_v12, %v193_v9  ;;  %v773_v24 = vadd.f32 %v772_v13, %v314_v62  ;;  %v777_v25 = vadd.f32 %v776_v14, %v315_v63  ;;  %v127_v26 = vld [vmem:[#allocation3 + $0x2e8] sm:$0xff]  ;;  %v190_v27 = vld [vmem:[#allocation3 + $0x4e0] sm:$0xff]  ;;  %v786_v29 = vadd.f32 %v126_v23, %v62_v21 }
  0x47   :  { %v191_v28 = vld [vmem:[#allocation3 + $0x4e8] sm:$0xff]  ;;  %1227 = vadd.xlane.f32.xlu1 %v1226_v18  ;;  %v796_v30 = vadd.f32 %v795_v19, %v256_v10  ;;  %v254_v32 = vld [vmem:[#allocation3 + $0x6e0] sm:$0xff]  ;;  %v790_v35 = vadd.f32 %v127_v26, %v63_v22  ;;  %v68_v39 = vld [vmem:[#allocation3 + $0x110] sm:$0xff] }
  0x48   :  { %v800_v31 = vadd.f32 %v799_v20, %v257_v15  ;;  %v255_v33 = vld [vmem:[#allocation3 + $0x6e8] sm:$0xff]  ;;  %v318_v34 = vld [vmem:[#allocation3 + $0x8e0] sm:$0xff]  ;;  %v1223_v36 = vadd.f32 %v777_v25, %v773_v24  ;;  %v787_v38 = vadd.f32 %v786_v29, %v190_v27  ;;  %v69_v40 = vld [vmem:[#allocation3 + $0x118] sm:$0xff] }
  0x49   :  { %v319_v37 = vld [vmem:[#allocation3 + $0x8e8] sm:$0xff]  ;;  %v797_v41 = vadd.f32 %v796_v30, %v320_v16  ;;  %v791_v43 = vadd.f32 %v790_v35, %v191_v28  ;;  %v132_v44 = vld [vmem:[#allocation3 + $0x310] sm:$0xff]  ;;  %v133_v45 = vld [vmem:[#allocation3 + $0x318] sm:$0xff] }
  0x4a   :  { %v801_v42 = vadd.f32 %v800_v31, %v321_v17  ;;  %v196_v46 = vld [vmem:[#allocation3 + $0x510] sm:$0xff]  ;;  %1224 = vadd.xlane.f32.xlu0 %v1223_v36  ;;  %v788_v47 = vadd.f32 %v787_v38, %v254_v32  ;;  %v197_v48 = vld [vmem:[#allocation3 + $0x518] sm:$0xff]  ;;  %v810_v51 = vadd.f32 %v132_v44, %v68_v39  ;;  %v814_v52 = vadd.f32 %v133_v45, %v69_v40  ;;  %v66_v57 = vld [vmem:[#allocation3 + $0x100] sm:$0xff] }
  0x4b   :  { %v260_v49 = vld [vmem:[#allocation3 + $0x710] sm:$0xff]  ;;  %v261_v50 = vld [vmem:[#allocation3 + $0x718] sm:$0xff]  ;;  %v792_v54 = vadd.f32 %v791_v43, %v255_v33  ;;  %v67_v61 = vld [vmem:[#allocation3 + $0x108] sm:$0xff] }
  0x4c   :  { %v1232_v53 = vadd.f32 %v801_v42, %v797_v41  ;;  %v324_v55 = vld [vmem:[#allocation3 + $0x910] sm:$0xff]  ;;  %v325_v56 = vld [vmem:[#allocation3 + $0x918] sm:$0xff]  ;;  %v789_v58 = vadd.f32 %v788_v47, %v318_v34  ;;  %v811_v59 = vadd.f32 %v810_v51, %v196_v46  ;;  %v815_v60 = vadd.f32 %v814_v52, %v197_v48  ;;  %v130_v62 = vld [vmem:[#allocation3 + $0x300] sm:$0xff] }
  0x4d   :  { %v131_v63 = vld [vmem:[#allocation3 + $0x308] sm:$0xff]  ;;  %v793_v0 = vadd.f32 %v792_v54, %v319_v37  ;;  %v194_v1 = vld [vmem:[#allocation3 + $0x500] sm:$0xff]  ;;  %v802_v4 = vadd.f32 %v130_v62, %v66_v57  ;;  %v72_v14 = vld [vmem:[#allocation3 + $0x130] sm:$0xff] }
  0x4e   :  { %1233 = vadd.xlane.f32.xlu1 %v1232_v53  ;;  %v195_v2 = vld [vmem:[#allocation3 + $0x508] sm:$0xff]  ;;  %v258_v3 = vld [vmem:[#allocation3 + $0x700] sm:$0xff]  ;;  %v806_v5 = vadd.f32 %v131_v63, %v67_v61  ;;  %v812_v6 = vadd.f32 %v811_v59, %v260_v49  ;;  %v816_v7 = vadd.f32 %v815_v60, %v261_v50  ;;  %v73_v15 = vld [vmem:[#allocation3 + $0x138] sm:$0xff] }
  0x4f   :  { %v259_v8 = vld [vmem:[#allocation3 + $0x708] sm:$0xff]  ;;  %v322_v9 = vld [vmem:[#allocation3 + $0x900] sm:$0xff]  ;;  %v1229_v11 = vadd.f32 %v793_v0, %v789_v58  ;;  %v803_v12 = vadd.f32 %v802_v4, %v194_v1  ;;  %v136_v16 = vld [vmem:[#allocation3 + $0x330] sm:$0xff] }
  0x50   :  { %v323_v10 = vld [vmem:[#allocation3 + $0x908] sm:$0xff]  ;;  %v807_v13 = vadd.f32 %v806_v5, %v195_v2  ;;  %v813_v17 = vadd.f32 %v812_v6, %v324_v55  ;;  %v817_v18 = vadd.f32 %v816_v7, %v325_v56  ;;  %v137_v19 = vld [vmem:[#allocation3 + $0x338] sm:$0xff]  ;;  %v200_v20 = vld [vmem:[#allocation3 + $0x530] sm:$0xff]  ;;  %v826_v22 = vadd.f32 %v136_v16, %v72_v14 }
  0x51   :  { %v201_v21 = vld [vmem:[#allocation3 + $0x538] sm:$0xff]  ;;  %1230 = vadd.xlane.f32.xlu0 %v1229_v11  ;;  %v804_v23 = vadd.f32 %v803_v12, %v258_v3  ;;  %v264_v25 = vld [vmem:[#allocation3 + $0x730] sm:$0xff]  ;;  %v830_v28 = vadd.f32 %v137_v19, %v73_v15  ;;  %v70_v32 = vld [vmem:[#allocation3 + $0x120] sm:$0xff] }
  0x52   :  { %v808_v24 = vadd.f32 %v807_v13, %v259_v8  ;;  %v265_v26 = vld [vmem:[#allocation3 + $0x738] sm:$0xff]  ;;  %v328_v27 = vld [vmem:[#allocation3 + $0x930] sm:$0xff]  ;;  %v1238_v29 = vadd.f32 %v817_v18, %v813_v17  ;;  %v827_v31 = vadd.f32 %v826_v22, %v200_v20  ;;  %v71_v33 = vld [vmem:[#allocation3 + $0x128] sm:$0xff] }
  0x53   :  { %v329_v30 = vld [vmem:[#allocation3 + $0x938] sm:$0xff]  ;;  %v805_v34 = vadd.f32 %v804_v23, %v322_v9  ;;  %v831_v36 = vadd.f32 %v830_v28, %v201_v21  ;;  %v134_v37 = vld [vmem:[#allocation3 + $0x320] sm:$0xff]  ;;  %v135_v38 = vld [vmem:[#allocation3 + $0x328] sm:$0xff] }
  0x54   :  { %v809_v35 = vadd.f32 %v808_v24, %v323_v10  ;;  %v198_v39 = vld [vmem:[#allocation3 + $0x520] sm:$0xff]  ;;  %1239 = vadd.xlane.f32.xlu1 %v1238_v29  ;;  %v828_v40 = vadd.f32 %v827_v31, %v264_v25  ;;  %v199_v41 = vld [vmem:[#allocation3 + $0x528] sm:$0xff]  ;;  %v818_v44 = vadd.f32 %v134_v37, %v70_v32  ;;  %v822_v45 = vadd.f32 %v135_v38, %v71_v33  ;;  %v76_v50 = vld [vmem:[#allocation3 + $0x150] sm:$0xff] }
  0x55   :  { %v262_v42 = vld [vmem:[#allocation3 + $0x720] sm:$0xff]  ;;  %v263_v43 = vld [vmem:[#allocation3 + $0x728] sm:$0xff]  ;;  %v832_v47 = vadd.f32 %v831_v36, %v265_v26  ;;  %v77_v54 = vld [vmem:[#allocation3 + $0x158] sm:$0xff] }
  0x56   :  { %v1235_v46 = vadd.f32 %v809_v35, %v805_v34  ;;  %v326_v48 = vld [vmem:[#allocation3 + $0x920] sm:$0xff]  ;;  %v327_v49 = vld [vmem:[#allocation3 + $0x928] sm:$0xff]  ;;  %v829_v51 = vadd.f32 %v828_v40, %v328_v27  ;;  %v819_v52 = vadd.f32 %v818_v44, %v198_v39  ;;  %v823_v53 = vadd.f32 %v822_v45, %v199_v41  ;;  %v140_v55 = vld [vmem:[#allocation3 + $0x350] sm:$0xff] }
  0x57   :  { %v141_v56 = vld [vmem:[#allocation3 + $0x358] sm:$0xff]  ;;  %v833_v57 = vadd.f32 %v832_v47, %v329_v30  ;;  %v204_v58 = vld [vmem:[#allocation3 + $0x550] sm:$0xff]  ;;  %v842_v61 = vadd.f32 %v140_v55, %v76_v50  ;;  %v74_v7 = vld [vmem:[#allocation3 + $0x140] sm:$0xff] }
  0x58   :  { %1236 = vadd.xlane.f32.xlu0 %v1235_v46  ;;  %v205_v59 = vld [vmem:[#allocation3 + $0x558] sm:$0xff]  ;;  %v268_v60 = vld [vmem:[#allocation3 + $0x750] sm:$0xff]  ;;  %v846_v62 = vadd.f32 %v141_v56, %v77_v54  ;;  %v820_v63 = vadd.f32 %v819_v52, %v262_v42  ;;  %v824_v0 = vadd.f32 %v823_v53, %v263_v43  ;;  %v75_v8 = vld [vmem:[#allocation3 + $0x148] sm:$0xff] }
  0x59   :  { %v269_v1 = vld [vmem:[#allocation3 + $0x758] sm:$0xff]  ;;  %v332_v2 = vld [vmem:[#allocation3 + $0x950] sm:$0xff]  ;;  %v1244_v4 = vadd.f32 %v833_v57, %v829_v51  ;;  %v843_v5 = vadd.f32 %v842_v61, %v204_v58  ;;  %v138_v9 = vld [vmem:[#allocation3 + $0x340] sm:$0xff] }
  0x5a   :  { %v333_v3 = vld [vmem:[#allocation3 + $0x958] sm:$0xff]  ;;  %v847_v6 = vadd.f32 %v846_v62, %v205_v59  ;;  %v821_v10 = vadd.f32 %v820_v63, %v326_v48  ;;  %v825_v11 = vadd.f32 %v824_v0, %v327_v49  ;;  %v139_v12 = vld [vmem:[#allocation3 + $0x348] sm:$0xff]  ;;  %v202_v13 = vld [vmem:[#allocation3 + $0x540] sm:$0xff]  ;;  %v834_v15 = vadd.f32 %v138_v9, %v74_v7 }
  0x5b   :  { %v203_v14 = vld [vmem:[#allocation3 + $0x548] sm:$0xff]  ;;  %1245 = vadd.xlane.f32.xlu1 %v1244_v4  ;;  %v844_v16 = vadd.f32 %v843_v5, %v268_v60  ;;  %v266_v18 = vld [vmem:[#allocation3 + $0x740] sm:$0xff]  ;;  %v838_v21 = vadd.f32 %v139_v12, %v75_v8  ;;  %v80_v25 = vld [vmem:[#allocation3 + $0x170] sm:$0xff] }
  0x5c   :  { %v848_v17 = vadd.f32 %v847_v6, %v269_v1  ;;  %v267_v19 = vld [vmem:[#allocation3 + $0x748] sm:$0xff]  ;;  %v330_v20 = vld [vmem:[#allocation3 + $0x940] sm:$0xff]  ;;  %v1241_v22 = vadd.f32 %v825_v11, %v821_v10  ;;  %v835_v24 = vadd.f32 %v834_v15, %v202_v13  ;;  %v81_v26 = vld [vmem:[#allocation3 + $0x178] sm:$0xff] }
  0x5d   :  { %v331_v23 = vld [vmem:[#allocation3 + $0x948] sm:$0xff]  ;;  %v845_v27 = vadd.f32 %v844_v16, %v332_v2  ;;  %v839_v29 = vadd.f32 %v838_v21, %v203_v14  ;;  %v144_v30 = vld [vmem:[#allocation3 + $0x370] sm:$0xff]  ;;  %v145_v31 = vld [vmem:[#allocation3 + $0x378] sm:$0xff] }
  0x5e   :  { %v849_v28 = vadd.f32 %v848_v17, %v333_v3  ;;  %v208_v32 = vld [vmem:[#allocation3 + $0x570] sm:$0xff]  ;;  %1242 = vadd.xlane.f32.xlu0 %v1241_v22  ;;  %v836_v33 = vadd.f32 %v835_v24, %v266_v18  ;;  %v209_v34 = vld [vmem:[#allocation3 + $0x578] sm:$0xff]  ;;  %v858_v37 = vadd.f32 %v144_v30, %v80_v25  ;;  %v862_v38 = vadd.f32 %v145_v31, %v81_v26  ;;  %v78_v43 = vld [vmem:[#allocation3 + $0x160] sm:$0xff] }
  0x5f   :  { %v272_v35 = vld [vmem:[#allocation3 + $0x770] sm:$0xff]  ;;  %v273_v36 = vld [vmem:[#allocation3 + $0x778] sm:$0xff]  ;;  %v840_v40 = vadd.f32 %v839_v29, %v267_v19  ;;  %v79_v47 = vld [vmem:[#allocation3 + $0x168] sm:$0xff] }
  0x60   :  { %v1250_v39 = vadd.f32 %v849_v28, %v845_v27  ;;  %v336_v41 = vld [vmem:[#allocation3 + $0x970] sm:$0xff]  ;;  %v337_v42 = vld [vmem:[#allocation3 + $0x978] sm:$0xff]  ;;  %v837_v44 = vadd.f32 %v836_v33, %v330_v20  ;;  %v859_v45 = vadd.f32 %v858_v37, %v208_v32  ;;  %v863_v46 = vadd.f32 %v862_v38, %v209_v34  ;;  %v142_v48 = vld [vmem:[#allocation3 + $0x360] sm:$0xff] }
  0x61   :  { %v143_v49 = vld [vmem:[#allocation3 + $0x368] sm:$0xff]  ;;  %v841_v50 = vadd.f32 %v840_v40, %v331_v23  ;;  %v206_v51 = vld [vmem:[#allocation3 + $0x560] sm:$0xff]  ;;  %v850_v54 = vadd.f32 %v142_v48, %v78_v43  ;;  %v84_v0 = vld [vmem:[#allocation3 + $0x190] sm:$0xff] }
  0x62   :  { %1251 = vadd.xlane.f32.xlu1 %v1250_v39  ;;  %v207_v52 = vld [vmem:[#allocation3 + $0x568] sm:$0xff]  ;;  %v270_v53 = vld [vmem:[#allocation3 + $0x760] sm:$0xff]  ;;  %v854_v55 = vadd.f32 %v143_v49, %v79_v47  ;;  %v860_v56 = vadd.f32 %v859_v45, %v272_v35  ;;  %v864_v57 = vadd.f32 %v863_v46, %v273_v36  ;;  %v85_v1 = vld [vmem:[#allocation3 + $0x198] sm:$0xff] }
  0x63   :  { %v271_v58 = vld [vmem:[#allocation3 + $0x768] sm:$0xff]  ;;  %v334_v59 = vld [vmem:[#allocation3 + $0x960] sm:$0xff]  ;;  %v1247_v61 = vadd.f32 %v841_v50, %v837_v44  ;;  %v851_v62 = vadd.f32 %v850_v54, %v206_v51  ;;  %v148_v2 = vld [vmem:[#allocation3 + $0x390] sm:$0xff] }
  0x64   :  { %v335_v60 = vld [vmem:[#allocation3 + $0x968] sm:$0xff]  ;;  %v855_v63 = vadd.f32 %v854_v55, %v207_v52  ;;  %v861_v3 = vadd.f32 %v860_v56, %v336_v41  ;;  %v865_v4 = vadd.f32 %v864_v57, %v337_v42  ;;  %v149_v5 = vld [vmem:[#allocation3 + $0x398] sm:$0xff]  ;;  %v212_v6 = vld [vmem:[#allocation3 + $0x590] sm:$0xff]  ;;  %v874_v8 = vadd.f32 %v148_v2, %v84_v0 }
  0x65   :  { %v213_v7 = vld [vmem:[#allocation3 + $0x598] sm:$0xff]  ;;  %1248 = vadd.xlane.f32.xlu0 %v1247_v61  ;;  %v852_v9 = vadd.f32 %v851_v62, %v270_v53  ;;  %v276_v11 = vld [vmem:[#allocation3 + $0x790] sm:$0xff]  ;;  %v878_v14 = vadd.f32 %v149_v5, %v85_v1  ;;  %v82_v18 = vld [vmem:[#allocation3 + $0x180] sm:$0xff] }
  0x66   :  { %v856_v10 = vadd.f32 %v855_v63, %v271_v58  ;;  %v277_v12 = vld [vmem:[#allocation3 + $0x798] sm:$0xff]  ;;  %v340_v13 = vld [vmem:[#allocation3 + $0x990] sm:$0xff]  ;;  %v1256_v15 = vadd.f32 %v865_v4, %v861_v3  ;;  %v875_v17 = vadd.f32 %v874_v8, %v212_v6  ;;  %v83_v19 = vld [vmem:[#allocation3 + $0x188] sm:$0xff] }
  0x67   :  { %v341_v16 = vld [vmem:[#allocation3 + $0x998] sm:$0xff]  ;;  %v853_v20 = vadd.f32 %v852_v9, %v334_v59  ;;  %v879_v22 = vadd.f32 %v878_v14, %v213_v7  ;;  %v146_v23 = vld [vmem:[#allocation3 + $0x380] sm:$0xff]  ;;  %v147_v24 = vld [vmem:[#allocation3 + $0x388] sm:$0xff] }
  0x68   :  { %v857_v21 = vadd.f32 %v856_v10, %v335_v60  ;;  %v210_v25 = vld [vmem:[#allocation3 + $0x580] sm:$0xff]  ;;  %1257 = vadd.xlane.f32.xlu1 %v1256_v15  ;;  %v876_v26 = vadd.f32 %v875_v17, %v276_v11  ;;  %v211_v27 = vld [vmem:[#allocation3 + $0x588] sm:$0xff]  ;;  %v866_v30 = vadd.f32 %v146_v23, %v82_v18  ;;  %v870_v31 = vadd.f32 %v147_v24, %v83_v19  ;;  %v88_v36 = vld [vmem:[#allocation3 + $0x1b0] sm:$0xff] }
  0x69   :  { %v274_v28 = vld [vmem:[#allocation3 + $0x780] sm:$0xff]  ;;  %v275_v29 = vld [vmem:[#allocation3 + $0x788] sm:$0xff]  ;;  %v880_v33 = vadd.f32 %v879_v22, %v277_v12  ;;  %v89_v40 = vld [vmem:[#allocation3 + $0x1b8] sm:$0xff] }
  0x6a   :  { %v1253_v32 = vadd.f32 %v857_v21, %v853_v20  ;;  %v338_v34 = vld [vmem:[#allocation3 + $0x980] sm:$0xff]  ;;  %v339_v35 = vld [vmem:[#allocation3 + $0x988] sm:$0xff]  ;;  %v877_v37 = vadd.f32 %v876_v26, %v340_v13  ;;  %v867_v38 = vadd.f32 %v866_v30, %v210_v25  ;;  %v871_v39 = vadd.f32 %v870_v31, %v211_v27  ;;  %v152_v41 = vld [vmem:[#allocation3 + $0x3b0] sm:$0xff] }
  0x6b   :  { %v153_v42 = vld [vmem:[#allocation3 + $0x3b8] sm:$0xff]  ;;  %v881_v43 = vadd.f32 %v880_v33, %v341_v16  ;;  %v216_v44 = vld [vmem:[#allocation3 + $0x5b0] sm:$0xff]  ;;  %v890_v47 = vadd.f32 %v152_v41, %v88_v36  ;;  %v86_v57 = vld [vmem:[#allocation3 + $0x1a0] sm:$0xff] }
  0x6c   :  { %1254 = vadd.xlane.f32.xlu0 %v1253_v32  ;;  %v217_v45 = vld [vmem:[#allocation3 + $0x5b8] sm:$0xff]  ;;  %v280_v46 = vld [vmem:[#allocation3 + $0x7b0] sm:$0xff]  ;;  %v894_v48 = vadd.f32 %v153_v42, %v89_v40  ;;  %v868_v49 = vadd.f32 %v867_v38, %v274_v28  ;;  %v872_v50 = vadd.f32 %v871_v39, %v275_v29  ;;  %v87_v58 = vld [vmem:[#allocation3 + $0x1a8] sm:$0xff] }
  0x6d   :  { %v281_v51 = vld [vmem:[#allocation3 + $0x7b8] sm:$0xff]  ;;  %v344_v52 = vld [vmem:[#allocation3 + $0x9b0] sm:$0xff]  ;;  %v1262_v54 = vadd.f32 %v881_v43, %v877_v37  ;;  %v891_v55 = vadd.f32 %v890_v47, %v216_v44  ;;  %v150_v59 = vld [vmem:[#allocation3 + $0x3a0] sm:$0xff] }
  0x6e   :  { %v345_v53 = vld [vmem:[#allocation3 + $0x9b8] sm:$0xff]  ;;  %v895_v56 = vadd.f32 %v894_v48, %v217_v45  ;;  %v869_v60 = vadd.f32 %v868_v49, %v338_v34  ;;  %v873_v61 = vadd.f32 %v872_v50, %v339_v35  ;;  %v151_v62 = vld [vmem:[#allocation3 + $0x3a8] sm:$0xff]  ;;  %v214_v63 = vld [vmem:[#allocation3 + $0x5a0] sm:$0xff]  ;;  %v882_v1 = vadd.f32 %v150_v59, %v86_v57 }
  0x6f   :  { %v215_v0 = vld [vmem:[#allocation3 + $0x5a8] sm:$0xff]  ;;  %1263 = vadd.xlane.f32.xlu1 %v1262_v54  ;;  %v892_v2 = vadd.f32 %v891_v55, %v280_v46  ;;  %v278_v4 = vld [vmem:[#allocation3 + $0x7a0] sm:$0xff]  ;;  %v886_v7 = vadd.f32 %v151_v62, %v87_v58  ;;  %v92_v11 = vld [vmem:[#allocation3 + $0x1d0] sm:$0xff] }
  0x70   :  { %v896_v3 = vadd.f32 %v895_v56, %v281_v51  ;;  %v279_v5 = vld [vmem:[#allocation3 + $0x7a8] sm:$0xff]  ;;  %v342_v6 = vld [vmem:[#allocation3 + $0x9a0] sm:$0xff]  ;;  %v1259_v8 = vadd.f32 %v873_v61, %v869_v60  ;;  %v883_v10 = vadd.f32 %v882_v1, %v214_v63  ;;  %v93_v12 = vld [vmem:[#allocation3 + $0x1d8] sm:$0xff] }
  0x71   :  { %v343_v9 = vld [vmem:[#allocation3 + $0x9a8] sm:$0xff]  ;;  %v893_v13 = vadd.f32 %v892_v2, %v344_v52  ;;  %v887_v15 = vadd.f32 %v886_v7, %v215_v0  ;;  %v156_v16 = vld [vmem:[#allocation3 + $0x3d0] sm:$0xff]  ;;  %v157_v17 = vld [vmem:[#allocation3 + $0x3d8] sm:$0xff] }
  0x72   :  { %v897_v14 = vadd.f32 %v896_v3, %v345_v53  ;;  %v220_v18 = vld [vmem:[#allocation3 + $0x5d0] sm:$0xff]  ;;  %1260 = vadd.xlane.f32.xlu0 %v1259_v8  ;;  %v884_v19 = vadd.f32 %v883_v10, %v278_v4  ;;  %v221_v20 = vld [vmem:[#allocation3 + $0x5d8] sm:$0xff]  ;;  %v906_v23 = vadd.f32 %v156_v16, %v92_v11  ;;  %v910_v24 = vadd.f32 %v157_v17, %v93_v12  ;;  %v90_v29 = vld [vmem:[#allocation3 + $0x1c0] sm:$0xff] }
  0x73   :  { %v284_v21 = vld [vmem:[#allocation3 + $0x7d0] sm:$0xff]  ;;  %v285_v22 = vld [vmem:[#allocation3 + $0x7d8] sm:$0xff]  ;;  %v888_v26 = vadd.f32 %v887_v15, %v279_v5  ;;  %v91_v33 = vld [vmem:[#allocation3 + $0x1c8] sm:$0xff] }
  0x74   :  { %v1268_v25 = vadd.f32 %v897_v14, %v893_v13  ;;  %v348_v27 = vld [vmem:[#allocation3 + $0x9d0] sm:$0xff]  ;;  %v349_v28 = vld [vmem:[#allocation3 + $0x9d8] sm:$0xff]  ;;  %v885_v30 = vadd.f32 %v884_v19, %v342_v6  ;;  %v907_v31 = vadd.f32 %v906_v23, %v220_v18  ;;  %v911_v32 = vadd.f32 %v910_v24, %v221_v20  ;;  %v154_v34 = vld [vmem:[#allocation3 + $0x3c0] sm:$0xff] }
  0x75   :  { %v155_v35 = vld [vmem:[#allocation3 + $0x3c8] sm:$0xff]  ;;  %v889_v36 = vadd.f32 %v888_v26, %v343_v9  ;;  %v218_v37 = vld [vmem:[#allocation3 + $0x5c0] sm:$0xff]  ;;  %v898_v40 = vadd.f32 %v154_v34, %v90_v29  ;;  %v96_v50 = vld [vmem:[#allocation3 + $0x1f0] sm:$0xff]  ;;  %v4961_v29 = vmov 0  }
  0x76   :  { %1269 = vadd.xlane.f32.xlu1 %v1268_v25  ;;  %v219_v38 = vld [vmem:[#allocation3 + $0x5c8] sm:$0xff]  ;;  %v282_v39 = vld [vmem:[#allocation3 + $0x7c0] sm:$0xff]  ;;  %v902_v41 = vadd.f32 %v155_v35, %v91_v33  ;;  %v908_v42 = vadd.f32 %v907_v31, %v284_v21  ;;  %v912_v43 = vadd.f32 %v911_v32, %v285_v22  ;;  %v97_v51 = vld [vmem:[#allocation3 + $0x1f8] sm:$0xff]  ;;  %4908 = vset.pattern.permute.xlu0 %v4961_v29 }
  0x77   :  { %v283_v44 = vld [vmem:[#allocation3 + $0x7c8] sm:$0xff]  ;;  %v346_v45 = vld [vmem:[#allocation3 + $0x9c0] sm:$0xff]  ;;  %v1265_v47 = vadd.f32 %v889_v36, %v885_v30  ;;  %v899_v48 = vadd.f32 %v898_v40, %v218_v37  ;;  %v160_v52 = vld [vmem:[#allocation3 + $0x3f0] sm:$0xff]  ;;  %4909 = vset.pattern.permute.xlu1 %v4961_v29 }
  0x78   :  { %v347_v46 = vld [vmem:[#allocation3 + $0x9c8] sm:$0xff]  ;;  %v903_v49 = vadd.f32 %v902_v41, %v219_v38  ;;  %v909_v53 = vadd.f32 %v908_v42, %v348_v27  ;;  %v913_v54 = vadd.f32 %v912_v43, %v349_v28  ;;  %v161_v55 = vld [vmem:[#allocation3 + $0x3f8] sm:$0xff]  ;;  %v224_v56 = vld [vmem:[#allocation3 + $0x5f0] sm:$0xff]  ;;  %v922_v58 = vadd.f32 %v160_v52, %v96_v50 }
  0x79   :  { %v225_v57 = vld [vmem:[#allocation3 + $0x5f8] sm:$0xff]  ;;  %1266 = vadd.xlane.f32.xlu0 %v1265_v47  ;;  %v900_v59 = vadd.f32 %v899_v48, %v282_v39  ;;  %v288_v61 = vld [vmem:[#allocation3 + $0x7f0] sm:$0xff]  ;;  %v926_v0 = vadd.f32 %v161_v55, %v97_v51  ;;  %v94_v4 = vld [vmem:[#allocation3 + $0x1e0] sm:$0xff] }
  0x7a   :  { %v904_v60 = vadd.f32 %v903_v49, %v283_v44  ;;  %v289_v62 = vld [vmem:[#allocation3 + $0x7f8] sm:$0xff]  ;;  %v352_v63 = vld [vmem:[#allocation3 + $0x9f0] sm:$0xff]  ;;  %v1274_v1 = vadd.f32 %v913_v54, %v909_v53  ;;  %v923_v3 = vadd.f32 %v922_v58, %v224_v56  ;;  %v95_v5 = vld [vmem:[#allocation3 + $0x1e8] sm:$0xff] }
  0x7b   :  { %v353_v2 = vld [vmem:[#allocation3 + $0x9f8] sm:$0xff]  ;;  %v901_v6 = vadd.f32 %v900_v59, %v346_v45  ;;  %v927_v8 = vadd.f32 %v926_v0, %v225_v57  ;;  %v158_v9 = vld [vmem:[#allocation3 + $0x3e0] sm:$0xff]  ;;  %v159_v10 = vld [vmem:[#allocation3 + $0x3e8] sm:$0xff] }
  0x7c   :  { %v905_v7 = vadd.f32 %v904_v60, %v347_v46  ;;  %v222_v11 = vld [vmem:[#allocation3 + $0x5e0] sm:$0xff]  ;;  %1275 = vadd.xlane.f32.xlu1 %v1274_v1  ;;  %v924_v12 = vadd.f32 %v923_v3, %v288_v61  ;;  %v223_v13 = vld [vmem:[#allocation3 + $0x5e8] sm:$0xff]  ;;  %v914_v16 = vadd.f32 %v158_v9, %v94_v4  ;;  %v918_v17 = vadd.f32 %v159_v10, %v95_v5  ;;  %v356_v22 = vld [vmem:[#allocation3 + $0xa10] sm:$0xff] }
  0x7d   :  { %v286_v14 = vld [vmem:[#allocation3 + $0x7e0] sm:$0xff]  ;;  %v287_v15 = vld [vmem:[#allocation3 + $0x7e8] sm:$0xff]  ;;  %v928_v19 = vadd.f32 %v927_v8, %v289_v62  ;;  %v357_v26 = vld [vmem:[#allocation3 + $0xa18] sm:$0xff] }
  0x7e   :  { %v1271_v18 = vadd.f32 %v905_v7, %v901_v6  ;;  %v350_v20 = vld [vmem:[#allocation3 + $0x9e0] sm:$0xff]  ;;  %v351_v21 = vld [vmem:[#allocation3 + $0x9e8] sm:$0xff]  ;;  %v925_v23 = vadd.f32 %v924_v12, %v352_v63  ;;  %v915_v24 = vadd.f32 %v914_v16, %v222_v11  ;;  %v919_v25 = vadd.f32 %v918_v17, %v223_v13  ;;  %v420_v27 = vld [vmem:[#allocation3 + $0xc10] sm:$0xff] }
  0x7f   :  { %v421_v28 = vld [vmem:[#allocation3 + $0xc18] sm:$0xff]  ;;  %v929_v30 = vadd.f32 %v928_v19, %v353_v2  ;;  %v484_v31 = vld [vmem:[#allocation3 + $0xe10] sm:$0xff]  ;;  %v938_v34 = vadd.f32 %v420_v27, %v356_v22  ;;  %v354_v44 = vld [vmem:[#allocation3 + $0xa00] sm:$0xff] }
  0x80   :  { %1272 = vadd.xlane.f32.xlu0 %v1271_v18  ;;  %v485_v32 = vld [vmem:[#allocation3 + $0xe18] sm:$0xff]  ;;  %v548_v33 = vld [vmem:[#allocation3 + $0x1010] sm:$0xff]  ;;  %v942_v35 = vadd.f32 %v421_v28, %v357_v26  ;;  %v916_v36 = vadd.f32 %v915_v24, %v286_v14  ;;  %v920_v37 = vadd.f32 %v919_v25, %v287_v15  ;;  %v355_v45 = vld [vmem:[#allocation3 + $0xa08] sm:$0xff] }
  0x81   :  { %v549_v38 = vld [vmem:[#allocation3 + $0x1018] sm:$0xff]  ;;  %v612_v39 = vld [vmem:[#allocation3 + $0x1210] sm:$0xff]  ;;  %v1280_v41 = vadd.f32 %v929_v30, %v925_v23  ;;  %v939_v42 = vadd.f32 %v938_v34, %v484_v31  ;;  %v418_v46 = vld [vmem:[#allocation3 + $0xc00] sm:$0xff] }
  0x82   :  { %v613_v40 = vld [vmem:[#allocation3 + $0x1218] sm:$0xff]  ;;  %v943_v43 = vadd.f32 %v942_v35, %v485_v32  ;;  %v917_v47 = vadd.f32 %v916_v36, %v350_v20  ;;  %v921_v48 = vadd.f32 %v920_v37, %v351_v21  ;;  %v419_v49 = vld [vmem:[#allocation3 + $0xc08] sm:$0xff]  ;;  %v482_v50 = vld [vmem:[#allocation3 + $0xe00] sm:$0xff]  ;;  %v930_v52 = vadd.f32 %v418_v46, %v354_v44 }
  0x83   :  { %v483_v51 = vld [vmem:[#allocation3 + $0xe08] sm:$0xff]  ;;  %1281 = vadd.xlane.f32.xlu1 %v1280_v41  ;;  %v940_v53 = vadd.f32 %v939_v42, %v548_v33  ;;  %v546_v55 = vld [vmem:[#allocation3 + $0x1000] sm:$0xff]  ;;  %v934_v58 = vadd.f32 %v419_v49, %v355_v45  ;;  %v360_v62 = vld [vmem:[#allocation3 + $0xa30] sm:$0xff] }
  0x84   :  { %v944_v54 = vadd.f32 %v943_v43, %v549_v38  ;;  %v547_v56 = vld [vmem:[#allocation3 + $0x1008] sm:$0xff]  ;;  %v610_v57 = vld [vmem:[#allocation3 + $0x1200] sm:$0xff]  ;;  %v1277_v59 = vadd.f32 %v921_v48, %v917_v47  ;;  %v931_v61 = vadd.f32 %v930_v52, %v482_v50  ;;  %v361_v63 = vld [vmem:[#allocation3 + $0xa38] sm:$0xff] }
  0x85   :  { %v611_v60 = vld [vmem:[#allocation3 + $0x1208] sm:$0xff]  ;;  %v941_v0 = vadd.f32 %v940_v53, %v612_v39  ;;  %v935_v2 = vadd.f32 %v934_v58, %v483_v51  ;;  %v424_v3 = vld [vmem:[#allocation3 + $0xc30] sm:$0xff]  ;;  %v425_v4 = vld [vmem:[#allocation3 + $0xc38] sm:$0xff] }
  0x86   :  { %v945_v1 = vadd.f32 %v944_v54, %v613_v40  ;;  %v488_v5 = vld [vmem:[#allocation3 + $0xe30] sm:$0xff]  ;;  %1278 = vadd.xlane.f32.xlu0 %v1277_v59  ;;  %v932_v6 = vadd.f32 %v931_v61, %v546_v55  ;;  %v489_v7 = vld [vmem:[#allocation3 + $0xe38] sm:$0xff]  ;;  %v954_v10 = vadd.f32 %v424_v3, %v360_v62  ;;  %v958_v11 = vadd.f32 %v425_v4, %v361_v63  ;;  %v358_v16 = vld [vmem:[#allocation3 + $0xa20] sm:$0xff] }
  0x87   :  { %v552_v8 = vld [vmem:[#allocation3 + $0x1030] sm:$0xff]  ;;  %v553_v9 = vld [vmem:[#allocation3 + $0x1038] sm:$0xff]  ;;  %v936_v13 = vadd.f32 %v935_v2, %v547_v56  ;;  %v359_v20 = vld [vmem:[#allocation3 + $0xa28] sm:$0xff] }
  0x88   :  { %v1286_v12 = vadd.f32 %v945_v1, %v941_v0  ;;  %v616_v14 = vld [vmem:[#allocation3 + $0x1230] sm:$0xff]  ;;  %v617_v15 = vld [vmem:[#allocation3 + $0x1238] sm:$0xff]  ;;  %v933_v17 = vadd.f32 %v932_v6, %v610_v57  ;;  %v955_v18 = vadd.f32 %v954_v10, %v488_v5  ;;  %v959_v19 = vadd.f32 %v958_v11, %v489_v7  ;;  %v422_v21 = vld [vmem:[#allocation3 + $0xc20] sm:$0xff] }
  0x89   :  { %v423_v22 = vld [vmem:[#allocation3 + $0xc28] sm:$0xff]  ;;  %v937_v23 = vadd.f32 %v936_v13, %v611_v60  ;;  %v486_v24 = vld [vmem:[#allocation3 + $0xe20] sm:$0xff]  ;;  %v946_v27 = vadd.f32 %v422_v21, %v358_v16  ;;  %v364_v37 = vld [vmem:[#allocation3 + $0xa50] sm:$0xff] }
  0x8a   :  { %1287 = vadd.xlane.f32.xlu1 %v1286_v12  ;;  %v487_v25 = vld [vmem:[#allocation3 + $0xe28] sm:$0xff]  ;;  %v550_v26 = vld [vmem:[#allocation3 + $0x1020] sm:$0xff]  ;;  %v950_v28 = vadd.f32 %v423_v22, %v359_v20  ;;  %v956_v29 = vadd.f32 %v955_v18, %v552_v8  ;;  %v960_v30 = vadd.f32 %v959_v19, %v553_v9  ;;  %v365_v38 = vld [vmem:[#allocation3 + $0xa58] sm:$0xff] }
  0x8b   :  { %v551_v31 = vld [vmem:[#allocation3 + $0x1028] sm:$0xff]  ;;  %v614_v32 = vld [vmem:[#allocation3 + $0x1220] sm:$0xff]  ;;  %v1283_v34 = vadd.f32 %v937_v23, %v933_v17  ;;  %v947_v35 = vadd.f32 %v946_v27, %v486_v24  ;;  %v428_v39 = vld [vmem:[#allocation3 + $0xc50] sm:$0xff] }
  0x8c   :  { %v615_v33 = vld [vmem:[#allocation3 + $0x1228] sm:$0xff]  ;;  %v951_v36 = vadd.f32 %v950_v28, %v487_v25  ;;  %v957_v40 = vadd.f32 %v956_v29, %v616_v14  ;;  %v961_v41 = vadd.f32 %v960_v30, %v617_v15  ;;  %v429_v42 = vld [vmem:[#allocation3 + $0xc58] sm:$0xff]  ;;  %v492_v43 = vld [vmem:[#allocation3 + $0xe50] sm:$0xff]  ;;  %v970_v45 = vadd.f32 %v428_v39, %v364_v37 }
  0x8d   :  { %v493_v44 = vld [vmem:[#allocation3 + $0xe58] sm:$0xff]  ;;  %1284 = vadd.xlane.f32.xlu0 %v1283_v34  ;;  %v948_v46 = vadd.f32 %v947_v35, %v550_v26  ;;  %v556_v48 = vld [vmem:[#allocation3 + $0x1050] sm:$0xff]  ;;  %v974_v51 = vadd.f32 %v429_v42, %v365_v38  ;;  %v362_v55 = vld [vmem:[#allocation3 + $0xa40] sm:$0xff] }
  0x8e   :  { %v952_v47 = vadd.f32 %v951_v36, %v551_v31  ;;  %v557_v49 = vld [vmem:[#allocation3 + $0x1058] sm:$0xff]  ;;  %v620_v50 = vld [vmem:[#allocation3 + $0x1250] sm:$0xff]  ;;  %v1292_v52 = vadd.f32 %v961_v41, %v957_v40  ;;  %v971_v54 = vadd.f32 %v970_v45, %v492_v43  ;;  %v363_v56 = vld [vmem:[#allocation3 + $0xa48] sm:$0xff] }
  0x8f   :  { %v621_v53 = vld [vmem:[#allocation3 + $0x1258] sm:$0xff]  ;;  %v949_v57 = vadd.f32 %v948_v46, %v614_v32  ;;  %v975_v59 = vadd.f32 %v974_v51, %v493_v44  ;;  %v426_v60 = vld [vmem:[#allocation3 + $0xc40] sm:$0xff]  ;;  %v427_v61 = vld [vmem:[#allocation3 + $0xc48] sm:$0xff] }
  0x90   :  { %v953_v58 = vadd.f32 %v952_v47, %v615_v33  ;;  %v490_v62 = vld [vmem:[#allocation3 + $0xe40] sm:$0xff]  ;;  %1293 = vadd.xlane.f32.xlu1 %v1292_v52  ;;  %v972_v63 = vadd.f32 %v971_v54, %v556_v48  ;;  %v491_v0 = vld [vmem:[#allocation3 + $0xe48] sm:$0xff]  ;;  %v962_v3 = vadd.f32 %v426_v60, %v362_v55  ;;  %v966_v4 = vadd.f32 %v427_v61, %v363_v56  ;;  %v368_v9 = vld [vmem:[#allocation3 + $0xa70] sm:$0xff] }
  0x91   :  { %v554_v1 = vld [vmem:[#allocation3 + $0x1040] sm:$0xff]  ;;  %v555_v2 = vld [vmem:[#allocation3 + $0x1048] sm:$0xff]  ;;  %v976_v6 = vadd.f32 %v975_v59, %v557_v49  ;;  %v369_v13 = vld [vmem:[#allocation3 + $0xa78] sm:$0xff] }
  0x92   :  { %v1289_v5 = vadd.f32 %v953_v58, %v949_v57  ;;  %v618_v7 = vld [vmem:[#allocation3 + $0x1240] sm:$0xff]  ;;  %v619_v8 = vld [vmem:[#allocation3 + $0x1248] sm:$0xff]  ;;  %v973_v10 = vadd.f32 %v972_v63, %v620_v50  ;;  %v963_v11 = vadd.f32 %v962_v3, %v490_v62  ;;  %v967_v12 = vadd.f32 %v966_v4, %v491_v0  ;;  %v432_v14 = vld [vmem:[#allocation3 + $0xc70] sm:$0xff] }
  0x93   :  { %v433_v15 = vld [vmem:[#allocation3 + $0xc78] sm:$0xff]  ;;  %v977_v16 = vadd.f32 %v976_v6, %v621_v53  ;;  %v496_v17 = vld [vmem:[#allocation3 + $0xe70] sm:$0xff]  ;;  %v986_v20 = vadd.f32 %v432_v14, %v368_v9  ;;  %v366_v30 = vld [vmem:[#allocation3 + $0xa60] sm:$0xff] }
  0x94   :  { %1290 = vadd.xlane.f32.xlu0 %v1289_v5  ;;  %v497_v18 = vld [vmem:[#allocation3 + $0xe78] sm:$0xff]  ;;  %v560_v19 = vld [vmem:[#allocation3 + $0x1070] sm:$0xff]  ;;  %v990_v21 = vadd.f32 %v433_v15, %v369_v13  ;;  %v964_v22 = vadd.f32 %v963_v11, %v554_v1  ;;  %v968_v23 = vadd.f32 %v967_v12, %v555_v2  ;;  %v367_v31 = vld [vmem:[#allocation3 + $0xa68] sm:$0xff] }
  0x95   :  { %v561_v24 = vld [vmem:[#allocation3 + $0x1078] sm:$0xff]  ;;  %v624_v25 = vld [vmem:[#allocation3 + $0x1270] sm:$0xff]  ;;  %v1298_v27 = vadd.f32 %v977_v16, %v973_v10  ;;  %v987_v28 = vadd.f32 %v986_v20, %v496_v17  ;;  %v430_v32 = vld [vmem:[#allocation3 + $0xc60] sm:$0xff] }
  0x96   :  { %v625_v26 = vld [vmem:[#allocation3 + $0x1278] sm:$0xff]  ;;  %v991_v29 = vadd.f32 %v990_v21, %v497_v18  ;;  %v965_v33 = vadd.f32 %v964_v22, %v618_v7  ;;  %v969_v34 = vadd.f32 %v968_v23, %v619_v8  ;;  %v431_v35 = vld [vmem:[#allocation3 + $0xc68] sm:$0xff]  ;;  %v494_v36 = vld [vmem:[#allocation3 + $0xe60] sm:$0xff]  ;;  %v978_v38 = vadd.f32 %v430_v32, %v366_v30 }
  0x97   :  { %v495_v37 = vld [vmem:[#allocation3 + $0xe68] sm:$0xff]  ;;  %1299 = vadd.xlane.f32.xlu1 %v1298_v27  ;;  %v988_v39 = vadd.f32 %v987_v28, %v560_v19  ;;  %v558_v41 = vld [vmem:[#allocation3 + $0x1060] sm:$0xff]  ;;  %v982_v44 = vadd.f32 %v431_v35, %v367_v31  ;;  %v372_v48 = vld [vmem:[#allocation3 + $0xa90] sm:$0xff] }
  0x98   :  { %v992_v40 = vadd.f32 %v991_v29, %v561_v24  ;;  %v559_v42 = vld [vmem:[#allocation3 + $0x1068] sm:$0xff]  ;;  %v622_v43 = vld [vmem:[#allocation3 + $0x1260] sm:$0xff]  ;;  %v1295_v45 = vadd.f32 %v969_v34, %v965_v33  ;;  %v979_v47 = vadd.f32 %v978_v38, %v494_v36  ;;  %v373_v49 = vld [vmem:[#allocation3 + $0xa98] sm:$0xff] }
  0x99   :  { %v623_v46 = vld [vmem:[#allocation3 + $0x1268] sm:$0xff]  ;;  %v989_v50 = vadd.f32 %v988_v39, %v624_v25  ;;  %v983_v52 = vadd.f32 %v982_v44, %v495_v37  ;;  %v436_v53 = vld [vmem:[#allocation3 + $0xc90] sm:$0xff]  ;;  %v437_v54 = vld [vmem:[#allocation3 + $0xc98] sm:$0xff] }
  0x9a   :  { %v993_v51 = vadd.f32 %v992_v40, %v625_v26  ;;  %v500_v55 = vld [vmem:[#allocation3 + $0xe90] sm:$0xff]  ;;  %1296 = vadd.xlane.f32.xlu0 %v1295_v45  ;;  %v980_v56 = vadd.f32 %v979_v47, %v558_v41  ;;  %v501_v57 = vld [vmem:[#allocation3 + $0xe98] sm:$0xff]  ;;  %v1002_v60 = vadd.f32 %v436_v53, %v372_v48  ;;  %v1006_v61 = vadd.f32 %v437_v54, %v373_v49  ;;  %v370_v2 = vld [vmem:[#allocation3 + $0xa80] sm:$0xff] }
  0x9b   :  { %v564_v58 = vld [vmem:[#allocation3 + $0x1090] sm:$0xff]  ;;  %v565_v59 = vld [vmem:[#allocation3 + $0x1098] sm:$0xff]  ;;  %v984_v63 = vadd.f32 %v983_v52, %v559_v42  ;;  %v371_v6 = vld [vmem:[#allocation3 + $0xa88] sm:$0xff] }
  0x9c   :  { %v1304_v62 = vadd.f32 %v993_v51, %v989_v50  ;;  %v628_v0 = vld [vmem:[#allocation3 + $0x1290] sm:$0xff]  ;;  %v629_v1 = vld [vmem:[#allocation3 + $0x1298] sm:$0xff]  ;;  %v981_v3 = vadd.f32 %v980_v56, %v622_v43  ;;  %v1003_v4 = vadd.f32 %v1002_v60, %v500_v55  ;;  %v1007_v5 = vadd.f32 %v1006_v61, %v501_v57  ;;  %v434_v7 = vld [vmem:[#allocation3 + $0xc80] sm:$0xff] }
  0x9d   :  { %v435_v8 = vld [vmem:[#allocation3 + $0xc88] sm:$0xff]  ;;  %v985_v9 = vadd.f32 %v984_v63, %v623_v46  ;;  %v498_v10 = vld [vmem:[#allocation3 + $0xe80] sm:$0xff]  ;;  %v994_v13 = vadd.f32 %v434_v7, %v370_v2  ;;  %v376_v23 = vld [vmem:[#allocation3 + $0xab0] sm:$0xff] }
  0x9e   :  { %1305 = vadd.xlane.f32.xlu1 %v1304_v62  ;;  %v499_v11 = vld [vmem:[#allocation3 + $0xe88] sm:$0xff]  ;;  %v562_v12 = vld [vmem:[#allocation3 + $0x1080] sm:$0xff]  ;;  %v998_v14 = vadd.f32 %v435_v8, %v371_v6  ;;  %v1004_v15 = vadd.f32 %v1003_v4, %v564_v58  ;;  %v1008_v16 = vadd.f32 %v1007_v5, %v565_v59  ;;  %v377_v24 = vld [vmem:[#allocation3 + $0xab8] sm:$0xff] }
  0x9f   :  { %v563_v17 = vld [vmem:[#allocation3 + $0x1088] sm:$0xff]  ;;  %v626_v18 = vld [vmem:[#allocation3 + $0x1280] sm:$0xff]  ;;  %v1301_v20 = vadd.f32 %v985_v9, %v981_v3  ;;  %v995_v21 = vadd.f32 %v994_v13, %v498_v10  ;;  %v440_v25 = vld [vmem:[#allocation3 + $0xcb0] sm:$0xff] }
  0xa0   :  { %v627_v19 = vld [vmem:[#allocation3 + $0x1288] sm:$0xff]  ;;  %v999_v22 = vadd.f32 %v998_v14, %v499_v11  ;;  %v1005_v26 = vadd.f32 %v1004_v15, %v628_v0  ;;  %v1009_v27 = vadd.f32 %v1008_v16, %v629_v1  ;;  %v441_v28 = vld [vmem:[#allocation3 + $0xcb8] sm:$0xff]  ;;  %v504_v29 = vld [vmem:[#allocation3 + $0xeb0] sm:$0xff]  ;;  %v1018_v31 = vadd.f32 %v440_v25, %v376_v23 }
  0xa1   :  { %v505_v30 = vld [vmem:[#allocation3 + $0xeb8] sm:$0xff]  ;;  %1302 = vadd.xlane.f32.xlu0 %v1301_v20  ;;  %v996_v32 = vadd.f32 %v995_v21, %v562_v12  ;;  %v568_v34 = vld [vmem:[#allocation3 + $0x10b0] sm:$0xff]  ;;  %v1022_v37 = vadd.f32 %v441_v28, %v377_v24  ;;  %v374_v41 = vld [vmem:[#allocation3 + $0xaa0] sm:$0xff] }
  0xa2   :  { %v1000_v33 = vadd.f32 %v999_v22, %v563_v17  ;;  %v569_v35 = vld [vmem:[#allocation3 + $0x10b8] sm:$0xff]  ;;  %v632_v36 = vld [vmem:[#allocation3 + $0x12b0] sm:$0xff]  ;;  %v1310_v38 = vadd.f32 %v1009_v27, %v1005_v26  ;;  %v1019_v40 = vadd.f32 %v1018_v31, %v504_v29  ;;  %v375_v42 = vld [vmem:[#allocation3 + $0xaa8] sm:$0xff] }
  0xa3   :  { %v633_v39 = vld [vmem:[#allocation3 + $0x12b8] sm:$0xff]  ;;  %v997_v43 = vadd.f32 %v996_v32, %v626_v18  ;;  %v1023_v45 = vadd.f32 %v1022_v37, %v505_v30  ;;  %v438_v46 = vld [vmem:[#allocation3 + $0xca0] sm:$0xff]  ;;  %v439_v47 = vld [vmem:[#allocation3 + $0xca8] sm:$0xff] }
  0xa4   :  { %v1001_v44 = vadd.f32 %v1000_v33, %v627_v19  ;;  %v502_v48 = vld [vmem:[#allocation3 + $0xea0] sm:$0xff]  ;;  %1311 = vadd.xlane.f32.xlu1 %v1310_v38  ;;  %v1020_v49 = vadd.f32 %v1019_v40, %v568_v34  ;;  %v503_v50 = vld [vmem:[#allocation3 + $0xea8] sm:$0xff]  ;;  %v1010_v53 = vadd.f32 %v438_v46, %v374_v41  ;;  %v1014_v54 = vadd.f32 %v439_v47, %v375_v42  ;;  %v380_v59 = vld [vmem:[#allocation3 + $0xad0] sm:$0xff] }
  0xa5   :  { %v566_v51 = vld [vmem:[#allocation3 + $0x10a0] sm:$0xff]  ;;  %v567_v52 = vld [vmem:[#allocation3 + $0x10a8] sm:$0xff]  ;;  %v1024_v56 = vadd.f32 %v1023_v45, %v569_v35  ;;  %v381_v63 = vld [vmem:[#allocation3 + $0xad8] sm:$0xff] }
  0xa6   :  { %v1307_v55 = vadd.f32 %v1001_v44, %v997_v43  ;;  %v630_v57 = vld [vmem:[#allocation3 + $0x12a0] sm:$0xff]  ;;  %v631_v58 = vld [vmem:[#allocation3 + $0x12a8] sm:$0xff]  ;;  %v1021_v60 = vadd.f32 %v1020_v49, %v632_v36  ;;  %v1011_v61 = vadd.f32 %v1010_v53, %v502_v48  ;;  %v1015_v62 = vadd.f32 %v1014_v54, %v503_v50  ;;  %v444_v0 = vld [vmem:[#allocation3 + $0xcd0] sm:$0xff] }
  0xa7   :  { %v445_v1 = vld [vmem:[#allocation3 + $0xcd8] sm:$0xff]  ;;  %v1025_v2 = vadd.f32 %v1024_v56, %v633_v39  ;;  %v508_v3 = vld [vmem:[#allocation3 + $0xed0] sm:$0xff]  ;;  %v1034_v6 = vadd.f32 %v444_v0, %v380_v59  ;;  %v378_v16 = vld [vmem:[#allocation3 + $0xac0] sm:$0xff] }
  0xa8   :  { %1308 = vadd.xlane.f32.xlu0 %v1307_v55  ;;  %v509_v4 = vld [vmem:[#allocation3 + $0xed8] sm:$0xff]  ;;  %v572_v5 = vld [vmem:[#allocation3 + $0x10d0] sm:$0xff]  ;;  %v1038_v7 = vadd.f32 %v445_v1, %v381_v63  ;;  %v1012_v8 = vadd.f32 %v1011_v61, %v566_v51  ;;  %v1016_v9 = vadd.f32 %v1015_v62, %v567_v52  ;;  %v379_v17 = vld [vmem:[#allocation3 + $0xac8] sm:$0xff] }
  0xa9   :  { %v573_v10 = vld [vmem:[#allocation3 + $0x10d8] sm:$0xff]  ;;  %v636_v11 = vld [vmem:[#allocation3 + $0x12d0] sm:$0xff]  ;;  %v1316_v13 = vadd.f32 %v1025_v2, %v1021_v60  ;;  %v1035_v14 = vadd.f32 %v1034_v6, %v508_v3  ;;  %v442_v18 = vld [vmem:[#allocation3 + $0xcc0] sm:$0xff] }
  0xaa   :  { %v637_v12 = vld [vmem:[#allocation3 + $0x12d8] sm:$0xff]  ;;  %v1039_v15 = vadd.f32 %v1038_v7, %v509_v4  ;;  %v1013_v19 = vadd.f32 %v1012_v8, %v630_v57  ;;  %v1017_v20 = vadd.f32 %v1016_v9, %v631_v58  ;;  %v443_v21 = vld [vmem:[#allocation3 + $0xcc8] sm:$0xff]  ;;  %v506_v22 = vld [vmem:[#allocation3 + $0xec0] sm:$0xff]  ;;  %v1026_v24 = vadd.f32 %v442_v18, %v378_v16 }
  0xab   :  { %v507_v23 = vld [vmem:[#allocation3 + $0xec8] sm:$0xff]  ;;  %1317 = vadd.xlane.f32.xlu1 %v1316_v13  ;;  %v1036_v25 = vadd.f32 %v1035_v14, %v572_v5  ;;  %v570_v27 = vld [vmem:[#allocation3 + $0x10c0] sm:$0xff]  ;;  %v1030_v30 = vadd.f32 %v443_v21, %v379_v17  ;;  %v384_v34 = vld [vmem:[#allocation3 + $0xaf0] sm:$0xff] }
  0xac   :  { %v1040_v26 = vadd.f32 %v1039_v15, %v573_v10  ;;  %v571_v28 = vld [vmem:[#allocation3 + $0x10c8] sm:$0xff]  ;;  %v634_v29 = vld [vmem:[#allocation3 + $0x12c0] sm:$0xff]  ;;  %v1313_v31 = vadd.f32 %v1017_v20, %v1013_v19  ;;  %v1027_v33 = vadd.f32 %v1026_v24, %v506_v22  ;;  %v385_v35 = vld [vmem:[#allocation3 + $0xaf8] sm:$0xff] }
  0xad   :  { %v635_v32 = vld [vmem:[#allocation3 + $0x12c8] sm:$0xff]  ;;  %v1037_v36 = vadd.f32 %v1036_v25, %v636_v11  ;;  %v1031_v38 = vadd.f32 %v1030_v30, %v507_v23  ;;  %v448_v39 = vld [vmem:[#allocation3 + $0xcf0] sm:$0xff]  ;;  %v449_v40 = vld [vmem:[#allocation3 + $0xcf8] sm:$0xff] }
  0xae   :  { %v1041_v37 = vadd.f32 %v1040_v26, %v637_v12  ;;  %v512_v41 = vld [vmem:[#allocation3 + $0xef0] sm:$0xff]  ;;  %1314 = vadd.xlane.f32.xlu0 %v1313_v31  ;;  %v1028_v42 = vadd.f32 %v1027_v33, %v570_v27  ;;  %v513_v43 = vld [vmem:[#allocation3 + $0xef8] sm:$0xff]  ;;  %v1050_v46 = vadd.f32 %v448_v39, %v384_v34  ;;  %v1054_v47 = vadd.f32 %v449_v40, %v385_v35  ;;  %v382_v52 = vld [vmem:[#allocation3 + $0xae0] sm:$0xff] }
  0xaf   :  { %v576_v44 = vld [vmem:[#allocation3 + $0x10f0] sm:$0xff]  ;;  %v577_v45 = vld [vmem:[#allocation3 + $0x10f8] sm:$0xff]  ;;  %v1032_v49 = vadd.f32 %v1031_v38, %v571_v28  ;;  %v383_v56 = vld [vmem:[#allocation3 + $0xae8] sm:$0xff] }
  0xb0   :  { %v1322_v48 = vadd.f32 %v1041_v37, %v1037_v36  ;;  %v640_v50 = vld [vmem:[#allocation3 + $0x12f0] sm:$0xff]  ;;  %v641_v51 = vld [vmem:[#allocation3 + $0x12f8] sm:$0xff]  ;;  %v1029_v53 = vadd.f32 %v1028_v42, %v634_v29  ;;  %v1051_v54 = vadd.f32 %v1050_v46, %v512_v41  ;;  %v1055_v55 = vadd.f32 %v1054_v47, %v513_v43  ;;  %v446_v57 = vld [vmem:[#allocation3 + $0xce0] sm:$0xff] }
  0xb1   :  { %v447_v58 = vld [vmem:[#allocation3 + $0xce8] sm:$0xff]  ;;  %v1033_v59 = vadd.f32 %v1032_v49, %v635_v32  ;;  %v510_v60 = vld [vmem:[#allocation3 + $0xee0] sm:$0xff]  ;;  %v1042_v63 = vadd.f32 %v446_v57, %v382_v52  ;;  %v388_v9 = vld [vmem:[#allocation3 + $0xb10] sm:$0xff] }
  0xb2   :  { %1323 = vadd.xlane.f32.xlu1 %v1322_v48  ;;  %v511_v61 = vld [vmem:[#allocation3 + $0xee8] sm:$0xff]  ;;  %v574_v62 = vld [vmem:[#allocation3 + $0x10e0] sm:$0xff]  ;;  %v1046_v0 = vadd.f32 %v447_v58, %v383_v56  ;;  %v1052_v1 = vadd.f32 %v1051_v54, %v576_v44  ;;  %v1056_v2 = vadd.f32 %v1055_v55, %v577_v45  ;;  %v389_v10 = vld [vmem:[#allocation3 + $0xb18] sm:$0xff] }
  0xb3   :  { %v575_v3 = vld [vmem:[#allocation3 + $0x10e8] sm:$0xff]  ;;  %v638_v4 = vld [vmem:[#allocation3 + $0x12e0] sm:$0xff]  ;;  %v1319_v6 = vadd.f32 %v1033_v59, %v1029_v53  ;;  %v1043_v7 = vadd.f32 %v1042_v63, %v510_v60  ;;  %v452_v11 = vld [vmem:[#allocation3 + $0xd10] sm:$0xff]  ;;  %v4991_v63 = vpop.xlane.xlu1 %1194 }
  0xb4   :  { %v639_v5 = vld [vmem:[#allocation3 + $0x12e8] sm:$0xff]  ;;  %v1047_v8 = vadd.f32 %v1046_v0, %v511_v61  ;;  %v1053_v12 = vadd.f32 %v1052_v1, %v640_v50  ;;  %v1057_v13 = vadd.f32 %v1056_v2, %v641_v51  ;;  %v453_v14 = vld [vmem:[#allocation3 + $0xd18] sm:$0xff]  ;;  %v516_v15 = vld [vmem:[#allocation3 + $0xf10] sm:$0xff]  ;;  %v1066_v17 = vadd.f32 %v452_v11, %v388_v9 }
  0xb5   :  { %v517_v16 = vld [vmem:[#allocation3 + $0xf18] sm:$0xff]  ;;  %1320 = vadd.xlane.f32.xlu0 %v1319_v6  ;;  %v1044_v18 = vadd.f32 %v1043_v7, %v574_v62  ;;  %v580_v20 = vld [vmem:[#allocation3 + $0x1110] sm:$0xff]  ;;  %v1070_v23 = vadd.f32 %v453_v14, %v389_v10  ;;  %v386_v27 = vld [vmem:[#allocation3 + $0xb00] sm:$0xff] }
  0xb6   :  { %v1048_v19 = vadd.f32 %v1047_v8, %v575_v3  ;;  %v581_v21 = vld [vmem:[#allocation3 + $0x1118] sm:$0xff]  ;;  %v644_v22 = vld [vmem:[#allocation3 + $0x1310] sm:$0xff]  ;;  %v1328_v24 = vadd.f32 %v1057_v13, %v1053_v12  ;;  %v1067_v26 = vadd.f32 %v1066_v17, %v516_v15  ;;  %v387_v28 = vld [vmem:[#allocation3 + $0xb08] sm:$0xff] }
  0xb7   :  { %v645_v25 = vld [vmem:[#allocation3 + $0x1318] sm:$0xff]  ;;  %v1045_v29 = vadd.f32 %v1044_v18, %v638_v4  ;;  %v1071_v31 = vadd.f32 %v1070_v23, %v517_v16  ;;  %v450_v32 = vld [vmem:[#allocation3 + $0xd00] sm:$0xff]  ;;  %v451_v33 = vld [vmem:[#allocation3 + $0xd08] sm:$0xff]  ;;  %v4993_v18 = vpop.xlane.xlu0 %1188 }
  0xb8   :  { %v1049_v30 = vadd.f32 %v1048_v19, %v639_v5  ;;  %v514_v34 = vld [vmem:[#allocation3 + $0xf00] sm:$0xff]  ;;  %1329 = vadd.xlane.f32.xlu1 %v1328_v24  ;;  %v1068_v35 = vadd.f32 %v1067_v26, %v580_v20  ;;  %v515_v36 = vld [vmem:[#allocation3 + $0xf08] sm:$0xff]  ;;  %v1058_v39 = vadd.f32 %v450_v32, %v386_v27  ;;  %v1062_v40 = vadd.f32 %v451_v33, %v387_v28  ;;  %v392_v45 = vld [vmem:[#allocation3 + $0xb30] sm:$0xff] }
  0xb9   :  { %v578_v37 = vld [vmem:[#allocation3 + $0x1100] sm:$0xff]  ;;  %v579_v38 = vld [vmem:[#allocation3 + $0x1108] sm:$0xff]  ;;  %v1072_v42 = vadd.f32 %v1071_v31, %v581_v21  ;;  %v393_v49 = vld [vmem:[#allocation3 + $0xb38] sm:$0xff] }
  0xba   :  { %v1325_v41 = vadd.f32 %v1049_v30, %v1045_v29  ;;  %v642_v43 = vld [vmem:[#allocation3 + $0x1300] sm:$0xff]  ;;  %v643_v44 = vld [vmem:[#allocation3 + $0x1308] sm:$0xff]  ;;  %v1069_v46 = vadd.f32 %v1068_v35, %v644_v22  ;;  %v1059_v47 = vadd.f32 %v1058_v39, %v514_v34  ;;  %v1063_v48 = vadd.f32 %v1062_v40, %v515_v36  ;;  %v456_v50 = vld [vmem:[#allocation3 + $0xd30] sm:$0xff]  ;;  %v4995_v36 = vpop.xlane.xlu1 %1197 }
  0xbb   :  { %v457_v51 = vld [vmem:[#allocation3 + $0xd38] sm:$0xff]  ;;  %v1073_v52 = vadd.f32 %v1072_v42, %v645_v25  ;;  %v520_v53 = vld [vmem:[#allocation3 + $0xf30] sm:$0xff]  ;;  %v1082_v56 = vadd.f32 %v456_v50, %v392_v45  ;;  %v390_v3 = vld [vmem:[#allocation3 + $0xb20] sm:$0xff] }
  0xbc   :  { %1326 = vadd.xlane.f32.xlu0 %v1325_v41  ;;  %v521_v54 = vld [vmem:[#allocation3 + $0xf38] sm:$0xff]  ;;  %v584_v55 = vld [vmem:[#allocation3 + $0x1130] sm:$0xff]  ;;  %v1086_v57 = vadd.f32 %v457_v51, %v393_v49  ;;  %v1060_v58 = vadd.f32 %v1059_v47, %v578_v37  ;;  %v1064_v59 = vadd.f32 %v1063_v48, %v579_v38  ;;  %v391_v4 = vld [vmem:[#allocation3 + $0xb28] sm:$0xff] }
  0xbd   :  { %v585_v60 = vld [vmem:[#allocation3 + $0x1138] sm:$0xff]  ;;  %v648_v61 = vld [vmem:[#allocation3 + $0x1330] sm:$0xff]  ;;  %v1334_v0 = vadd.f32 %v1073_v52, %v1069_v46  ;;  %v1083_v1 = vadd.f32 %v1082_v56, %v520_v53  ;;  %v454_v5 = vld [vmem:[#allocation3 + $0xd20] sm:$0xff] }
  0xbe   :  { %v649_v62 = vld [vmem:[#allocation3 + $0x1338] sm:$0xff]  ;;  %v1087_v2 = vadd.f32 %v1086_v57, %v521_v54  ;;  %v1061_v6 = vadd.f32 %v1060_v58, %v642_v43  ;;  %v1065_v7 = vadd.f32 %v1064_v59, %v643_v44  ;;  %v455_v8 = vld [vmem:[#allocation3 + $0xd28] sm:$0xff]  ;;  %v518_v9 = vld [vmem:[#allocation3 + $0xf20] sm:$0xff]  ;;  %v1074_v11 = vadd.f32 %v454_v5, %v390_v3  ;;  %v4997_v54 = vpop.xlane.xlu0 %1191 }
  0xbf   :  { %v519_v10 = vld [vmem:[#allocation3 + $0xf28] sm:$0xff]  ;;  %1335 = vadd.xlane.f32.xlu1 %v1334_v0  ;;  %v1084_v12 = vadd.f32 %v1083_v1, %v584_v55  ;;  %v582_v14 = vld [vmem:[#allocation3 + $0x1120] sm:$0xff]  ;;  %v1078_v17 = vadd.f32 %v455_v8, %v391_v4  ;;  %v396_v22 = vld [vmem:[#allocation3 + $0xb50] sm:$0xff] }
  0xc0   :  { %v1088_v13 = vadd.f32 %v1087_v2, %v585_v60  ;;  %v583_v15 = vld [vmem:[#allocation3 + $0x1128] sm:$0xff]  ;;  %v646_v16 = vld [vmem:[#allocation3 + $0x1320] sm:$0xff]  ;;  %v1331_v19 = vadd.f32 %v1065_v7, %v1061_v6  ;;  %v1075_v21 = vadd.f32 %v1074_v11, %v518_v9  ;;  %v397_v23 = vld [vmem:[#allocation3 + $0xb58] sm:$0xff]  ;;  %v4999_v9 = vpop.xlane.xlu1 %1203 }
  0xc1   :  { %v647_v20 = vld [vmem:[#allocation3 + $0x1328] sm:$0xff]  ;;  %v1085_v24 = vadd.f32 %v1084_v12, %v648_v61  ;;  %v1079_v26 = vadd.f32 %v1078_v17, %v519_v10  ;;  %v460_v27 = vld [vmem:[#allocation3 + $0xd50] sm:$0xff]  ;;  %v461_v28 = vld [vmem:[#allocation3 + $0xd58] sm:$0xff] }
  0xc2   :  { %v1089_v25 = vadd.f32 %v1088_v13, %v649_v62  ;;  %v524_v29 = vld [vmem:[#allocation3 + $0xf50] sm:$0xff]  ;;  %1332 = vadd.xlane.f32.xlu0 %v1331_v19  ;;  %v1076_v30 = vadd.f32 %v1075_v21, %v582_v14  ;;  %v525_v31 = vld [vmem:[#allocation3 + $0xf58] sm:$0xff]  ;;  %v1098_v34 = vadd.f32 %v460_v27, %v396_v22  ;;  %v1102_v35 = vadd.f32 %v461_v28, %v397_v23  ;;  %v394_v41 = vld [vmem:[#allocation3 + $0xb40] sm:$0xff]  ;;  %v5001_v28 = vpop.xlane.xlu0 %1200 }
  0xc3   :  { %v588_v32 = vld [vmem:[#allocation3 + $0x1150] sm:$0xff]  ;;  %v589_v33 = vld [vmem:[#allocation3 + $0x1158] sm:$0xff]  ;;  %v1080_v38 = vadd.f32 %v1079_v26, %v583_v15  ;;  %v395_v45 = vld [vmem:[#allocation3 + $0xb48] sm:$0xff] }
  0xc4   :  { %v1340_v37 = vadd.f32 %v1089_v25, %v1085_v24  ;;  %v652_v39 = vld [vmem:[#allocation3 + $0x1350] sm:$0xff]  ;;  %v653_v40 = vld [vmem:[#allocation3 + $0x1358] sm:$0xff]  ;;  %v1077_v42 = vadd.f32 %v1076_v30, %v646_v16  ;;  %v1099_v43 = vadd.f32 %v1098_v34, %v524_v29  ;;  %v1103_v44 = vadd.f32 %v1102_v35, %v525_v31  ;;  %v458_v46 = vld [vmem:[#allocation3 + $0xd40] sm:$0xff] }
  0xc5   :  { %v459_v47 = vld [vmem:[#allocation3 + $0xd48] sm:$0xff]  ;;  %v1081_v48 = vadd.f32 %v1080_v38, %v647_v20  ;;  %v522_v49 = vld [vmem:[#allocation3 + $0xf40] sm:$0xff]  ;;  %v1090_v52 = vadd.f32 %v458_v46, %v394_v41  ;;  %v400_v0 = vld [vmem:[#allocation3 + $0xb70] sm:$0xff] }
  0xc6   :  { %1341 = vadd.xlane.f32.xlu1 %v1340_v37  ;;  %v523_v50 = vld [vmem:[#allocation3 + $0xf48] sm:$0xff]  ;;  %v586_v51 = vld [vmem:[#allocation3 + $0x1140] sm:$0xff]  ;;  %v1094_v53 = vadd.f32 %v459_v47, %v395_v45  ;;  %v1100_v55 = vadd.f32 %v1099_v43, %v588_v32  ;;  %v1104_v56 = vadd.f32 %v1103_v44, %v589_v33  ;;  %v401_v1 = vld [vmem:[#allocation3 + $0xb78] sm:$0xff]  ;;  %v5003_v47 = vpop.xlane.xlu1 %1209 }
  0xc7   :  { %v587_v57 = vld [vmem:[#allocation3 + $0x1148] sm:$0xff]  ;;  %v650_v58 = vld [vmem:[#allocation3 + $0x1340] sm:$0xff]  ;;  %v1337_v60 = vadd.f32 %v1081_v48, %v1077_v42  ;;  %v1091_v61 = vadd.f32 %v1090_v52, %v522_v49  ;;  %v464_v2 = vld [vmem:[#allocation3 + $0xd70] sm:$0xff] }
  0xc8   :  { %v651_v59 = vld [vmem:[#allocation3 + $0x1348] sm:$0xff]  ;;  %v1095_v62 = vadd.f32 %v1094_v53, %v523_v50  ;;  %v1101_v3 = vadd.f32 %v1100_v55, %v652_v39  ;;  %v1105_v4 = vadd.f32 %v1104_v56, %v653_v40  ;;  %v465_v5 = vld [vmem:[#allocation3 + $0xd78] sm:$0xff]  ;;  %v528_v6 = vld [vmem:[#allocation3 + $0xf70] sm:$0xff]  ;;  %v1114_v8 = vadd.f32 %v464_v2, %v400_v0 }
  0xc9   :  { %v529_v7 = vld [vmem:[#allocation3 + $0xf78] sm:$0xff]  ;;  %1338 = vadd.xlane.f32.xlu0 %v1337_v60  ;;  %v1092_v10 = vadd.f32 %v1091_v61, %v586_v51  ;;  %v592_v12 = vld [vmem:[#allocation3 + $0x1170] sm:$0xff]  ;;  %v1118_v15 = vadd.f32 %v465_v5, %v401_v1  ;;  %v398_v20 = vld [vmem:[#allocation3 + $0xb60] sm:$0xff] }
  0xca   :  { %v1096_v11 = vadd.f32 %v1095_v62, %v587_v57  ;;  %v593_v13 = vld [vmem:[#allocation3 + $0x1178] sm:$0xff]  ;;  %v656_v14 = vld [vmem:[#allocation3 + $0x1370] sm:$0xff]  ;;  %v1346_v16 = vadd.f32 %v1105_v4, %v1101_v3  ;;  %v1115_v19 = vadd.f32 %v1114_v8, %v528_v6  ;;  %v399_v21 = vld [vmem:[#allocation3 + $0xb68] sm:$0xff]  ;;  %v5005_v3 = vpop.xlane.xlu0 %1206 }
  0xcb   :  { %v657_v17 = vld [vmem:[#allocation3 + $0x1378] sm:$0xff]  ;;  %v1093_v22 = vadd.f32 %v1092_v10, %v650_v58  ;;  %v1119_v24 = vadd.f32 %v1118_v15, %v529_v7  ;;  %v462_v25 = vld [vmem:[#allocation3 + $0xd60] sm:$0xff]  ;;  %v463_v26 = vld [vmem:[#allocation3 + $0xd68] sm:$0xff] }
  0xcc   :  { %v1097_v23 = vadd.f32 %v1096_v11, %v651_v59  ;;  %v526_v27 = vld [vmem:[#allocation3 + $0xf60] sm:$0xff]  ;;  %1347 = vadd.xlane.f32.xlu1 %v1346_v16  ;;  %v1116_v29 = vadd.f32 %v1115_v19, %v592_v12  ;;  %v527_v30 = vld [vmem:[#allocation3 + $0xf68] sm:$0xff]  ;;  %v1106_v33 = vadd.f32 %v462_v25, %v398_v20  ;;  %v1110_v34 = vadd.f32 %v463_v26, %v399_v21  ;;  %v404_v0 = vld [vmem:[#allocation3 + $0xb90] sm:$0xff] }
  0xcd   :  { %v590_v31 = vld [vmem:[#allocation3 + $0x1160] sm:$0xff]  ;;  %v591_v32 = vld [vmem:[#allocation3 + $0x1168] sm:$0xff]  ;;  %v1120_v37 = vadd.f32 %v1119_v24, %v593_v13  ;;  %v405_v1 = vld [vmem:[#allocation3 + $0xb98] sm:$0xff] }
  0xce   :  { %v1343_v35 = vadd.f32 %v1097_v23, %v1093_v22  ;;  %v654_v38 = vld [vmem:[#allocation3 + $0x1360] sm:$0xff]  ;;  %v655_v39 = vld [vmem:[#allocation3 + $0x1368] sm:$0xff]  ;;  %v1117_v41 = vadd.f32 %v1116_v29, %v656_v14  ;;  %v1107_v42 = vadd.f32 %v1106_v33, %v526_v27  ;;  %v1111_v43 = vadd.f32 %v1110_v34, %v527_v30  ;;  %v468_v2 = vld [vmem:[#allocation3 + $0xd90] sm:$0xff]  ;;  %v5007_v23 = vpop.xlane.xlu1 %1215 }
  0xcf   :  { %v402_v40 = vld [vmem:[#allocation3 + $0xb80] sm:$0xff]  ;;  %v403_v44 = vld [vmem:[#allocation3 + $0xb88] sm:$0xff]  ;;  %v1121_v48 = vadd.f32 %v1120_v37, %v657_v17  ;;  %v469_v6 = vld [vmem:[#allocation3 + $0xd98] sm:$0xff]  ;;  %v1130_v10 = vadd.f32 %v468_v2, %v404_v0  ;;  %v6067_v2 = vlaneseq }
  0xd0   :  { %v466_v45 = vld [vmem:[#allocation3 + $0xd80] sm:$0xff]  ;;  %v467_v46 = vld [vmem:[#allocation3 + $0xd88] sm:$0xff]  ;;  %1344 = vadd.xlane.f32.xlu0 %v1343_v35  ;;  %v1108_v55 = vadd.f32 %v1107_v42, %v590_v31  ;;  %v1112_v56 = vadd.f32 %v1111_v43, %v591_v32  ;;  %v532_v7 = vld [vmem:[#allocation3 + $0xf90] sm:$0xff]  ;;  %v1134_v16 = vadd.f32 %v469_v6, %v405_v1  ;;  %v5009_v43 = vpop.xlane.xlu0 %1212 }
  0xd1   :  { %v530_v49 = vld [vmem:[#allocation3 + $0xf80] sm:$0xff]  ;;  %v531_v50 = vld [vmem:[#allocation3 + $0xf88] sm:$0xff]  ;;  %v1122_v52 = vadd.f32 %v466_v45, %v402_v40  ;;  %v1126_v53 = vadd.f32 %v467_v46, %v403_v44  ;;  %v1352_v60 = vadd.f32 %v1121_v48, %v1117_v41  ;;  %v533_v8 = vld [vmem:[#allocation3 + $0xf98] sm:$0xff]  ;;  %v1131_v20 = vadd.f32 %v1130_v10, %v532_v7 }
  0xd2   :  { %v594_v51 = vld [vmem:[#allocation3 + $0x1180] sm:$0xff]  ;;  %v595_v57 = vld [vmem:[#allocation3 + $0x1188] sm:$0xff]  ;;  %v1109_v4 = vadd.f32 %v1108_v55, %v654_v38  ;;  %v1113_v5 = vadd.f32 %v1112_v56, %v655_v39  ;;  %v596_v13 = vld [vmem:[#allocation3 + $0x1190] sm:$0xff]  ;;  %v1135_v26 = vadd.f32 %v1134_v16, %v533_v8 }
  0xd3   :  { %v658_v58 = vld [vmem:[#allocation3 + $0x1380] sm:$0xff]  ;;  %v659_v59 = vld [vmem:[#allocation3 + $0x1388] sm:$0xff]  ;;  %v1123_v61 = vadd.f32 %v1122_v52, %v530_v49  ;;  %v1127_v62 = vadd.f32 %v1126_v53, %v531_v50  ;;  %1353 = vadd.xlane.f32.xlu1 %v1352_v60  ;;  %v597_v14 = vld [vmem:[#allocation3 + $0x1198] sm:$0xff]  ;;  %v1132_v31 = vadd.f32 %v1131_v20, %v596_v13 }
  0xd4   :  { %v660_v15 = vld [vmem:[#allocation3 + $0x1390] sm:$0xff]  ;;  %v1349_v17 = vadd.f32 %v1113_v5, %v1109_v4  ;;  %v661_v19 = vld [vmem:[#allocation3 + $0x1398] sm:$0xff]  ;;  %v406_v21 = vld [vmem:[#allocation3 + $0xba0] sm:$0xff]  ;;  %v1136_v39 = vadd.f32 %v1135_v26, %v597_v14  ;;  %v5013_v4 = vpop.xlane.xlu1 %1221 }
  0xd5   :  { %v1124_v11 = vadd.f32 %v1123_v61, %v594_v51  ;;  %v1128_v12 = vadd.f32 %v1127_v62, %v595_v57  ;;  %v407_v22 = vld [vmem:[#allocation3 + $0xba8] sm:$0xff]  ;;  %v470_v27 = vld [vmem:[#allocation3 + $0xda0] sm:$0xff]  ;;  %v408_v42 = vld [vmem:[#allocation3 + $0xbb0] sm:$0xff]  ;;  %v1133_v44 = vadd.f32 %v1132_v31, %v660_v15  ;;  %v4962_v51 = vmov 269488144   ;;  %v5019_v31 = vpop.xlane.xlu0 %1218 }
  0xd6   :  { %v471_v29 = vld [vmem:[#allocation3 + $0xda8] sm:$0xff]  ;;  %v534_v30 = vld [vmem:[#allocation3 + $0xfa0] sm:$0xff]  ;;  %1350 = vadd.xlane.f32.xlu0 %v1349_v17  ;;  %v1138_v35 = vadd.f32 %v470_v27, %v406_v21  ;;  %v409_v48 = vld [vmem:[#allocation3 + $0xbb8] sm:$0xff]  ;;  %v5011_v52 = vunpack.c.l.s4 %v4962_v51  ;;  %v1137_v53 = vadd.f32 %v1136_v39, %v661_v19  ;;  %v4963_v19 = vmov 842150450  }
  0xd7   :  { %v1125_v24 = vadd.f32 %v1124_v11, %v658_v58  ;;  %v1129_v25 = vadd.f32 %v1128_v12, %v659_v59  ;;  %v535_v32 = vld [vmem:[#allocation3 + $0xfa8] sm:$0xff]  ;;  %v598_v33 = vld [vmem:[#allocation3 + $0x11a0] sm:$0xff]  ;;  %v1142_v37 = vadd.f32 %v471_v29, %v407_v22  ;;  %v472_v49 = vld [vmem:[#allocation3 + $0xdb0] sm:$0xff]  ;;  %v5015_v20 = vunpack.c.l.s4 %v4963_v19 }
  0xd8   :  { %v599_v34 = vld [vmem:[#allocation3 + $0x11a8] sm:$0xff]  ;;  %v662_v40 = vld [vmem:[#allocation3 + $0x13a0] sm:$0xff]  ;;  %v1139_v45 = vadd.f32 %v1138_v35, %v534_v30  ;;  %v473_v50 = vld [vmem:[#allocation3 + $0xdb8] sm:$0xff]  ;;  %v1146_v58 = vadd.f32 %v472_v49, %v408_v42  ;;  %v1358_v5 = vadd.f32 %v1137_v53, %v1133_v44  ;;  %v4964_v29 = vmov 1414812756  }
  0xd9   :  { %v1355_v38 = vadd.f32 %v1129_v25, %v1125_v24  ;;  %v663_v41 = vld [vmem:[#allocation3 + $0x13a8] sm:$0xff]  ;;  %v1143_v46 = vadd.f32 %v1142_v37, %v535_v32  ;;  %v536_v55 = vld [vmem:[#allocation3 + $0xfb0] sm:$0xff]  ;;  %v537_v56 = vld [vmem:[#allocation3 + $0xfb8] sm:$0xff]  ;;  %v1150_v59 = vadd.f32 %v473_v50, %v409_v48  ;;  %v5017_v30 = vunpack.c.l.s4 %v4964_v29 }
  0xda   :  { %v600_v57 = vld [vmem:[#allocation3 + $0x11b0] sm:$0xff]  ;;  %v1140_v60 = vadd.f32 %v1139_v45, %v598_v33  ;;  %v601_v62 = vld [vmem:[#allocation3 + $0x11b8] sm:$0xff]  ;;  %v1147_v6 = vadd.f32 %v1146_v58, %v536_v55  ;;  %v410_v8 = vld [vmem:[#allocation3 + $0xbc0] sm:$0xff]  ;;  %1359 = vadd.xlane.f32.xlu1 %v1358_v5  ;;  %v4965_v39 = vmov 1987475062   ;;  %v5023_v49 = vshrl.u32 %v6067_v2, 7  ;;  %v5026_v58 = vpop.xlane.xlu1 %1227 }
  0xdb   :  { %1356 = vadd.xlane.f32.xlu0 %v1355_v38  ;;  %v1144_v61 = vadd.f32 %v1143_v46, %v599_v34  ;;  %v664_v0 = vld [vmem:[#allocation3 + $0x13b0] sm:$0xff]  ;;  %v665_v1 = vld [vmem:[#allocation3 + $0x13b8] sm:$0xff]  ;;  %v1151_v7 = vadd.f32 %v1150_v59, %v537_v56  ;;  %v411_v10 = vld [vmem:[#allocation3 + $0xbc8] sm:$0xff]  ;;  %v1445_v38 = vunpack.c.0.s8 %v5011_v52  ;;  %v1452_v52 = vunpack.c.0.s8 %v5015_v20 }
  0xdc   :  { %v474_v11 = vld [vmem:[#allocation3 + $0xdc0] sm:$0xff]  ;;  %v1141_v12 = vadd.f32 %v1140_v60, %v662_v40  ;;  %v475_v14 = vld [vmem:[#allocation3 + $0xdc8] sm:$0xff]  ;;  %v1148_v21 = vadd.f32 %v1147_v6, %v600_v57  ;;  %v1465_v40 = vunpack.c.l.s4 %v4965_v39  ;;  %v417_v39 = vld [vmem:[#allocation3 + $0xbf8] sm:$0xff] }
  0xdd   :  { %v1145_v13 = vadd.f32 %v1144_v61, %v663_v41  ;;  %v538_v15 = vld [vmem:[#allocation3 + $0xfc0] sm:$0xff]  ;;  %v539_v16 = vld [vmem:[#allocation3 + $0xfc8] sm:$0xff]  ;;  %v1154_v17 = vadd.f32 %v474_v11, %v410_v8  ;;  %v1152_v22 = vadd.f32 %v1151_v7, %v601_v62  ;;  %v1158_v27 = vadd.f32 %v475_v14, %v411_v10  ;;  %v413_v8 = vld [vmem:[#allocation3 + $0xbd8] sm:$0xff] }
  0xde   :  { %v602_v24 = vld [vmem:[#allocation3 + $0x11c0] sm:$0xff]  ;;  %v603_v25 = vld [vmem:[#allocation3 + $0x11c8] sm:$0xff]  ;;  %v1149_v41 = vadd.f32 %v1148_v21, %v664_v0  ;;  %v412_v0 = vld [vmem:[#allocation3 + $0xbd0] sm:$0xff]  ;;  %v5030_v20 = vsub.s32 %v1445_v38, %v5023_v49  ;;  %v5032_v21 = vpop.xlane.xlu0 %1224  ;;  %v5035_v29 = vsub.s32 %v1452_v52, %v5023_v49 }
  0xdf   :  { %v666_v26 = vld [vmem:[#allocation3 + $0x13c0] sm:$0xff]  ;;  %v1361_v32 = vadd.f32 %v1145_v13, %v1141_v12  ;;  %v667_v33 = vld [vmem:[#allocation3 + $0x13c8] sm:$0xff]  ;;  %v1155_v34 = vadd.f32 %v1154_v17, %v538_v15  ;;  %v1153_v42 = vadd.f32 %v1152_v22, %v665_v1  ;;  %v1159_v44 = vadd.f32 %v1158_v27, %v539_v16  ;;  %v476_v10 = vld [vmem:[#allocation3 + $0xdd0] sm:$0xff] }
  0xe0   :  { %v414_v35 = vld [vmem:[#allocation3 + $0xbe0] sm:$0xff]  ;;  %v415_v37 = vld [vmem:[#allocation3 + $0xbe8] sm:$0xff]  ;;  %v1459_v1 = vunpack.c.0.s8 %v5017_v30  ;;  %v477_v11 = vld [vmem:[#allocation3 + $0xdd8] sm:$0xff]  ;;  %v1466_v12 = vunpack.c.0.s8 %v1465_v40  ;;  %v1162_v17 = vadd.f32 %v476_v10, %v412_v0  ;;  %v4966_v30 = vmov 1983009808  }
  0xe1   :  { %v478_v45 = vld [vmem:[#allocation3 + $0xde0] sm:$0xff]  ;;  %v479_v46 = vld [vmem:[#allocation3 + $0xde8] sm:$0xff]  ;;  %1362 = vadd.xlane.f32.xlu0 %v1361_v32  ;;  %v1156_v50 = vadd.f32 %v1155_v34, %v602_v24  ;;  %v1364_v59 = vadd.f32 %v1153_v42, %v1149_v41  ;;  %v1160_v60 = vadd.f32 %v1159_v44, %v603_v25  ;;  %v540_v14 = vld [vmem:[#allocation3 + $0xfd0] sm:$0xff]  ;;  %v1166_v19 = vadd.f32 %v477_v11, %v413_v8 }
  0xe2   :  { %v542_v48 = vld [vmem:[#allocation3 + $0xfe0] sm:$0xff]  ;;  %v543_v51 = vld [vmem:[#allocation3 + $0xfe8] sm:$0xff]  ;;  %v1170_v56 = vadd.f32 %v478_v45, %v414_v35  ;;  %v1174_v57 = vadd.f32 %v479_v46, %v415_v37  ;;  %v541_v15 = vld [vmem:[#allocation3 + $0xfd8] sm:$0xff]  ;;  %v3238_v32 = vunpack.c.l.s4 %v4966_v30  ;;  %v1163_v34 = vadd.f32 %v1162_v17, %v540_v14 }
  0xe3   :  { %v606_v53 = vld [vmem:[#allocation3 + $0x11e0] sm:$0xff]  ;;  %v607_v55 = vld [vmem:[#allocation3 + $0x11e8] sm:$0xff]  ;;  %v1157_v5 = vadd.f32 %v1156_v50, %v666_v26  ;;  %1365 = vadd.xlane.f32.xlu1 %v1364_v59  ;;  %v1161_v13 = vadd.f32 %v1160_v60, %v667_v33  ;;  %v604_v16 = vld [vmem:[#allocation3 + $0x11d0] sm:$0xff]  ;;  %v1167_v35 = vadd.f32 %v1166_v19, %v541_v15  ;;  %v5038_v38 = vsub.s32 %v1459_v1, %v5023_v49 }
  0xe4   :  { %v670_v61 = vld [vmem:[#allocation3 + $0x13e0] sm:$0xff]  ;;  %v671_v62 = vld [vmem:[#allocation3 + $0x13e8] sm:$0xff]  ;;  %v1171_v6 = vadd.f32 %v1170_v56, %v542_v48  ;;  %v1175_v7 = vadd.f32 %v1174_v57, %v543_v51  ;;  %v605_v25 = vld [vmem:[#allocation3 + $0x11d8] sm:$0xff]  ;;  %v5041_v50 = vsub.s32 %v1466_v12, %v5023_v49  ;;  %v5043_v51 = vpop.xlane.xlu1 %1233  ;;  %v3239_v0 = vunpack.c.0.s8 %v3238_v32 }
  0xe5   :  { %v668_v26 = vld [vmem:[#allocation3 + $0x13d0] sm:$0xff]  ;;  %v669_v27 = vld [vmem:[#allocation3 + $0x13d8] sm:$0xff]  ;;  %v1367_v33 = vadd.f32 %v1161_v13, %v1157_v5  ;;  %v1456_v11 = vrot.slane %v4993_v18, %v5035_v29  ;;  %v1463_v12 = vrot.slane %v4993_v18, %v5038_v38  ;;  %v1484_v17 = vrot.slane %v4997_v54, %v5035_v29 }
  0xe6   :  { %v1172_v22 = vadd.f32 %v1171_v6, %v606_v53  ;;  %v1176_v24 = vadd.f32 %v1175_v7, %v607_v55  ;;  %v416_v37 = vld [vmem:[#allocation3 + $0xbf0] sm:$0xff]  ;;  %v481_v44 = vld [vmem:[#allocation3 + $0xdf8] sm:$0xff]  ;;  %v1164_v53 = vadd.f32 %v1163_v34, %v604_v16  ;;  %v1168_v55 = vadd.f32 %v1167_v35, %v605_v25  ;;  %v5047_v7 = vpop.xlane.xlu0 %1230 }
  0xe7   :  { %v480_v40 = vld [vmem:[#allocation3 + $0xdf0] sm:$0xff]  ;;  %v545_v46 = vld [vmem:[#allocation3 + $0xff8] sm:$0xff]  ;;  %1368 = vadd.xlane.f32.xlu0 %v1367_v33  ;;  %v1182_v57 = vadd.f32 %v481_v44, %v417_v39  ;;  %v1449_v6 = vrot.slane %v4993_v18, %v5030_v20  ;;  %v1470_v13 = vrot.slane %v4993_v18, %v5041_v50  ;;  %v1477_v16 = vrot.slane %v4997_v54, %v5030_v20 }
  0xe8   :  { %v1173_v41 = vadd.f32 %v1172_v22, %v670_v61  ;;  %v1177_v42 = vadd.f32 %v1176_v24, %v671_v62  ;;  %v544_v45 = vld [vmem:[#allocation3 + $0xff0] sm:$0xff]  ;;  %v1178_v48 = vadd.f32 %v480_v40, %v416_v37  ;;  %v609_v59 = vld [vmem:[#allocation3 + $0x11f8] sm:$0xff]  ;;  %v1165_v61 = vadd.f32 %v1164_v53, %v668_v26  ;;  %v5063_v25 = vpop.xlane.xlu1 %1239 }
  0xe9   :  { %v608_v56 = vld [vmem:[#allocation3 + $0x11f0] sm:$0xff]  ;;  %v1169_v62 = vadd.f32 %v1168_v55, %v669_v27  ;;  %v1183_v5 = vadd.f32 %v1182_v57, %v545_v46  ;;  %v673_v8 = vld [vmem:[#allocation3 + $0x13f8] sm:$0xff]  ;;  %v1491_v22 = vrot.slane %v4997_v54, %v5038_v38  ;;  %v1498_v24 = vrot.slane %v4997_v54, %v5041_v50 }
  0xea   :  { %v1373_v52 = vadd.f32 %v1177_v42, %v1173_v41  ;;  %v1179_v60 = vadd.f32 %v1178_v48, %v544_v45  ;;  %v672_v1 = vld [vmem:[#allocation3 + $0x13f0] sm:$0xff]  ;;  %v1505_v26 = vrot.slane %v4991_v63, %v5030_v20  ;;  %v5068_v27 = vsub.s32 %v3239_v0, %v5023_v49  ;;  %v5078_v40 = vpop.xlane.xlu0 %1236 }
  0xeb   :  { %v1370_v14 = vadd.f32 %v1169_v62, %v1165_v61  ;;  %v1184_v15 = vadd.f32 %v1183_v5, %v609_v59  ;;  %v1512_v30 = vrot.slane %v4991_v63, %v5035_v29  ;;  %v1519_v32 = vrot.slane %v4991_v63, %v5038_v38 }
  0xec   :  { %v1180_v10 = vadd.f32 %v1179_v60, %v608_v56  ;;  %1374 = vadd.xlane.f32.xlu0 %v1373_v52  ;;  %v3235_v33 = vcombine.low %v1449_v6, %v1456_v11  ;;  %v3236_v34 = vcombine.low %v1463_v12, %v1470_v13  ;;  %v1526_v54 = vrot.slane %v4991_v63, %v5041_v50  ;;  %v5100_v52 = vpop.xlane.xlu1 %1245 }
  0xed   :  { %1371 = vadd.xlane.f32.xlu1 %v1370_v14  ;;  %v1185_v18 = vadd.f32 %v1184_v15, %v673_v8  ;;  %v1533_v37 = vrot.slane %v4995_v36, %v5030_v20  ;;  %v3252_v39 = vcombine.low %v1477_v16, %v1484_v17  ;;  %v1540_v41 = vrot.slane %v4995_v36, %v5035_v29 }
  0xee   :  { %v1181_v19 = vadd.f32 %v1180_v10, %v672_v1  ;;  %v1547_v42 = vrot.slane %v4995_v36, %v5038_v38  ;;  %v1554_v44 = vrot.slane %v4995_v36, %v5041_v50  ;;  %v3253_v45 = vcombine.low %v1491_v22, %v1498_v24  ;;  %v5120_v13 = vpop.xlane.xlu0 %1242 }
  0xef   :  { %v1589_v63 = vrot.slane %v4999_v9, %v5030_v20  ;;  %v1596_v46 = vrot.slane %v4999_v9, %v5035_v29  ;;  %v1603_v48 = vrot.slane %v4999_v9, %v5038_v38  ;;  %v1610_v53 = vrot.slane %v4999_v9, %v5041_v50 }
  0xf0   :  { %v1376_v35 = vadd.f32 %v1185_v18, %v1181_v19  ;;  %v1561_v55 = vrot.slane %v5001_v28, %v5030_v20  ;;  %v1568_v36 = vrot.slane %v5001_v28, %v5035_v29  ;;  %v3243_v56 = vrot.slane %v3235_v33, %v5068_v27 }
  0xf1   :  { %v3250_v57 = vrot.slane %v3236_v34, %v5068_v27  ;;  %v3260_v59 = vrot.slane %v3252_v39, %v5068_v27  ;;  %v1701_v60 = vrot.slane %v5007_v23, %v5030_v20  ;;  %v3269_v0 = vcombine.low %v1505_v26, %v1512_v30 }
  0xf2   :  { %1377 = vadd.xlane.f32.xlu1 %v1376_v35  ;;  %v3270_v61 = vcombine.low %v1519_v32, %v1526_v54  ;;  %v3267_v62 = vrot.slane %v3253_v45, %v5068_v27  ;;  %v1708_v1 = vrot.slane %v5007_v23, %v5035_v29  ;;  %v1715_v5 = vrot.slane %v5007_v23, %v5038_v38  ;;  %v5136_v32 = vpop.xlane.xlu1 %1251 }
  0xf3   :  { %v1722_v6 = vrot.slane %v5007_v23, %v5041_v50  ;;  %v1575_v8 = vrot.slane %v5001_v28, %v5038_v38  ;;  %v1582_v10 = vrot.slane %v5001_v28, %v5041_v50  ;;  %v1645_v11 = vrot.slane %v5003_v47, %v5030_v20 }
  0xf4   :  { %v1652_v12 = vrot.slane %v5003_v47, %v5035_v29  ;;  %v3251_v14 = vcombine.low %v3243_v56, %v3250_v57  ;;  %v1659_v15 = vrot.slane %v5003_v47, %v5038_v38  ;;  %v1666_v23 = vrot.slane %v5003_v47, %v5041_v50 }
  0xf5   :  { %v1617_v16 = vrot.slane %v5005_v3, %v5030_v20  ;;  %v1624_v28 = vrot.slane %v5005_v3, %v5035_v29  ;;  %v1631_v17 = vrot.slane %v5005_v3, %v5038_v38  ;;  %v3277_v19 = vrot.slane %v3269_v0, %v5068_v27 }
  0xf6   :  { %v3284_v22 = vrot.slane %v3270_v61, %v5068_v27  ;;  %v1638_v24 = vrot.slane %v5005_v3, %v5041_v50  ;;  %v3268_v18 = vcombine.low %v3260_v59, %v3267_v62  ;;  %v3388_v26 = vcombine.low %v1701_v60, %v1708_v1  ;;  %v5156_v62 = vpop.xlane.xlu0 %1248  ;;  %v5170_v59 = vpop.xlane.xlu1 %1257 }
  0xf7   :  { %v3389_v30 = vcombine.low %v1715_v5, %v1722_v6  ;;  %v1757_v33 = vrot.slane %v5013_v4, %v5030_v20  ;;  %v1764_v34 = vrot.slane %v5013_v4, %v5035_v29  ;;  %v1771_v35 = vrot.slane %v5013_v4, %v5038_v38 }
  0xf8   :  { %v1778_v54 = vrot.slane %v5013_v4, %v5041_v50  ;;  %v1673_v39 = vrot.slane %v5009_v43, %v5030_v20  ;;  %v1680_v45 = vrot.slane %v5009_v43, %v5035_v29  ;;  %v3286_v56 = vcombine.low %v1533_v37, %v1540_v41 }
  0xf9   :  { %v3287_v57 = vcombine.low %v1547_v42, %v1554_v44  ;;  %v3285_v0 = vcombine.low %v3277_v19, %v3284_v22  ;;  %v1813_v4 = vrot.slane %v5026_v58, %v5030_v20  ;;  %v1820_v1 = vrot.slane %v5026_v58, %v5035_v29 }
  0xfa   :  { %v3396_v37 = vrot.slane %v3388_v26, %v5068_v27  ;;  %v3403_v41 = vrot.slane %v3389_v30, %v5068_v27  ;;  %v1827_v42 = vrot.slane %v5026_v58, %v5038_v38  ;;  %v1834_v44 = vrot.slane %v5026_v58, %v5041_v50 }
  0xfb   :  { %v3422_v5 = vcombine.low %v1757_v33, %v1764_v34  ;;  %v3423_v6 = vcombine.low %v1771_v35, %v1778_v54  ;;  %v3294_v19 = vrot.slane %v3286_v56, %v5068_v27  ;;  %v3301_v22 = vrot.slane %v3287_v57, %v5068_v27  ;;  %v5188_v56 = vpop.xlane.xlu0 %1254 }
  0xfc   :  { %v3303_v2 = vcombine.low %v1561_v55, %v1568_v36  ;;  %v3304_v61 = vcombine.low %v1575_v8, %v1582_v10  ;;  %v1736_v26 = vrot.slane %v5019_v31, %v5035_v29  ;;  %v1750_v60 = vrot.slane %v5019_v31, %v5041_v50 }
  0xfd   :  { %v1869_v58 = vrot.slane %v5043_v51, %v5030_v20  ;;  %v3404_v33 = vcombine.low %v3396_v37, %v3403_v41  ;;  %v1876_v34 = vrot.slane %v5043_v51, %v5035_v29  ;;  %v1883_v55 = vrot.slane %v5043_v51, %v5038_v38 }
  0xfe   :  { %v1890_v36 = vrot.slane %v5043_v51, %v5041_v50  ;;  %v3430_v8 = vrot.slane %v3422_v5, %v5068_v27  ;;  %v3437_v10 = vrot.slane %v3423_v6, %v5068_v27  ;;  %v3456_v35 = vcombine.low %v1813_v4, %v1820_v1 }
  0xff   :  { %v3457_v54 = vcombine.low %v1827_v42, %v1834_v44  ;;  %v3302_v57 = vcombine.low %v3294_v19, %v3301_v22  ;;  %v1785_v37 = vrot.slane %v5032_v21, %v5030_v20  ;;  %v3311_v41 = vrot.slane %v3303_v2, %v5068_v27  ;;  %v5206_v44 = vpop.xlane.xlu1 %1263 }
 0x100   :  { %v3318_v30 = vrot.slane %v3304_v61, %v5068_v27  ;;  %v1792_v51 = vrot.slane %v5032_v21, %v5035_v29  ;;  %v1932_v1 = vrot.slane %v5063_v25, %v5035_v29  ;;  %v1939_v2 = vrot.slane %v5063_v25, %v5038_v38 }
 0x101   :  { %v3490_v42 = vcombine.low %v1869_v58, %v1876_v34  ;;  %v3491_v61 = vcombine.low %v1883_v55, %v1890_v36  ;;  %v3438_v5 = vcombine.low %v3430_v8, %v3437_v10  ;;  %v1946_v6 = vrot.slane %v5063_v25, %v5041_v50 }
 0x102   :  { %4324 = vperm.xlu0 %4908, %v3251_v14   ;;  %v3464_v19 = vrot.slane %v3456_v35, %v5068_v27  ;;  %v3471_v22 = vrot.slane %v3457_v54, %v5068_v27  ;;  %v3319_v14 = vcombine.low %v3311_v41, %v3318_v30  ;;  %v1841_v4 = vrot.slane %v5047_v7, %v5030_v20 }
 0x103   :  { %4327 = vperm.xlu1 %4909, %v3268_v18   ;;  %v1925_v18 = vrot.slane %v5063_v25, %v5030_v20  ;;  %v3320_v58 = vcombine.low %v1589_v63, %v1596_v46  ;;  %v3321_v25 = vcombine.low %v1603_v48, %v1610_v53  ;;  %v1855_v30 = vrot.slane %v5047_v7, %v5038_v38  ;;  %v5234_v63 = vpop.xlane.xlu0 %1260 }
 0x104   :  { %v1981_v34 = vrot.slane %v5100_v52, %v5030_v20  ;;  %v1988_v46 = vrot.slane %v5100_v52, %v5035_v29  ;;  %v1995_v9 = vrot.slane %v5100_v52, %v5038_v38  ;;  %v3498_v48 = vrot.slane %v3490_v42, %v5068_v27 }
 0x105   :  { %v3505_v53 = vrot.slane %v3491_v61, %v5068_v27  ;;  %v3472_v55 = vcombine.low %v3464_v19, %v3471_v22  ;;  %v2002_v36 = vrot.slane %v5100_v52, %v5041_v50  ;;  %v3524_v8 = vcombine.low %v1925_v18, %v1932_v1  ;;  %v5258_v18 = vpop.xlane.xlu1 %1269 }
 0x106   :  { %4351 = vperm.xlu0 %4908, %v3404_v33   ;;  %v1862_v33 = vrot.slane %v5047_v7, %v5041_v50  ;;  %v3525_v10 = vcombine.low %v1939_v2, %v1946_v6  ;;  %v3328_v35 = vrot.slane %v3320_v58, %v5068_v27  ;;  %v3335_v54 = vrot.slane %v3321_v25, %v5068_v27 }
 0x107   :  { %4330 = vperm.xlu1 %4909, %v3285_v0   ;;  %v1848_v0 = vrot.slane %v5047_v7, %v5035_v29  ;;  %v3337_v41 = vcombine.low %v1617_v16, %v1624_v28  ;;  %v3338_v52 = vcombine.low %v1631_v17, %v1638_v24  ;;  %v1904_v1 = vrot.slane %v5078_v40, %v5035_v29  ;;  %v5276_v19 = vpop.xlane.xlu0 %1266 }
 0x108   :  { %v1911_v2 = vrot.slane %v5078_v40, %v5038_v38  ;;  %v2037_v16 = vrot.slane %v5136_v32, %v5030_v20  ;;  %v3506_v28 = vcombine.low %v3498_v48, %v3505_v53  ;;  %v2044_v42 = vrot.slane %v5136_v32, %v5035_v29 }
 0x109   :  { %v2051_v3 = vrot.slane %v5136_v32, %v5038_v38  ;;  %v2058_v17 = vrot.slane %v5136_v32, %v5041_v50  ;;  %v3532_v24 = vrot.slane %v3524_v8, %v5068_v27  ;;  %v3539_v61 = vrot.slane %v3525_v10, %v5068_v27 }
 0x10a   :  { %4357 = vperm.xlu0 %4908, %v3438_v5   ;;  %v3558_v5 = vcombine.low %v1981_v34, %v1988_v46  ;;  %v3559_v6 = vcombine.low %v1995_v9, %v2002_v36  ;;  %v1918_v22 = vrot.slane %v5078_v40, %v5041_v50  ;;  %v3345_v58 = vrot.slane %v3337_v41, %v5068_v27 }
 0x10b   :  { %4333 = vperm.xlu1 %4909, %v3302_v57   ;;  %v1897_v57 = vrot.slane %v5078_v40, %v5030_v20  ;;  %v3352_v25 = vrot.slane %v3338_v52, %v5068_v27  ;;  %v3354_v32 = vcombine.low %v1645_v11, %v1652_v12  ;;  %v3336_v48 = vcombine.low %v3328_v35, %v3335_v54 }
 0x10c   :  { %v1953_v34 = vrot.slane %v5120_v13, %v5030_v20  ;;  %v2093_v46 = vrot.slane %v5170_v59, %v5030_v20  ;;  %v2100_v9 = vrot.slane %v5170_v59, %v5035_v29  ;;  %v2107_v11 = vrot.slane %v5170_v59, %v5038_v38 }
 0x10d   :  { %v3592_v12 = vcombine.low %v2037_v16, %v2044_v42  ;;  %v3593_v53 = vcombine.low %v2051_v3, %v2058_v17  ;;  %v3540_v36 = vcombine.low %v3532_v24, %v3539_v61  ;;  %v2114_v8 = vrot.slane %v5170_v59, %v5041_v50  ;;  %v5328_v3 = vpop.xlane.xlu0 %1272 }
 0x10e   :  { %4363 = vperm.xlu0 %4908, %v3472_v55   ;;  %v5302_v55 = vpop.xlane.xlu1 %1275  ;;  %v3566_v47 = vrot.slane %v3558_v5, %v5068_v27  ;;  %v1960_v10 = vrot.slane %v5120_v13, %v5035_v29  ;;  %v1967_v35 = vrot.slane %v5120_v13, %v5038_v38  ;;  %v3362_v54 = vrot.slane %v3354_v32, %v5068_v27 }
 0x10f   :  { %4336 = vperm.xlu1 %4909, %v3319_v14   ;;  %v3355_v14 = vcombine.low %v1659_v15, %v1666_v23  ;;  %v3573_v15 = vrot.slane %v3559_v6, %v5068_v27  ;;  %v3353_v23 = vcombine.low %v3345_v58, %v3352_v25  ;;  %v3371_v59 = vcombine.low %v1673_v39, %v1680_v45 }
 0x110   :  { %v6068_v52 = vrot.slane %v5009_v43, %v5041_v50  ;;  %v6069_v16 = vrot.slane %v5009_v43, %v5038_v38  ;;  %v2149_v42 = vrot.slane %v5206_v44, %v5030_v20  ;;  %v2156_v17 = vrot.slane %v5206_v44, %v5035_v29 }
 0x111   :  { %v3369_v41 = vrot.slane %v3355_v14, %v5068_v27  ;;  %v2163_v24 = vrot.slane %v5206_v44, %v5038_v38  ;;  %v3600_v39 = vrot.slane %v3592_v12, %v5068_v27  ;;  %v3607_v45 = vrot.slane %v3593_v53, %v5068_v27 }
 0x112   :  { %4369 = vperm.xlu0 %4908, %v3506_v28   ;;  %v3372_v28 = vcombine.low %v6069_v16, %v6068_v52  ;;  %v3574_v61 = vcombine.low %v3566_v47, %v3573_v15  ;;  %v2170_v43 = vrot.slane %v5206_v44, %v5041_v50  ;;  %v3626_v5 = vcombine.low %v2093_v46, %v2100_v9  ;;  %v5354_v46 = vpop.xlane.xlu1 %1281 }
 0x113   :  { %4339 = vperm.xlu1 %4909, %v3336_v48   ;;  %v3627_v6 = vcombine.low %v2107_v11, %v2114_v8  ;;  %v1974_v58 = vrot.slane %v5120_v13, %v5041_v50  ;;  %v2009_v25 = vrot.slane %v5156_v62, %v5030_v20  ;;  %v6070_v32 = vrot.slane %v5019_v31, %v5030_v20 }
 0x114   :  { %v6071_v44 = vrot.slane %v5019_v31, %v5038_v38  ;;  %v3370_v9 = vcombine.low %v3362_v54, %v3369_v41  ;;  %v3379_v11 = vrot.slane %v3371_v59, %v5068_v27  ;;  %v3386_v12 = vrot.slane %v3372_v28, %v5068_v27  ;;  %v5368_v54 = vpop.xlane.xlu0 %1278 }
 0x115   :  { %v3405_v48 = vcombine.low %v6070_v32, %v1736_v26  ;;  %v2205_v53 = vrot.slane %v5258_v18, %v5030_v20  ;;  %v2212_v26 = vrot.slane %v5258_v18, %v5035_v29  ;;  %v2219_v8 = vrot.slane %v5258_v18, %v5038_v38 }
 0x116   :  { %4375 = vperm.xlu0 %4908, %v3540_v36   ;;  %v3406_v14 = vcombine.low %v6071_v44, %v1750_v60  ;;  %v3608_v36 = vcombine.low %v3600_v39, %v3607_v45  ;;  %v2226_v31 = vrot.slane %v5258_v18, %v5041_v50  ;;  %v3634_v60 = vrot.slane %v3626_v5, %v5068_v27 }
 0x117   :  { %4342 = vperm.xlu1 %4909, %v3353_v23   ;;  %v3641_v47 = vrot.slane %v3627_v6, %v5068_v27  ;;  %v3660_v15 = vcombine.low %v2149_v42, %v2156_v17  ;;  %v3661_v23 = vcombine.low %v2163_v24, %v2170_v43  ;;  %v3413_v41 = vrot.slane %v3405_v48, %v5068_v27 }
 0x118   :  { %v3420_v59 = vrot.slane %v3406_v14, %v5068_v27  ;;  %v3439_v18 = vcombine.low %v1785_v37, %v1792_v51  ;;  %v6072_v52 = vrot.slane %v5032_v21, %v5041_v50  ;;  %v6073_v16 = vrot.slane %v5032_v21, %v5038_v38  ;;  %v1288_v21 = vpop.xlane.xlu1 %1287 }
 0x119   :  { %v2016_v42 = vrot.slane %v5156_v62, %v5035_v29  ;;  %v2023_v17 = vrot.slane %v5156_v62, %v5038_v38  ;;  %v3387_v24 = vcombine.low %v3379_v11, %v3386_v12  ;;  %v2261_v39 = vrot.slane %v5302_v55, %v5030_v20 }
 0x11a   :  { %4381 = vperm.xlu0 %4908, %v3574_v61   ;;  %v3440_v28 = vcombine.low %v6073_v16, %v6072_v52  ;;  %v2268_v37 = vrot.slane %v5302_v55, %v5035_v29  ;;  %v2275_v51 = vrot.slane %v5302_v55, %v5038_v38  ;;  %v3694_v45 = vcombine.low %v2205_v53, %v2212_v26  ;;  %v5426_v12 = vpop.xlane.xlu0 %1284 }
 0x11b   :  { %4345 = vperm.xlu1 %4909, %v3370_v9   ;;  %v3695_v61 = vcombine.low %v2219_v8, %v2226_v31  ;;  %v3642_v43 = vcombine.low %v3634_v60, %v3641_v47  ;;  %v2282_v5 = vrot.slane %v5302_v55, %v5041_v50  ;;  %v3668_v6 = vrot.slane %v3660_v15, %v5068_v27 }
 0x11c   :  { %v3675_v32 = vrot.slane %v3661_v23, %v5068_v27  ;;  %v3421_v48 = vcombine.low %v3413_v41, %v3420_v59  ;;  %v3447_v44 = vrot.slane %v3439_v18, %v5068_v27  ;;  %v3454_v14 = vrot.slane %v3440_v28, %v5068_v27 }
 0x11d   :  { %v3473_v9 = vcombine.low %v1841_v4, %v1848_v0  ;;  %v3474_v55 = vcombine.low %v1855_v30, %v1862_v33  ;;  %v3507_v11 = vcombine.low %v1897_v57, %v1904_v1  ;;  %v3508_v4 = vcombine.low %v1911_v2, %v1918_v22  ;;  %v1294_v31 = vpop.xlane.xlu1 %1293 }
 0x11e   :  { %4387 = vperm.xlu0 %4908, %v3608_v36   ;;  %v2317_v0 = vrot.slane %v5354_v46, %v5030_v20  ;;  %v2324_v7 = vrot.slane %v5354_v46, %v5035_v29  ;;  %v2331_v30 = vrot.slane %v5354_v46, %v5038_v38  ;;  %v3702_v33 = vrot.slane %v3694_v45, %v5068_v27 }
 0x11f   :  { %4348 = vperm.xlu1 %4909, %v3387_v24   ;;  %v3709_v57 = vrot.slane %v3695_v61, %v5068_v27  ;;  %v3676_v1 = vcombine.low %v3668_v6, %v3675_v32  ;;  %v2338_v40 = vrot.slane %v5354_v46, %v5041_v50  ;;  %v3728_v2 = vcombine.low %v2261_v39, %v2268_v37 }
 0x120   :  { %v3729_v22 = vcombine.low %v2275_v51, %v2282_v5  ;;  %v2030_v53 = vrot.slane %v5156_v62, %v5041_v50  ;;  %v2065_v36 = vrot.slane %v5188_v56, %v5030_v20  ;;  %v3455_v26 = vcombine.low %v3447_v44, %v3454_v14 }
 0x121   :  { %v3481_v8 = vrot.slane %v3473_v9, %v5068_v27  ;;  %v2373_v60 = vrot.slane %v1288_v21, %v5030_v20  ;;  %v2380_v47 = vrot.slane %v1288_v21, %v5035_v29  ;;  %v2387_v15 = vrot.slane %v1288_v21, %v5038_v38  ;;  %v5450_v28 = vpop.xlane.xlu0 %1290 }
 0x122   :  { %4393 = vperm.xlu0 %4908, %v3642_v43   ;;  %v2394_v46 = vrot.slane %v1288_v21, %v5041_v50  ;;  %v3488_v23 = vrot.slane %v3474_v55, %v5068_v27  ;;  %v3515_v41 = vrot.slane %v3507_v11, %v5068_v27  ;;  %v3522_v59 = vrot.slane %v3508_v4, %v5068_v27 }
 0x123   :  { %4354 = vperm.xlu1 %4909, %v3421_v48   ;;  %v3710_v18 = vcombine.low %v3702_v33, %v3709_v57  ;;  %v3736_v52 = vrot.slane %v3728_v2, %v5068_v27  ;;  %v3743_v16 = vrot.slane %v3729_v22, %v5068_v27  ;;  %v3762_v24 = vcombine.low %v2317_v0, %v2324_v7 }
 0x124   :  { %v3763_v39 = vcombine.low %v2331_v30, %v2338_v40  ;;  %v3541_v37 = vcombine.low %v1953_v34, %v1960_v10  ;;  %v3542_v51 = vcombine.low %v1967_v35, %v1974_v58  ;;  %v2429_v45 = vrot.slane %v1294_v31, %v5030_v20  ;;  %v1300_v58 = vpop.xlane.xlu1 %1299 }
 0x125   :  { %v2436_v61 = vrot.slane %v1294_v31, %v5035_v29  ;;  %v2443_v21 = vrot.slane %v1294_v31, %v5038_v38  ;;  %v2450_v43 = vrot.slane %v1294_v31, %v5041_v50  ;;  %v3796_v5 = vcombine.low %v2373_v60, %v2380_v47 }
 0x126   :  { %4399 = vperm.xlu0 %4908, %v3676_v1   ;;  %v3797_v6 = vcombine.low %v2387_v15, %v2394_v46  ;;  %v2072_v34 = vrot.slane %v5188_v56, %v5035_v29  ;;  %v2079_v10 = vrot.slane %v5188_v56, %v5038_v38  ;;  %v2086_v13 = vrot.slane %v5188_v56, %v5041_v50 }
 0x127   :  { %4360 = vperm.xlu1 %4909, %v3455_v26   ;;  %v3489_v35 = vcombine.low %v3481_v8, %v3488_v23  ;;  %v3523_v32 = vcombine.low %v3515_v41, %v3522_v59  ;;  %v3744_v48 = vcombine.low %v3736_v52, %v3743_v16  ;;  %v3770_v44 = vrot.slane %v3762_v24, %v5068_v27  ;;  %v5487_v4 = vpop.xlane.xlu0 %1296 }
 0x128   :  { %v3777_v14 = vrot.slane %v3763_v39, %v5068_v27  ;;  %v3549_v9 = vrot.slane %v3541_v37, %v5068_v27  ;;  %v3556_v55 = vrot.slane %v3542_v51, %v5068_v27  ;;  %v3575_v56 = vcombine.low %v2009_v25, %v2016_v42 }
 0x129   :  { %v3576_v11 = vcombine.low %v2023_v17, %v2030_v53  ;;  %v3804_v0 = vrot.slane %v3796_v5, %v5068_v27  ;;  %v3811_v7 = vrot.slane %v3797_v6, %v5068_v27  ;;  %v3830_v30 = vcombine.low %v2429_v45, %v2436_v61 }
 0x12a   :  { %4405 = vperm.xlu0 %4908, %v3710_v18   ;;  %v3831_v33 = vcombine.low %v2443_v21, %v2450_v43  ;;  %v2485_v57 = vrot.slane %v1300_v58, %v5030_v20  ;;  %v2492_v1 = vrot.slane %v1300_v58, %v5035_v29  ;;  %v2499_v40 = vrot.slane %v1300_v58, %v5038_v38 }
 0x12b   :  { %4366 = vperm.xlu1 %4909, %v3489_v35   ;;  %v2506_v25 = vrot.slane %v1300_v58, %v5041_v50  ;;  %v2121_v62 = vrot.slane %v5234_v63, %v5030_v20  ;;  %v2128_v42 = vrot.slane %v5234_v63, %v5035_v29  ;;  %v3778_v17 = vcombine.low %v3770_v44, %v3777_v14  ;;  %v1306_v8 = vpop.xlane.xlu1 %1305 }
 0x12c   :  { %v2135_v2 = vrot.slane %v5234_v63, %v5038_v38  ;;  %v2142_v22 = vrot.slane %v5234_v63, %v5041_v50  ;;  %v3557_v53 = vcombine.low %v3549_v9, %v3556_v55  ;;  %v3609_v26 = vcombine.low %v2065_v36, %v2072_v34 }
 0x12d   :  { %v3583_v31 = vrot.slane %v3575_v56, %v5068_v27  ;;  %v3590_v60 = vrot.slane %v3576_v11, %v5068_v27  ;;  %v3610_v47 = vcombine.low %v2079_v10, %v2086_v13  ;;  %v3812_v15 = vcombine.low %v3804_v0, %v3811_v7 }
 0x12e   :  { %4411 = vperm.xlu0 %4908, %v3744_v48   ;;  %v3864_v46 = vcombine.low %v2485_v57, %v2492_v1  ;;  %v3865_v23 = vcombine.low %v2499_v40, %v2506_v25  ;;  %v3838_v41 = vrot.slane %v3830_v30, %v5068_v27  ;;  %v3845_v59 = vrot.slane %v3831_v33, %v5068_v27  ;;  %v5511_v16 = vpop.xlane.xlu0 %1302 }
 0x12f   :  { %4372 = vperm.xlu1 %4909, %v3523_v32   ;;  %v2541_v18 = vrot.slane %v1306_v8, %v5030_v20  ;;  %v2548_v63 = vrot.slane %v1306_v8, %v5035_v29  ;;  %v2555_v36 = vrot.slane %v1306_v8, %v5038_v38  ;;  %v2562_v52 = vrot.slane %v1306_v8, %v5041_v50 }
 0x130   :  { %v2177_v24 = vrot.slane %v5276_v19, %v5030_v20  ;;  %v2184_v39 = vrot.slane %v5276_v19, %v5035_v29  ;;  %v2191_v37 = vrot.slane %v5276_v19, %v5038_v38  ;;  %v2198_v51 = vrot.slane %v5276_v19, %v5041_v50 }
 0x131   :  { %v3643_v45 = vcombine.low %v2121_v62, %v2128_v42  ;;  %v3644_v61 = vcombine.low %v2135_v2, %v2142_v22  ;;  %v3591_v21 = vcombine.low %v3583_v31, %v3590_v60  ;;  %v3617_v43 = vrot.slane %v3609_v26, %v5068_v27  ;;  %v5523_v34 = vpop.xlane.xlu1 %1311 }
 0x132   :  { %4417 = vperm.xlu0 %4908, %v3778_v17   ;;  %v3624_v5 = vrot.slane %v3610_v47, %v5068_v27  ;;  %v3846_v6 = vcombine.low %v3838_v41, %v3845_v59  ;;  %v3898_v10 = vcombine.low %v2541_v18, %v2548_v63  ;;  %v3899_v13 = vcombine.low %v2555_v36, %v2562_v52 }
 0x133   :  { %4378 = vperm.xlu1 %4909, %v3557_v53   ;;  %v3872_v35 = vrot.slane %v3864_v46, %v5068_v27  ;;  %v3879_v58 = vrot.slane %v3865_v23, %v5068_v27  ;;  %v3677_v32 = vcombine.low %v2177_v24, %v2184_v39  ;;  %v3678_v19 = vcombine.low %v2191_v37, %v2198_v51 }
 0x134   :  { %v2233_v48 = vrot.slane %v5328_v3, %v5030_v20  ;;  %v2240_v44 = vrot.slane %v5328_v3, %v5035_v29  ;;  %v2247_v14 = vrot.slane %v5328_v3, %v5038_v38  ;;  %v2254_v9 = vrot.slane %v5328_v3, %v5041_v50 }
 0x135   :  { %v5535_v55 = vpop.xlane.xlu0 %1308  ;;  %v2289_v56 = vrot.slane %v5368_v54, %v5030_v20  ;;  %v3625_v11 = vcombine.low %v3617_v43, %v3624_v5  ;;  %v3651_v0 = vrot.slane %v3643_v45, %v5068_v27  ;;  %v3658_v7 = vrot.slane %v3644_v61, %v5068_v27 }
 0x136   :  { %4423 = vperm.xlu0 %4908, %v3812_v15   ;;  %v2296_v30 = vrot.slane %v5368_v54, %v5035_v29  ;;  %v3880_v33 = vcombine.low %v3872_v35, %v3879_v58  ;;  %v3906_v57 = vrot.slane %v3898_v10, %v5068_v27  ;;  %v3913_v1 = vrot.slane %v3899_v13, %v5068_v27 }
 0x137   :  { %4384 = vperm.xlu1 %4909, %v3591_v21   ;;  %v2303_v3 = vrot.slane %v5368_v54, %v5038_v38  ;;  %v2310_v40 = vrot.slane %v5368_v54, %v5041_v50  ;;  %v3711_v62 = vcombine.low %v2233_v48, %v2240_v44  ;;  %v3712_v42 = vcombine.low %v2247_v14, %v2254_v9 }
 0x138   :  { %v5549_v25 = vpop.xlane.xlu1 %1317  ;;  %v3659_v17 = vcombine.low %v3651_v0, %v3658_v7  ;;  %v3685_v2 = vrot.slane %v3677_v32, %v5068_v27  ;;  %v3692_v22 = vrot.slane %v3678_v19, %v5068_v27  ;;  %v3745_v53 = vcombine.low %v2289_v56, %v2296_v30 }
 0x139   :  { %v3914_v8 = vcombine.low %v3906_v57, %v3913_v1  ;;  %v3746_v31 = vcombine.low %v2303_v3, %v2310_v40  ;;  %v2345_v60 = vrot.slane %v5426_v12, %v5030_v20  ;;  %v2352_v54 = vrot.slane %v5426_v12, %v5035_v29 }
 0x13a   :  { %4429 = vperm.xlu0 %4908, %v3846_v6   ;;  %v2359_v47 = vrot.slane %v5426_v12, %v5038_v38  ;;  %v2366_v15 = vrot.slane %v5426_v12, %v5041_v50  ;;  %v2401_v46 = vrot.slane %v5450_v28, %v5030_v20  ;;  %v2408_v23 = vrot.slane %v5450_v28, %v5035_v29 }
 0x13b   :  { %4390 = vperm.xlu1 %4909, %v3625_v11   ;;  %v5553_v26 = vpop.xlane.xlu0 %1314  ;;  %v2415_v41 = vrot.slane %v5450_v28, %v5038_v38  ;;  %v2422_v59 = vrot.slane %v5450_v28, %v5041_v50  ;;  %v3693_v18 = vcombine.low %v3685_v2, %v3692_v22  ;;  %v3719_v63 = vrot.slane %v3711_v62, %v5068_v27 }
 0x13c   :  { %v3726_v36 = vrot.slane %v3712_v42, %v5068_v27  ;;  %v2457_v12 = vrot.slane %v5487_v4, %v5030_v20  ;;  %v2464_v24 = vrot.slane %v5487_v4, %v5035_v29  ;;  %v2471_v39 = vrot.slane %v5487_v4, %v5038_v38 }
 0x13d   :  { %v2478_v28 = vrot.slane %v5487_v4, %v5041_v50  ;;  %v3779_v37 = vcombine.low %v2345_v60, %v2352_v54  ;;  %v3780_v51 = vcombine.low %v2359_v47, %v2366_v15  ;;  %v3753_v45 = vrot.slane %v3745_v53, %v5068_v27 }
 0x13e   :  { %4435 = vperm.xlu0 %4908, %v3880_v33   ;;  %v3760_v61 = vrot.slane %v3746_v31, %v5068_v27  ;;  %v3813_v43 = vcombine.low %v2401_v46, %v2408_v23  ;;  %v3814_v5 = vcombine.low %v2415_v41, %v2422_v59  ;;  %v3727_v6 = vcombine.low %v3719_v63, %v3726_v36 }
 0x13f   :  { %4396 = vperm.xlu1 %4909, %v3659_v17   ;;  %v5573_v52 = vpop.xlane.xlu1 %1323  ;;  %v3847_v10 = vcombine.low %v2457_v12, %v2464_v24  ;;  %v3848_v13 = vcombine.low %v2471_v39, %v2478_v28  ;;  %v3787_v4 = vrot.slane %v3779_v37, %v5068_v27  ;;  %v3794_v32 = vrot.slane %v3780_v51, %v5068_v27 }
 0x140   :  { %v3761_v58 = vcombine.low %v3753_v45, %v3760_v61  ;;  %v2513_v19 = vrot.slane %v5511_v16, %v5030_v20  ;;  %v2520_v48 = vrot.slane %v5511_v16, %v5035_v29  ;;  %v3821_v44 = vrot.slane %v3813_v43, %v5068_v27 }
 0x141   :  { %v3828_v14 = vrot.slane %v3814_v5, %v5068_v27  ;;  %v3855_v56 = vrot.slane %v3847_v10, %v5068_v27  ;;  %v2527_v11 = vrot.slane %v5511_v16, %v5038_v38  ;;  %v2534_v0 = vrot.slane %v5511_v16, %v5041_v50 }
 0x142   :  { %4441 = vperm.xlu0 %4908, %v3914_v8   ;;  %v5585_v21 = vpop.xlane.xlu0 %1320  ;;  %v3862_v7 = vrot.slane %v3848_v13, %v5068_v27  ;;  %v6074_v30 = vlaneseq  ;;  %v3881_v57 = vcombine.low %v2513_v19, %v2520_v48  ;;  %v3795_v1 = vcombine.low %v3787_v4, %v3794_v32 }
 0x143   :  { %4402 = vperm.xlu1 %4909, %v3693_v18   ;;  %v3829_v3 = vcombine.low %v3821_v44, %v3828_v14  ;;  %v3882_v22 = vcombine.low %v2527_v11, %v2534_v0  ;;  %v2597_v31 = vrot.slane %v5523_v34, %v5030_v20  ;;  %v2604_v60 = vrot.slane %v5523_v34, %v5035_v29 }
 0x144   :  { %v5606_v33 = vand.u32 127, %v6074_v30  ;;  %v3863_v16 = vcombine.low %v3855_v56, %v3862_v7  ;;  %v2611_v18 = vrot.slane %v5523_v34, %v5038_v38  ;;  %v3889_v63 = vrot.slane %v3881_v57, %v5068_v27 }
 0x145   :  { %v5587_v35 = vpop.xlane.xlu1 %1329  ;;  %v2569_v24 = vrot.slane %v5535_v55, %v5030_v20  ;;  %v3896_v51 = vrot.slane %v3882_v22, %v5068_v27  ;;  %v2583_v10 = vrot.slane %v5535_v55, %v5038_v38  ;;  %v2590_v13 = vrot.slane %v5535_v55, %v5041_v50 }
 0x146   :  { %v5614_v53 = vsub.s32 %v5606_v33, %v5023_v49  ;;  %v4521_v8 = vadd.s32 4294967288, %v5606_v33  ;;  %v2618_v44 = vrot.slane %v5523_v34, %v5041_v50 }
 0x147   :  { %4408 = vperm.xlu1 %4909, %v3727_v6   ;;  %v2576_v6 = vrot.slane %v5535_v55, %v5035_v29  ;;  %v3897_v56 = vcombine.low %v3889_v63, %v3896_v51  ;;  %v2674_v63 = vrot.slane %v5549_v25, %v5041_v50 }
 0x148   :  { %v5648_v11 = vsub.s32 %v4521_v8, %v5023_v49 }
 0x149   :  { %v5597_v9 = vpop.xlane.xlu0 %1326  ;;  %v5654_v57 = vcombine.low %v2569_v24, %v2576_v6 }
 0x14b   :  { %4414 = vperm.xlu1 %4909, %v3761_v58  }
 0x14c   :  { %v1336_v40 = vpop.xlane.xlu1 %1335 }
 0x14d   :  { %v2821_v62 = vrot.slane %v1336_v40, %v5030_v20  ;;  %v2828_v42 = vrot.slane %v1336_v40, %v5035_v29  ;;  %v2835_v17 = vrot.slane %v1336_v40, %v5038_v38  ;;  %v2842_v2 = vrot.slane %v1336_v40, %v5041_v50 }
 0x14f   :  { %4420 = vperm.xlu1 %4909, %v3795_v1   ;;  %v4068_v54 = vcombine.low %v2821_v62, %v2828_v42  ;;  %v4069_v47 = vcombine.low %v2835_v17, %v2842_v2  ;;  %v1333_v15 = vpop.xlane.xlu0 %1332  ;;  %v5656_v1 = vcombine.low %v2583_v10, %v2590_v13  ;;  %v2653_v62 = vrot.slane %v5549_v25, %v5030_v20 }
 0x150   :  { %v2793_v46 = vrot.slane %v1333_v15, %v5030_v20  ;;  %v2800_v23 = vrot.slane %v1333_v15, %v5035_v29  ;;  %v2807_v41 = vrot.slane %v1333_v15, %v5038_v38  ;;  %v2814_v59 = vrot.slane %v1333_v15, %v5041_v50 }
 0x151   :  { %v4076_v36 = vrot.slane %v4068_v54, %v5068_v27  ;;  %v4083_v12 = vrot.slane %v4069_v47, %v5068_v27  ;;  %v2660_v15 = vrot.slane %v5549_v25, %v5035_v29  ;;  %v3923_v13 = vrot.slane %v5654_v57, %v5068_v27 }
 0x152   :  { %v4051_v39 = vcombine.low %v2793_v46, %v2800_v23  ;;  %v4052_v28 = vcombine.low %v2807_v41, %v2814_v59  ;;  %v2667_v59 = vrot.slane %v5549_v25, %v5038_v38 }
 0x153   :  { %4426 = vperm.xlu1 %4909, %v3829_v3   ;;  %v1342_v37 = vpop.xlane.xlu1 %1341  ;;  %v4084_v58 = vcombine.low %v4076_v36, %v4083_v12 }
 0x154   :  { %v2877_v45 = vrot.slane %v1342_v37, %v5030_v20  ;;  %v2884_v61 = vrot.slane %v1342_v37, %v5035_v29  ;;  %v2891_v43 = vrot.slane %v1342_v37, %v5038_v38  ;;  %v2898_v5 = vrot.slane %v1342_v37, %v5041_v50 }
 0x155   :  { %v4059_v19 = vrot.slane %v4051_v39, %v5068_v27  ;;  %v4066_v48 = vrot.slane %v4052_v28, %v5068_v27  ;;  %4471 = vperm.xlu0 %4908, %v4084_v58   ;;  %v5695_v58 = vcombine.low %v2653_v62, %v2660_v15 }
 0x156   :  { %v4102_v4 = vcombine.low %v2877_v45, %v2884_v61  ;;  %v4103_v32 = vcombine.low %v2891_v43, %v2898_v5  ;;  %v1339_v14 = vpop.xlane.xlu0 %1338  ;;  %v5684_v45 = vcombine.low %v2597_v31, %v2604_v60  ;;  %v5691_v5 = vcombine.low %v2611_v18, %v2618_v44 }
 0x157   :  { %4432 = vperm.xlu1 %4909, %v3863_v16   ;;  %v2849_v0 = vrot.slane %v1339_v14, %v5030_v20  ;;  %v2856_v55 = vrot.slane %v1339_v14, %v5035_v29  ;;  %v2863_v7 = vrot.slane %v1339_v14, %v5038_v38  ;;  %v2870_v30 = vrot.slane %v1339_v14, %v5041_v50 }
 0x158   :  { %v4110_v3 = vrot.slane %v4102_v4, %v5068_v27  ;;  %v4117_v40 = vrot.slane %v4103_v32, %v5068_v27  ;;  %v4067_v22 = vcombine.low %v4059_v19, %v4066_v48  ;;  %v5697_v31 = vcombine.low %v2667_v59, %v2674_v63 }
 0x159   :  { %v4085_v42 = vcombine.low %v2849_v0, %v2856_v55  ;;  %v4086_v17 = vcombine.low %v2863_v7, %v2870_v30  ;;  %v1348_v2 = vpop.xlane.xlu1 %1347  ;;  %v3930_v32 = vrot.slane %v5656_v1, %v5068_v27  ;;  %v2625_v44 = vrot.slane %v5553_v26, %v5030_v20 }
 0x15a   :  { %v2933_v16 = vrot.slane %v1348_v2, %v5030_v20  ;;  %v2940_v8 = vrot.slane %v1348_v2, %v5035_v29  ;;  %v2947_v54 = vrot.slane %v1348_v2, %v5038_v38  ;;  %v2954_v47 = vrot.slane %v1348_v2, %v5041_v50 }
 0x15b   :  { %4438 = vperm.xlu1 %4909, %v3897_v56   ;;  %v4118_v46 = vcombine.low %v4110_v3, %v4117_v40  ;;  %v4093_v23 = vrot.slane %v4085_v42, %v5068_v27  ;;  %v4100_v41 = vrot.slane %v4086_v17, %v5068_v27  ;;  %v5710_v0 = vadd.s32 4294967280, %v5606_v33 }
 0x15c   :  { %v4136_v36 = vcombine.low %v2933_v16, %v2940_v8  ;;  %v4137_v12 = vcombine.low %v2947_v54, %v2954_v47  ;;  %v2632_v55 = vrot.slane %v5553_v26, %v5035_v29  ;;  %v2639_v7 = vrot.slane %v5553_v26, %v5038_v38 }
 0x15d   :  { %v1345_v24 = vpop.xlane.xlu0 %1344  ;;  %4477 = vperm.xlu0 %4908, %v4118_v46   ;;  %v4101_v25 = vcombine.low %v4093_v23, %v4100_v41  ;;  %v2646_v17 = vrot.slane %v5553_v26, %v5041_v50  ;;  %v3940_v47 = vrot.slane %v5684_v45, %v5068_v27  ;;  %v3947_v15 = vrot.slane %v5691_v5, %v5068_v27 }
 0x15e   :  { %v2905_v39 = vrot.slane %v1345_v24, %v5030_v20  ;;  %v2912_v28 = vrot.slane %v1345_v24, %v5035_v29  ;;  %v2919_v37 = vrot.slane %v1345_v24, %v5038_v38  ;;  %v2926_v51 = vrot.slane %v1345_v24, %v5041_v50 }
 0x15f   :  { %4468 = vperm.xlu1 %4909, %v4067_v22   ;;  %v4144_v61 = vrot.slane %v4136_v36, %v5068_v27  ;;  %v4151_v43 = vrot.slane %v4137_v12, %v5068_v27  ;;  %v3931_v41 = vcombine.low %v3923_v13, %v3930_v32  ;;  %v3974_v26 = vrot.slane %v5695_v58, %v5068_v27 }
 0x160   :  { %v4119_v6 = vcombine.low %v2905_v39, %v2912_v28  ;;  %v4120_v10 = vcombine.low %v2919_v37, %v2926_v51  ;;  %v1354_v60 = vpop.xlane.xlu1 %1353  ;;  %v3981_v59 = vrot.slane %v5697_v31, %v5068_v27  ;;  %v5736_v39 = vcombine.low %v2625_v44, %v2632_v55 }
 0x161   :  { %v4152_v4 = vcombine.low %v4144_v61, %v4151_v43  ;;  %v2989_v19 = vrot.slane %v1354_v60, %v5030_v20  ;;  %v2996_v34 = vrot.slane %v1354_v60, %v5035_v29  ;;  %v3003_v18 = vrot.slane %v1354_v60, %v5038_v38 }
 0x162   :  { %v3010_v48 = vrot.slane %v1354_v60, %v5041_v50  ;;  %v4127_v14 = vrot.slane %v4119_v6, %v5068_v27  ;;  %v4134_v56 = vrot.slane %v4120_v10, %v5068_v27  ;;  %v5738_v28 = vcombine.low %v2639_v7, %v2646_v17 }
 0x163   :  { %4474 = vperm.xlu1 %4909, %v4101_v25   ;;  %4483 = vperm.xlu0 %4908, %v4152_v4   ;;  %v4170_v30 = vcombine.low %v2989_v19, %v2996_v34  ;;  %v1351_v1 = vpop.xlane.xlu0 %1350  ;;  %v2709_v25 = vrot.slane %v5573_v52, %v5030_v20  ;;  %v2716_v61 = vrot.slane %v5573_v52, %v5035_v29 }
 0x164   :  { %v4171_v57 = vcombine.low %v3003_v18, %v3010_v48  ;;  %v2961_v3 = vrot.slane %v1351_v1, %v5030_v20  ;;  %v2968_v40 = vrot.slane %v1351_v1, %v5035_v29  ;;  %v2975_v62 = vrot.slane %v1351_v1, %v5038_v38 }
 0x165   :  { %v2982_v42 = vrot.slane %v1351_v1, %v5041_v50  ;;  %v4135_v2 = vcombine.low %v4127_v14, %v4134_v56  ;;  %v4178_v22 = vrot.slane %v4170_v30, %v5068_v27  ;;  %v2723_v19 = vrot.slane %v5573_v52, %v5038_v38 }
 0x166   :  { %v4185_v16 = vrot.slane %v4171_v57, %v5068_v27  ;;  %v4153_v8 = vcombine.low %v2961_v3, %v2968_v40  ;;  %v2730_v44 = vrot.slane %v5573_v52, %v5041_v50  ;;  %v3957_v7 = vrot.slane %v5736_v39, %v5068_v27 }
 0x167   :  { %v4154_v54 = vcombine.low %v2975_v62, %v2982_v42  ;;  %4480 = vperm.xlu1 %4909, %v4135_v2   ;;  %v1360_v10 = vpop.xlane.xlu1 %1359  ;;  %v2681_v40 = vrot.slane %v5585_v21, %v5030_v20  ;;  %v2688_v17 = vrot.slane %v5585_v21, %v5035_v29  ;;  %v2695_v2 = vrot.slane %v5585_v21, %v5038_v38 }
 0x168   :  { %v1357_v46 = vpop.xlane.xlu0 %1356  ;;  %v4186_v23 = vcombine.low %v4178_v22, %v4185_v16  ;;  %v4161_v37 = vrot.slane %v4153_v8, %v5068_v27  ;;  %v3045_v13 = vrot.slane %v1360_v10, %v5030_v20  ;;  %v3052_v60 = vrot.slane %v1360_v10, %v5035_v29 }
 0x169   :  { %v3017_v63 = vrot.slane %v1357_v46, %v5030_v20  ;;  %v3024_v36 = vrot.slane %v1357_v46, %v5035_v29  ;;  %v3031_v12 = vrot.slane %v1357_v46, %v5038_v38  ;;  %v3038_v24 = vrot.slane %v1357_v46, %v5041_v50 }
 0x16a   :  { %4489 = vperm.xlu0 %4908, %v4186_v23   ;;  %v4168_v51 = vrot.slane %v4154_v54, %v5068_v27  ;;  %v3059_v4 = vrot.slane %v1360_v10, %v5038_v38  ;;  %v3066_v32 = vrot.slane %v1360_v10, %v5041_v50  ;;  %v4204_v14 = vcombine.low %v3045_v13, %v3052_v60 }
 0x16b   :  { %v4187_v43 = vcombine.low %v3017_v63, %v3024_v36  ;;  %v4188_v6 = vcombine.low %v3031_v12, %v3038_v24  ;;  %v2702_v36 = vrot.slane %v5585_v21, %v5041_v50  ;;  %v5782_v10 = vcombine.low %v2723_v19, %v2730_v44 }
 0x16c   :  { %v4169_v34 = vcombine.low %v4161_v37, %v4168_v51  ;;  %v4205_v56 = vcombine.low %v3059_v4, %v3066_v32  ;;  %v4212_v52 = vrot.slane %v4204_v14, %v5068_v27  ;;  %v5778_v37 = vcombine.low %v2709_v25, %v2716_v61 }
 0x16d   :  { %v4195_v18 = vrot.slane %v4187_v43, %v5068_v27  ;;  %v4202_v48 = vrot.slane %v4188_v6, %v5068_v27  ;;  %v3964_v6 = vrot.slane %v5738_v28, %v5068_v27  ;;  %v3983_v13 = vcombine.low %v2681_v40, %v2688_v17 }
 0x16e   :  { %v1363_v55 = vpop.xlane.xlu0 %1362  ;;  %4486 = vperm.xlu1 %4909, %v4169_v34   ;;  %v4219_v42 = vrot.slane %v4205_v56, %v5068_v27  ;;  %v3948_v21 = vcombine.low %v3940_v47, %v3947_v15  ;;  %v3984_v32 = vcombine.low %v2695_v2, %v2702_v36  ;;  %v3982_v45 = vcombine.low %v3974_v26, %v3981_v59 }
 0x16f   :  { %v3073_v30 = vrot.slane %v1363_v55, %v5030_v20  ;;  %v3080_v57 = vrot.slane %v1363_v55, %v5035_v29  ;;  %v3087_v1 = vrot.slane %v1363_v55, %v5038_v38  ;;  %v3094_v3 = vrot.slane %v1363_v55, %v5041_v50 }
 0x170   :  { %v4203_v62 = vcombine.low %v4195_v18, %v4202_v48  ;;  %v1366_v8 = vpop.xlane.xlu1 %1365  ;;  %v4220_v12 = vcombine.low %v4212_v52, %v4219_v42  ;;  %v3965_v34 = vcombine.low %v3957_v7, %v3964_v6  ;;  %v4008_v18 = vrot.slane %v5778_v37, %v5068_v27 }
 0x171   :  { %v4221_v22 = vcombine.low %v3073_v30, %v3080_v57  ;;  %v4222_v16 = vcombine.low %v3087_v1, %v3094_v3  ;;  %v3101_v54 = vrot.slane %v1366_v8, %v5030_v20  ;;  %v3108_v46 = vrot.slane %v1366_v8, %v5035_v29 }
 0x172   :  { %4492 = vperm.xlu0 %4908, %v4203_v62   ;;  %v3115_v23 = vrot.slane %v1366_v8, %v5038_v38  ;;  %v3122_v63 = vrot.slane %v1366_v8, %v5041_v50  ;;  %4444 = vperm.xlu1 %4909, %v3931_v41   ;;  %v2765_v48 = vrot.slane %v5587_v35, %v5030_v20 }
 0x173   :  { %v4229_v24 = vrot.slane %v4221_v22, %v5068_v27  ;;  %v4236_v39 = vrot.slane %v4222_v16, %v5068_v27  ;;  %v4238_v51 = vcombine.low %v3101_v54, %v3108_v46  ;;  %v3991_v31 = vrot.slane %v3983_v13, %v5068_v27 }
 0x174   :  { %v4239_v43 = vcombine.low %v3115_v23, %v3122_v63  ;;  %v1369_v41 = vpop.xlane.xlu0 %1368  ;;  %v4015_v58 = vrot.slane %v5782_v10, %v5068_v27  ;;  %v2737_v7 = vrot.slane %v5597_v9, %v5030_v20  ;;  %v3998_v57 = vrot.slane %v3984_v32, %v5068_v27 }
 0x175   :  { %v4237_v60 = vcombine.low %v4229_v24, %v4236_v39  ;;  %v3129_v25 = vrot.slane %v1369_v41, %v5030_v20  ;;  %v3136_v61 = vrot.slane %v1369_v41, %v5035_v29  ;;  %v3143_v4 = vrot.slane %v1369_v41, %v5038_v38 }
 0x176   :  { %4495 = vperm.xlu0 %4908, %v4220_v12   ;;  %v3150_v28 = vrot.slane %v1369_v41, %v5041_v50  ;;  %4447 = vperm.xlu1 %4909, %v3948_v21   ;;  %v4246_v5 = vrot.slane %v4238_v51, %v5068_v27  ;;  %v4253_v47 = vrot.slane %v4239_v43, %v5068_v27 }
 0x177   :  { %v4255_v15 = vcombine.low %v3129_v25, %v3136_v61  ;;  %v2744_v17 = vrot.slane %v5597_v9, %v5035_v29  ;;  %v2751_v2 = vrot.slane %v5597_v9, %v5038_v38  ;;  %v2758_v22 = vrot.slane %v5597_v9, %v5041_v50 }
 0x178   :  { %v4256_v19 = vcombine.low %v3143_v4, %v3150_v28  ;;  %v4254_v14 = vcombine.low %v4246_v5, %v4253_v47  ;;  %v2772_v63 = vrot.slane %v5587_v35, %v5035_v29  ;;  %v2779_v36 = vrot.slane %v5587_v35, %v5038_v38 }
 0x179   :  { %v1375_v44 = vpop.xlane.xlu0 %1374  ;;  %v4263_v1 = vrot.slane %v4255_v15, %v5068_v27  ;;  %v2786_v12 = vrot.slane %v5587_v35, %v5041_v50  ;;  %v3999_v39 = vcombine.low %v3991_v31, %v3998_v57  ;;  %v4017_v6 = vcombine.low %v2737_v7, %v2744_v17 }
 0x17a   :  { %4498 = vperm.xlu0 %4908, %v4237_v60   ;;  %v3185_v26 = vrot.slane %v1375_v44, %v5030_v20  ;;  %v3192_v59 = vrot.slane %v1375_v44, %v5035_v29  ;;  %v3199_v56 = vrot.slane %v1375_v44, %v5038_v38  ;;  %v3206_v55 = vrot.slane %v1375_v44, %v5041_v50  ;;  %v1372_v30 = vpop.xlane.xlu1 %1371 }
 0x17b   :  { %4450 = vperm.xlu1 %4909, %v3965_v34   ;;  %v4270_v3 = vrot.slane %v4256_v19, %v5068_v27  ;;  %v3157_v40 = vrot.slane %v1372_v30, %v5030_v20  ;;  %v3164_v62 = vrot.slane %v1372_v30, %v5035_v29  ;;  %v3171_v52 = vrot.slane %v1372_v30, %v5038_v38 }
 0x17c   :  { %v3178_v42 = vrot.slane %v1372_v30, %v5041_v50  ;;  %v4289_v16 = vcombine.low %v3185_v26, %v3192_v59  ;;  %v4290_v46 = vcombine.low %v3199_v56, %v3206_v55  ;;  %v4018_v10 = vcombine.low %v2751_v2, %v2758_v22 }
 0x17d   :  { %v4272_v8 = vcombine.low %v3157_v40, %v3164_v62  ;;  %v4271_v23 = vcombine.low %v4263_v1, %v4270_v3  ;;  %v4035_v5 = vcombine.low %v2779_v36, %v2786_v12  ;;  %v4025_v47 = vrot.slane %v4017_v6, %v5068_v27 }
 0x17e   :  { %v4273_v54 = vcombine.low %v3171_v52, %v3178_v42  ;;  %4501 = vperm.xlu0 %4908, %v4254_v14   ;;  %v4297_v35 = vrot.slane %v4289_v16, %v5068_v27  ;;  %v4304_v60 = vrot.slane %v4290_v46, %v5068_v27  ;;  %v4032_v15 = vrot.slane %v4018_v10, %v5068_v27 }
 0x17f   :  { %4453 = vperm.xlu1 %4909, %v3982_v45   ;;  %v1378_v24 = vpop.xlane.xlu1 %1377  ;;  %v4280_v21 = vrot.slane %v4272_v8, %v5068_v27  ;;  %v4034_v45 = vcombine.low %v2765_v48, %v2772_v63  ;;  %v4542_v44 = vadd.s32 4294967264, %v5606_v33  ;;  %v4049_v56 = vrot.slane %v4035_v5, %v5068_v27 }
 0x180   :  { %v3213_v9 = vrot.slane %v1378_v24, %v5030_v20  ;;  %v3220_v37 = vrot.slane %v1378_v24, %v5035_v29  ;;  %v3227_v51 = vrot.slane %v1378_v24, %v5038_v38  ;;  %v3234_v43 = vrot.slane %v1378_v24, %v5041_v50 }
 0x181   :  { %v4325_v13 = vpop.permute.xlu0 %4324  ;;  %v4287_v41 = vrot.slane %v4273_v54, %v5068_v27  ;;  %v4016_v29 = vcombine.low %v4008_v18, %v4015_v58  ;;  %v5844_v38 = vsub.s32 %v5710_v0, %v5023_v49  ;;  %v4535_v50 = vadd.s32 4294967272, %v5606_v33 }
 0x182   :  { %4504 = vperm.xlu0 %4908, %v4271_v23   ;;  %v4306_v61 = vcombine.low %v3213_v9, %v3220_v37  ;;  %v4307_v4 = vcombine.low %v3227_v51, %v3234_v43  ;;  %v4520_v28 = vrot.slane %v4325_v13, %v5614_v53  ;;  %v4305_v0 = vcombine.low %v4297_v35, %v4304_v60 }
 0x183   :  { %4456 = vperm.xlu1 %4909, %v3999_v39   ;;  %v4328_v20 = vpop.permute.xlu1 %4327  ;;  %v4288_v25 = vcombine.low %v4280_v21, %v4287_v41  ;;  %v5857_v48 = vsub.s32 %v4535_v50, %v5023_v49  ;;  %v4033_v26 = vcombine.low %v4025_v47, %v4032_v15  ;;  %v4042_v59 = vrot.slane %v4034_v45, %v5068_v27 }
 0x184   :  { %v4525_v32 = vrot.slane %v4328_v20, %v5648_v11  ;;  %v4314_v31 = vrot.slane %v4306_v61, %v5068_v27  ;;  %v4321_v58 = vrot.slane %v4307_v4, %v5068_v27  ;;  %v5868_v3 = vsub.s32 %v4542_v44, %v5023_v49 }
 0x185   :  { %v5851_v19 = vpop.permute.xlu0 %4351  ;;  %v4549_v40 = vadd.s32 4294967256, %v5606_v33  ;;  %v4050_v62 = vcombine.low %v4042_v59, %v4049_v56  ;;  %v4967_v2 = vmov 0.0   ;;  %v4556_v8 = vadd.s32 4294967248, %v5606_v33 }
 0x186   :  { %v4527_v34 = vsel %vm4526_vm0, %v4525_v32, %v4520_v28  ;;  %4507 = vperm.xlu0 %4908, %v4288_v25   ;;  %v4322_v1 = vcombine.low %v4314_v31, %v4321_v58  ;;  %33 = vst [vmem:[#allocation2] sm:$0xf] %v4967_v2  ;;  %v4563_v12 = vadd.s32 4294967240, %v5606_v33  ;;  %v4570_v43 = vadd.s32 4294967232, %v5606_v33 }
 0x187   :  { %4459 = vperm.xlu1 %4909, %v4016_v29   ;;  %v4331_v18 = vpop.permute.xlu1 %4330  ;;  %v5876_v16 = vsub.s32 %v4549_v40, %v5023_v49  ;;  %v5884_v36 = vsub.s32 %v4556_v8, %v5023_v49  ;;  %v4577_v6 = vadd.s32 4294967224, %v5606_v33  ;;  %v4584_v60 = vadd.s32 4294967216, %v5606_v33 }
 0x188   :  { %v4532_v14 = vrot.slane %v4331_v18, %v5844_v38  ;;  %v5892_v51 = vsub.s32 %v4563_v12, %v5023_v49  ;;  %v5901_v35 = vsub.s32 %v4570_v43, %v5023_v49  ;;  %v4591_v29 = vadd.s32 4294967208, %v5606_v33 }
 0x189   :  { %v5863_v55 = vpop.permute.xlu0 %4357  ;;  %v5905_v20 = vsub.s32 %v4577_v6, %v5023_v49  ;;  %v5911_v28 = vsub.s32 %v4584_v60, %v5023_v49  ;;  %v4598_v32 = vadd.s32 4294967200, %v5606_v33  ;;  %v4605_v47 = vadd.s32 4294967192, %v5606_v33 }
 0x18a   :  { %v4534_v7 = vsel %vm4533_vm1, %v4532_v14, %v4527_v34  ;;  %4510 = vperm.xlu0 %4908, %v4305_v0   ;;  %v5917_v5 = vsub.s32 %v4591_v29, %v5023_v49  ;;  %v4612_v14 = vadd.s32 4294967184, %v5606_v33  ;;  %v4619_v58 = vadd.s32 4294967176, %v5606_v33 }
 0x18b   :  { %4462 = vperm.xlu1 %4909, %v4033_v26   ;;  %v4334_v30 = vpop.permute.xlu1 %4333  ;;  %v4581_v45 = vrot.slane %v5851_v19, %v5905_v20  ;;  %v5924_v44 = vsub.s32 %v4598_v32, %v5023_v49  ;;  %v5930_v31 = vsub.s32 %v4605_v47, %v5023_v49 }
 0x18c   :  { %v4539_v57 = vrot.slane %v4334_v30, %v5857_v48  ;;  %v4595_v19 = vrot.slane %v5863_v55, %v5917_v5 }
 0x18d   :  { %v5871_v52 = vpop.permute.xlu0 %4363 }
 0x18e   :  { %v4541_v42 = vsel %vm4540_vm2, %v4539_v57, %v4534_v7  ;;  %4513 = vperm.xlu0 %4908, %v4322_v1   ;;  %v5937_v57 = vsub.s32 %v4612_v14, %v5023_v49  ;;  %v4609_v55 = vrot.slane %v5871_v52, %v5930_v31  ;;  %v5942_v1 = vsub.s32 %v4619_v58, %v5023_v49 }
 0x18f   :  { %4465 = vperm.xlu1 %4909, %v4050_v62   ;;  %v4337_v17 = vpop.permute.xlu1 %4336 }
 0x190   :  { %v4546_v22 = vrot.slane %v4337_v17, %v5868_v3 }
 0x191   :  { %v5879_v54 = vpop.permute.xlu0 %4369 }
 0x192   :  { %v4548_v46 = vsel %vm4547_vm3, %v4546_v22, %v4541_v42  ;;  %v4623_v2 = vrot.slane %v5879_v54, %v5942_v1 }
 0x193   :  { %v4340_v23 = vpop.permute.xlu1 %4339 }
 0x194   :  { %v4553_v63 = vrot.slane %v4340_v23, %v5876_v16 }
 0x195   :  { %v5887_v24 = vpop.permute.xlu0 %4375 }
 0x196   :  { %v4555_v39 = vsel %vm4554_vm4, %v4553_v63, %v4548_v46  ;;  %v4633_v8 = vrot.slane %v5887_v24, %v5648_v11 }
 0x197   :  { %v4343_v9 = vpop.permute.xlu1 %4342 }
 0x198   :  { %v4560_v37 = vrot.slane %v4343_v9, %v5884_v36 }
 0x199   :  { %v5896_v10 = vpop.permute.xlu0 %4381 }
 0x19a   :  { %v4562_v13 = vsel %vm4561_vm5, %v4560_v37, %v4555_v39  ;;  %v4643_v54 = vrot.slane %v5896_v10, %v5857_v48 }
 0x19b   :  { %v4346_v21 = vpop.permute.xlu1 %4345 }
 0x19c   :  { %v4567_v41 = vrot.slane %v4346_v21, %v5892_v51 }
 0x19d   :  { %v4388_v61 = vpop.permute.xlu0 %4387 }
 0x19e   :  { %v4569_v25 = vsel %vm4568_vm6, %v4567_v41, %v4562_v13  ;;  %v4653_v24 = vrot.slane %v4388_v61, %v5876_v16 }
 0x19f   :  { %v4349_v50 = vpop.permute.xlu1 %4348 }
 0x1a0   :  { %v4574_v4 = vrot.slane %v4349_v50, %v5901_v35 }
 0x1a1   :  { %v4394_v26 = vpop.permute.xlu0 %4393 }
 0x1a2   :  { %v4576_v15 = vsel %vm4575_vm7, %v4574_v4, %v4569_v25  ;;  %v4663_v25 = vrot.slane %v4394_v26, %v5892_v51 }
 0x1a3   :  { %v4355_v34 = vpop.permute.xlu1 %4354  ;;  %v4583_v0 = vsel %vm4582_vm8, %v4581_v45, %v4576_v15 }
 0x1a4   :  { %v4588_v18 = vrot.slane %v4355_v34, %v5911_v28 }
 0x1a5   :  { %v4400_v42 = vpop.permute.xlu0 %4399 }
 0x1a6   :  { %v4590_v59 = vsel %vm4589_vm9, %v4588_v18, %v4583_v0  ;;  %v4673_v47 = vrot.slane %v4400_v42, %v5905_v20 }
 0x1a7   :  { %v4361_v56 = vpop.permute.xlu1 %4360  ;;  %v4597_v7 = vsel %vm4596_vm10, %v4595_v19, %v4590_v59 }
 0x1a8   :  { %v4602_v30 = vrot.slane %v4361_v56, %v5924_v44 }
 0x1a9   :  { %v4406_v23 = vpop.permute.xlu0 %4405 }
 0x1aa   :  { %v4604_v33 = vsel %vm4603_vm11, %v4602_v30, %v4597_v7  ;;  %v4683_v14 = vrot.slane %v4406_v23, %v5917_v5 }
 0x1ab   :  { %v4367_v40 = vpop.permute.xlu1 %4366  ;;  %v4611_v62 = vsel %vm4610_vm12, %v4609_v55, %v4604_v33 }
 0x1ac   :  { %v4616_v17 = vrot.slane %v4367_v40, %v5937_v57 }
 0x1ad   :  { %v4412_v6 = vpop.permute.xlu0 %4411 }
 0x1ae   :  { %v4618_v22 = vsel %vm4617_vm13, %v4616_v17, %v4611_v62  ;;  %v4693_v56 = vrot.slane %v4412_v6, %v5930_v31 }
 0x1af   :  { %v5951_v52 = vsel %vm4624_vm14, %v4623_v2, %v4618_v22  ;;  %v4373_v49 = vpop.permute.xlu1 %4372 }
 0x1b0   :  { %v4629_v46 = vrot.slane %v4373_v49, %v5614_v53 }
 0x1b1   :  { %v4418_v10 = vpop.permute.xlu0 %4417 }
 0x1b2   :  { %v4634_v63 = vsel %vm4526_vm0, %v4633_v8, %v4629_v46  ;;  %v4703_v62 = vrot.slane %v4418_v10, %v5942_v1 }
 0x1b3   :  { %v4379_v12 = vpop.permute.xlu1 %4378 }
 0x1b4   :  { %v4638_v39 = vrot.slane %v4379_v12, %v5844_v38 }
 0x1b5   :  { %v4424_v15 = vpop.permute.xlu0 %4423 }
 0x1b6   :  { %v4639_v9 = vsel %vm4533_vm1, %v4638_v39, %v4634_v63 }
 0x1b7   :  { %v4385_v37 = vpop.permute.xlu1 %4384  ;;  %v4644_v43 = vsel %vm4540_vm2, %v4643_v54, %v4639_v9 }
 0x1b8   :  { %v4648_v13 = vrot.slane %v4385_v37, %v5868_v3 }
 0x1b9   :  { %v4430_v7 = vpop.permute.xlu0 %4429 }
 0x1ba   :  { %v4649_v21 = vsel %vm4547_vm3, %v4648_v13, %v4644_v43 }
 0x1bb   :  { %v4391_v41 = vpop.permute.xlu1 %4390  ;;  %v4654_v60 = vsel %vm4554_vm4, %v4653_v24, %v4649_v21 }
 0x1bc   :  { %v4658_v29 = vrot.slane %v4391_v41, %v5884_v36 }
 0x1bd   :  { %v4436_v17 = vpop.permute.xlu0 %4435 }
 0x1be   :  { %v4659_v50 = vsel %vm4561_vm5, %v4658_v29, %v4654_v60 }
 0x1bf   :  { %v4397_v4 = vpop.permute.xlu1 %4396  ;;  %v4664_v32 = vsel %vm4568_vm6, %v4663_v25, %v4659_v50 }
 0x1c0   :  { %v4668_v45 = vrot.slane %v4397_v4, %v5901_v35 }
 0x1c1   :  { %v4442_v8 = vpop.permute.xlu0 %4441 }
 0x1c2   :  { %v4669_v61 = vsel %vm4575_vm7, %v4668_v45, %v4664_v32  ;;  %v4712_v45 = vrot.slane %v4424_v15, %v5648_v11 }
 0x1c3   :  { %v4403_v34 = vpop.permute.xlu1 %4402  ;;  %v4674_v0 = vsel %vm4582_vm8, %v4673_v47, %v4669_v61 }
 0x1c4   :  { %v4678_v18 = vrot.slane %v4403_v34, %v5911_v28 }
 0x1c6   :  { %v4679_v19 = vsel %vm4589_vm9, %v4678_v18, %v4674_v0 }
 0x1c7   :  { %v4409_v58 = vpop.permute.xlu1 %4408  ;;  %v4684_v26 = vsel %vm4596_vm10, %v4683_v14, %v4679_v19 }
 0x1c8   :  { %v4688_v59 = vrot.slane %v4409_v58, %v5924_v44 }
 0x1ca   :  { %v4689_v30 = vsel %vm4603_vm11, %v4688_v59, %v4684_v26 }
 0x1cb   :  { %v4415_v55 = vpop.permute.xlu1 %4414  ;;  %v4694_v33 = vsel %vm4610_vm12, %v4693_v56, %v4689_v30 }
 0x1cc   :  { %v4698_v40 = vrot.slane %v4415_v55, %v5937_v57 }
 0x1ce   :  { %v4699_v42 = vsel %vm4617_vm13, %v4698_v40, %v4694_v33 }
 0x1cf   :  { %v5986_v2 = vsel %vm4624_vm14, %v4703_v62, %v4699_v42  ;;  %v4421_v22 = vpop.permute.xlu1 %4420 }
 0x1d0   :  { %v4708_v25 = vrot.slane %v4421_v22, %v5614_v53 }
 0x1d2   :  { %v4713_v34 = vsel %vm4526_vm0, %v4712_v45, %v4708_v25 }
 0x1d3   :  { %v4427_v49 = vpop.permute.xlu1 %4426 }
 0x1d4   :  { %v4472_v23 = vpop.permute.xlu0 %4471  ;;  %v4717_v4 = vrot.slane %v4427_v49, %v5844_v38 }
 0x1d5   :  { %v4791_v29 = vrot.slane %v4472_v23, %v5648_v11 }
 0x1d7   :  { %v4433_v46 = vpop.permute.xlu1 %4432 }
 0x1d8   :  { %v4727_v19 = vrot.slane %v4433_v46, %v5868_v3 }
 0x1db   :  { %v4439_v63 = vpop.permute.xlu1 %4438 }
 0x1dc   :  { %v4478_v39 = vpop.permute.xlu0 %4477  ;;  %v4737_v33 = vrot.slane %v4439_v63, %v5884_v36 }
 0x1dd   :  { %v4801_v61 = vrot.slane %v4478_v39, %v5857_v48 }
 0x1df   :  { %v4469_v12 = vpop.permute.xlu1 %4468 }
 0x1e0   :  { %v4787_v60 = vrot.slane %v4469_v12, %v5614_v53  ;;  %v4718_v53 = vsel %vm4533_vm1, %v4717_v4, %v4713_v34 }
 0x1e2   :  { %v4484_v9 = vpop.permute.xlu0 %4483  ;;  %v4792_v47 = vsel %vm4526_vm0, %v4791_v29, %v4787_v60 }
 0x1e3   :  { %v4475_v54 = vpop.permute.xlu1 %4474  ;;  %v4811_v15 = vrot.slane %v4484_v9, %v5876_v16 }
 0x1e4   :  { %v4796_v10 = vrot.slane %v4475_v54, %v5844_v38  ;;  %v4722_v38 = vrot.slane %v4430_v7, %v5857_v48 }
 0x1e6   :  { %v4797_v0 = vsel %vm4533_vm1, %v4796_v10, %v4792_v47  ;;  %v4723_v26 = vsel %vm4540_vm2, %v4722_v38, %v4718_v53  ;;  %v1186_v38 = vld [vmem:[#allocation2] sm:$0xf] }
 0x1e7   :  { %v4481_v37 = vpop.permute.xlu1 %4480  ;;  %v4802_v11 = vsel %vm4540_vm2, %v4801_v61, %v4797_v0  ;;  %v4728_v55 = vsel %vm4547_vm3, %v4727_v19, %v4723_v26 }
 0x1e8   :  { %v4806_v18 = vrot.slane %v4481_v37, %v5868_v3  ;;  %v4732_v3 = vrot.slane %v4436_v17, %v5876_v16  ;;  %v4742_v16 = vrot.slane %v4442_v8, %v5892_v51 }
 0x1e9   :  { %v4490_v43 = vpop.permute.xlu0 %4489 }
 0x1ea   :  { %v4807_v59 = vsel %vm4547_vm3, %v4806_v18, %v4802_v11  ;;  %v4821_v7 = vrot.slane %v4490_v43, %v5892_v51  ;;  %v4733_v62 = vsel %vm4554_vm4, %v4732_v3, %v4728_v55 }
 0x1eb   :  { %v4812_v48 = vsel %vm4554_vm4, %v4811_v15, %v4807_v59  ;;  %v4738_v46 = vsel %vm4561_vm5, %v4737_v33, %v4733_v62 }
 0x1ec   :  { %v4743_v37 = vsel %vm4568_vm6, %v4742_v16, %v4738_v46 }
 0x1ed   :  { %v4487_v6 = vpop.permute.xlu1 %4486 }
 0x1ee   :  { %v4816_v56 = vrot.slane %v4487_v6, %v5884_v36 }
 0x1f0   :  { %v4817_v42 = vsel %vm4561_vm5, %v4816_v56, %v4812_v48 }
 0x1f1   :  { %v4493_v13 = vpop.permute.xlu0 %4492  ;;  %v4445_v24 = vpop.permute.xlu1 %4444  ;;  %v4822_v39 = vsel %vm4568_vm6, %v4821_v7, %v4817_v42 }
 0x1f2   :  { %v4826_v22 = vrot.slane %v4493_v13, %v5901_v35  ;;  %v4747_v23 = vrot.slane %v4445_v24, %v5901_v35 }
 0x1f4   :  { %v4827_v43 = vsel %vm4575_vm7, %v4826_v22, %v4822_v39  ;;  %v4748_v51 = vsel %vm4575_vm7, %v4747_v23, %v4743_v37 }
 0x1f5   :  { %v4496_v21 = vpop.permute.xlu0 %4495  ;;  %v4448_v41 = vpop.permute.xlu1 %4447 }
 0x1f6   :  { %v4831_v36 = vrot.slane %v4496_v21, %v5905_v20  ;;  %v4752_v17 = vrot.slane %v4448_v41, %v5905_v20 }
 0x1f8   :  { %v4832_v20 = vsel %vm4582_vm8, %v4831_v36, %v4827_v43  ;;  %v4753_v21 = vsel %vm4582_vm8, %v4752_v17, %v4748_v51 }
 0x1f9   :  { %v4499_v50 = vpop.permute.xlu0 %4498 }
 0x1fa   :  { %v4451_v32 = vpop.permute.xlu1 %4450  ;;  %v4836_v12 = vrot.slane %v4499_v50, %v5911_v28 }
 0x1fb   :  { %v4757_v54 = vrot.slane %v4451_v32, %v5911_v28 }
 0x1fc   :  { %v4837_v41 = vsel %vm4589_vm9, %v4836_v12, %v4832_v20 }
 0x1fd   :  { %v4502_v14 = vpop.permute.xlu0 %4501  ;;  %v4758_v29 = vsel %vm4589_vm9, %v4757_v54, %v4753_v21 }
 0x1fe   :  { %v4454_v58 = vpop.permute.xlu1 %4453  ;;  %v4841_v9 = vrot.slane %v4502_v14, %v5917_v5 }
 0x1ff   :  { %v4762_v35 = vrot.slane %v4454_v58, %v5917_v5 }
 0x200   :  { %v4842_v25 = vsel %vm4596_vm10, %v4841_v9, %v4837_v41 }
 0x201   :  { %v4505_v30 = vpop.permute.xlu0 %4504  ;;  %v4763_v50 = vsel %vm4596_vm10, %v4762_v35, %v4758_v29 }
 0x202   :  { %v4457_v40 = vpop.permute.xlu1 %4456  ;;  %v4846_v6 = vrot.slane %v4505_v30, %v5924_v44 }
 0x203   :  { %v4767_v8 = vrot.slane %v4457_v40, %v5924_v44 }
 0x204   :  { %v4847_v44 = vsel %vm4603_vm11, %v4846_v6, %v4842_v25 }
 0x205   :  { %v4508_v49 = vpop.permute.xlu0 %4507  ;;  %v4768_v32 = vsel %vm4603_vm11, %v4767_v8, %v4763_v50 }
 0x206   :  { %v4460_v63 = vpop.permute.xlu1 %4459  ;;  %v4851_v24 = vrot.slane %v4508_v49, %v5930_v31 }
 0x207   :  { %v4772_v60 = vrot.slane %v4460_v63, %v5930_v31 }
 0x208   :  { %v4852_v45 = vsel %vm4610_vm12, %v4851_v24, %v4847_v44 }
 0x209   :  { %v4511_v13 = vpop.permute.xlu0 %4510  ;;  %v4773_v61 = vsel %vm4610_vm12, %v4772_v60, %v4768_v32 }
 0x20a   :  { %v4463_v28 = vpop.permute.xlu1 %4462  ;;  %v4856_v5 = vrot.slane %v4511_v13, %v5937_v57 }
 0x20b   :  { %v4777_v10 = vrot.slane %v4463_v28, %v5937_v57 }
 0x20c   :  { %v4857_v34 = vsel %vm4617_vm13, %v4856_v5, %v4852_v45 }
 0x20d   :  { %v4514_v4 = vpop.permute.xlu0 %4513  ;;  %v4778_v57 = vsel %vm4617_vm13, %v4777_v10, %v4773_v61 }
 0x20e   :  { %v4466_v47 = vpop.permute.xlu1 %4465  ;;  %v4861_v31 = vrot.slane %v4514_v4, %v5942_v1 }
 0x20f   :  { %v4782_v0 = vrot.slane %v4466_v47, %v5942_v1 }
 0x210   :  { %v4862_v18 = vsel %vm4624_vm14, %v4861_v31, %v4857_v34 }
 0x211   :  { %v4783_v14 = vsel %vm4624_vm14, %v4782_v0, %v4778_v57  ;;  %v4865_v53 = vsel %vm4863_vm15, %v4862_v18, %v5986_v2 }
 0x212   :  { %v4864_v19 = vsel %vm4863_vm15, %v4783_v14, %v5951_v52 }
 0x213   :  { %v4866_v58 = vcombine.low %v4864_v19, %v4865_v53 }
 0x215   :  { %v4873_v11 = vrot.slane %v4866_v58, %v5068_v27 }
 0x217   :  { %v4875_v15 = vadd.f32 %v4873_v11, %v1186_v38 }
 0x219   :  { %4876 = vst [vmem:[#allocation2] sm:$0xf] %v4875_v15 }
 0x220   :  { %v4880_v1 = vld [vmem:[#allocation2] sm:$0xf] }
 0x221   :  { %4881 = vst [vmem:[#allocation6] sm:$0xf] %v4880_v1 }
 0x222   :  { %4943 = shalt.err (!%p4940_p12)
}
 0x223   :  { %s4944_s24 = scalar_lea.hbm %s6066_s1, 64 }
 0x224   :  { %p4945_p13 = scmp.ne.s32.totalorder %s6066_s1, %s4944_s24  ;;  %p4948_p0 = scmp.lt.u32.totalorder %s4944_s24, %s6066_s1 }
 0x226   :  { %p4950_p1 = pnand %p4948_p0, %p4945_p13 }
 0x228   :  { %4953 = shalt.err (!%p4950_p1)
}
 0x229   :  { %4891 = dma.vmem_to_hbm [thread:$0]  %s4889_s20, 64, %s6066_s1, [#allocation5]  }
 0x22a   :  { %4956 = dma.done.wait [#allocation5], 64  }
 0x22b   :  { %4957 = vsyncadd [#allocation5], 4294967232 }
 0x22c   :  { %4895 = vsyncpa [#allocation4], 1 }
 0x22d   :  { %4896 = vsyncpa [#allocation5], 1 }

</bundles_post_ra>
